<compile_context>
chip_gen: v7x
topology: tpu7x:2x2x1
jax: 0.10.0
libtpu: 0.0.40
codegen_flags: <defaults>
</compile_context>

<pallas_src>
import math
from functools import partial

import jax
import jax.numpy as jnp
from jax import lax
from jax.experimental import pallas as pl
from jax.experimental.pallas import tpu as pltpu

D_MODEL = 32
D_FF = 64
N_HEADS = 4
HEAD_DIM = D_MODEL // N_HEADS
EPS = 1e-5


# ----------------------------- in-kernel helpers -----------------------------

def _layernorm(v, gamma, beta):
    # One-pass mean/variance (E[x^2] - mu^2): halves the cross-lane reductions.
    mu = jnp.mean(v, axis=-1, keepdims=True)
    var = jnp.mean(v * v, axis=-1, keepdims=True) - mu * mu
    return (v - mu) * lax.rsqrt(var + EPS) * gamma + beta


def _softmax(s):
    m = jnp.max(s, axis=-1, keepdims=True)
    e = jnp.exp(s - m)
    return e / jnp.sum(e, axis=-1, keepdims=True)  # exact (numerics-faithful)


def _attend(q, k, v, wo, bo):
    """Scaled dot-product attention over N_HEADS column blocks of q/k/v.

    q: (Lq, D), k/v: (Lk, D).  Per-head outputs are lane-concatenated back to a
    single (Lq, D) tile (intra-vreg lane placement, no XLU relayout) and pushed
    through ONE (D, D) output projection instead of 4 K=8 matmuls + adds.
    """
    scale = 1.0 / math.sqrt(HEAD_DIM)
    heads = []
    for h in range(N_HEADS):                      # static unroll, tiny tiles
        lo, hi = h * HEAD_DIM, (h + 1) * HEAD_DIM
        s = lax.dot_general(q[:, lo:hi], k[:, lo:hi],
                            (((1,), (1,)), ((), ())),
                            preferred_element_type=jnp.float32) * scale
        p = _softmax(s)
        heads.append(jnp.dot(p, v[:, lo:hi], preferred_element_type=jnp.float32))
    o = jnp.concatenate(heads, axis=-1)           # (Lq, D)
    return jnp.dot(o, wo, preferred_element_type=jnp.float32) + bo


# --------------------------------- kernel ------------------------------------

def decoder_kernel(x_ref, cross_ref,
                   w_qkv_ref, b_qkv_ref, w_cq_ref, b_cq_ref,
                   w_ckv_ref, b_ckv_ref, w_o_ref, b_o_ref,
                   w1_ref, b1_ref, w2_ref, b2_ref,
                   ln_g_ref, ln_b_ref, fin_g_ref, fin_b_ref,
                   out_ref, *, num_layers):
    D = D_MODEL
    x = x_ref[0]            # (L, D)   one batch element per grid step
    cross = cross_ref[0]    # (S, D)

    for l in range(num_layers):  # static unroll over decoder layers
        # ---- self-attention (fused QKV projection) + residual + norm1 ----
        qkv = jnp.dot(x, w_qkv_ref[l],
                      preferred_element_type=jnp.float32) + b_qkv_ref[l]
        attn = _attend(qkv[:, :D], qkv[:, D:2 * D], qkv[:, 2 * D:],
                       w_o_ref[l, 0], b_o_ref[l, 0])
        x = _layernorm(x + attn, ln_g_ref[l, 0], ln_b_ref[l, 0])

        # ---- cross-attention (fused KV projection) + residual + norm2 ----
        q = jnp.dot(x, w_cq_ref[l],
                    preferred_element_type=jnp.float32) + b_cq_ref[l]
        kv = jnp.dot(cross, w_ckv_ref[l],
                     preferred_element_type=jnp.float32) + b_ckv_ref[l]
        attn = _attend(q, kv[:, :D], kv[:, D:], w_o_ref[l, 1], b_o_ref[l, 1])
        x = _layernorm(x + attn, ln_g_ref[l, 1], ln_b_ref[l, 1])

        # ---- position-wise FFN: Conv1d(k=1) -> relu -> Conv1d(k=1) ----
        # Weights pre-transposed in wrapper: w1 (D, D_FF), w2 (D_FF, D).
        y = jnp.dot(x, w1_ref[l], preferred_element_type=jnp.float32) + b1_ref[l]
        y = jnp.maximum(y, 0.0)
        y = jnp.dot(y, w2_ref[l], preferred_element_type=jnp.float32) + b2_ref[l]
        x = _layernorm(x + y, ln_g_ref[l, 2], ln_b_ref[l, 2])

    # final LayerNorm of the Decoder container
    out_ref[0] = _layernorm(x, fin_g_ref[...], fin_b_ref[...])


# --------------------------------- wrapper -----------------------------------

def decoder_forward(x, cross, layer_params, norm_gamma, norm_beta):
    """Mirrors Decoder.forward (mask=None path) as a single fused pallas_call."""
    B, L, D = x.shape
    S = cross.shape[1]
    assert D == D_MODEL
    NL = len(layer_params)

    # ---- pack per-layer parameters into stacked, matmul-fused slabs ----
    def cat(p, names):
        return jnp.concatenate([p[n] for n in names], axis=-1)

    w_qkv = jnp.stack([cat(p, ("wq1", "wk1", "wv1")) for p in layer_params])   # (NL, D, 3D)
    b_qkv = jnp.stack([cat(p, ("bq1", "bk1", "bv1")) for p in layer_params])   # (NL, 1, 3D)
    w_cq = jnp.stack([p["wq2"] for p in layer_params])                         # (NL, D, D)
    b_cq = jnp.stack([p["bq2"] for p in layer_params])                         # (NL, 1, D)
    w_ckv = jnp.stack([cat(p, ("wk2", "wv2")) for p in layer_params])          # (NL, D, 2D)
    b_ckv = jnp.stack([cat(p, ("bk2", "bv2")) for p in layer_params])          # (NL, 1, 2D)
    w_o = jnp.stack([jnp.stack([p["wo1"], p["wo2"]]) for p in layer_params])   # (NL, 2, D, D)
    b_o = jnp.stack([jnp.stack([p["bo1"], p["bo2"]]) for p in layer_params])   # (NL, 2, 1, D)
    w1 = jnp.stack([p["w1"].T for p in layer_params])                          # (NL, D, D_FF)
    b1 = jnp.stack([p["b1"] for p in layer_params])                            # (NL, 1, D_FF)
    w2 = jnp.stack([p["w2"].T for p in layer_params])                          # (NL, D_FF, D)
    b2 = jnp.stack([p["b2"] for p in layer_params])                            # (NL, 1, D)
    ln_g = jnp.stack([jnp.stack([p[k] for k in ("g1", "g2", "g3")])
                      for p in layer_params])                                  # (NL, 3, 1, D)
    ln_b = jnp.stack([jnp.stack([p[k] for k in ("be1", "be2", "be3")])
                      for p in layer_params])                                  # (NL, 3, 1, D)

    inputs = (x, cross, w_qkv, b_qkv, w_cq, b_cq, w_ckv, b_ckv, w_o, b_o,
              w1, b1, w2, b2, ln_g, ln_b, norm_gamma, norm_beta)

    # Weight slabs: constant block index -> DMA'd once, stay resident in VMEM.
    def resident_spec(a):
        nd = a.ndim
        return pl.BlockSpec(a.shape, lambda b, _nd=nd: (0,) * _nd)

    in_specs = [pl.BlockSpec((1, L, D), lambda b: (b, 0, 0)),
                pl.BlockSpec((1, S, D), lambda b: (b, 0, 0))]
    in_specs += [resident_spec(a) for a in inputs[2:]]

    # Advisory cost estimate so XLA can overlap the custom call.
    per_elem = 2 * (L * D * 3 * D + 2 * L * L * D + L * D * D        # self-attn
                    + L * D * D + S * D * 2 * D + 2 * L * S * D + L * D * D  # cross
                    + L * D * D_FF + L * D_FF * D)                   # FFN
    cost = pl.CostEstimate(
        flops=B * NL * per_elem,
        transcendentals=B * NL * N_HEADS * (L * L + L * S),
        bytes_accessed=sum(int(a.size) * 4 for a in inputs) + B * L * D * 4,
    )

    out = pl.pallas_call(
        partial(decoder_kernel, num_layers=NL),
        out_shape=jax.ShapeDtypeStruct((B, L, D), jnp.float32),
        grid_spec=pltpu.PrefetchScalarGridSpec(
            num_scalar_prefetch=0,
            grid=(B,),  # real batch axis: no block-diagonal masking waste,
                        # shards across TensorCores on multi-TC chips
            in_specs=in_specs,
            out_specs=pl.BlockSpec((1, L, D), lambda b: (b, 0, 0)),
        ),
        compiler_params=pltpu.CompilerParams(dimension_semantics=("parallel",)),
        cost_estimate=cost,
    )(*inputs)
    return out


# ----------------------------- parameter init --------------------------------

def init_layer_params(key):
    ks = jax.random.split(key, 20)

    def lin(k, shape, fan_in):
        return jax.random.normal(k, shape, jnp.float32) / math.sqrt(fan_in)

    p = {}
    # Attention projections as full (D, D) matrices (heads = column blocks),
    # with nn.Linear-style biases.
    w_names = ("wq1", "wk1", "wv1", "wo1", "wq2", "wk2", "wv2", "wo2")
    b_names = ("bq1", "bk1", "bv1", "bo1", "bq2", "bk2", "bv2", "bo2")
    for i, (wn, bn) in enumerate(zip(w_names, b_names)):
        p[wn] = lin(ks[i], (D_MODEL, D_MODEL), D_MODEL)
        p[bn] = 0.02 * jax.random.normal(ks[8 + i], (1, D_MODEL), jnp.float32)
    # FFN stored in PyTorch Conv1d(k=1) layout (out, in); transposed in wrapper.
    p["w1"] = lin(ks[16], (D_FF, D_MODEL), D_MODEL)
    p["b1"] = 0.02 * jax.random.normal(ks[17], (1, D_FF), jnp.float32)
    p["w2"] = lin(ks[18], (D_MODEL, D_FF), D_FF)
    p["b2"] = 0.02 * jax.random.normal(ks[19], (1, D_MODEL), jnp.float32)
    for g, b in (("g1", "be1"), ("g2", "be2"), ("g3", "be3")):
        p[g] = jnp.ones((1, D_MODEL), jnp.float32)
        p[b] = jnp.zeros((1, D_MODEL), jnp.float32)
    return p


# ----------------------------------- main -------------------------------------

if __name__ == "__main__":
    key = jax.random.PRNGKey(0)
    kx, kc, k1, k2 = jax.random.split(key, 4)

    B, L, S = 2, 8, 8
    x = jax.random.normal(kx, (B, L, D_MODEL), jnp.float32)
    cross = jax.random.normal(kc, (B, S, D_MODEL), jnp.float32)

    layer_params = [init_layer_params(k1), init_layer_params(k2)]  # 2 decoder layers
    norm_gamma = jnp.ones((1, D_MODEL), jnp.float32)
    norm_beta = jnp.zeros((1, D_MODEL), jnp.float32)

    out = decoder_forward(x, cross, layer_params, norm_gamma, norm_beta)
    jax.block_until_ready(out)
    assert out.shape == (B, L, D_MODEL) and out.dtype == jnp.float32
    assert bool(jnp.all(jnp.isfinite(out)))
    print("KERNEL_OK")
</pallas_src>

<mosaic_0001>
module attributes {stable_mosaic.version = 11 : i64} {
  func.func @decoder_kernel(%arg0: i32, %arg1: memref<1x8x32xf32, #tpu.memory_space<vmem>>, %arg2: memref<1x8x32xf32, #tpu.memory_space<vmem>>, %arg3: memref<2x32x96xf32, #tpu.memory_space<vmem>>, %arg4: memref<2x1x96xf32, #tpu.memory_space<vmem>>, %arg5: memref<2x32x32xf32, #tpu.memory_space<vmem>>, %arg6: memref<2x1x32xf32, #tpu.memory_space<vmem>>, %arg7: memref<2x32x64xf32, #tpu.memory_space<vmem>>, %arg8: memref<2x1x64xf32, #tpu.memory_space<vmem>>, %arg9: memref<2x2x32x32xf32, #tpu.memory_space<vmem>>, %arg10: memref<2x2x1x32xf32, #tpu.memory_space<vmem>>, %arg11: memref<2x32x64xf32, #tpu.memory_space<vmem>>, %arg12: memref<2x1x64xf32, #tpu.memory_space<vmem>>, %arg13: memref<2x64x32xf32, #tpu.memory_space<vmem>>, %arg14: memref<2x1x32xf32, #tpu.memory_space<vmem>>, %arg15: memref<2x3x1x32xf32, #tpu.memory_space<vmem>>, %arg16: memref<2x3x1x32xf32, #tpu.memory_space<vmem>>, %arg17: memref<1x32xf32, #tpu.memory_space<vmem>>, %arg18: memref<1x32xf32, #tpu.memory_space<vmem>>, %arg19: memref<1x8x32xf32, #tpu.memory_space<vmem>>) attributes {dimension_semantics = [#tpu.dimension_semantics<parallel>], iteration_bounds = array<i64: 2>, scalar_prefetch = 0 : i64, scratch_operands = 0 : i64, tpu.core_type = #tpu.core_type<tc>, window_params = [{transform_indices = @transform_0, window_bounds = array<i64: 1, 8, 32>}, {transform_indices = @transform_1, window_bounds = array<i64: 1, 8, 32>}, {pipeline_mode = #tpu.pipeline_mode<synchronous>, transform_indices = @transform_2, window_bounds = array<i64: 2, 32, 96>}, {pipeline_mode = #tpu.pipeline_mode<synchronous>, transform_indices = @transform_3, window_bounds = array<i64: 2, 1, 96>}, {pipeline_mode = #tpu.pipeline_mode<synchronous>, transform_indices = @transform_4, window_bounds = array<i64: 2, 32, 32>}, {pipeline_mode = #tpu.pipeline_mode<synchronous>, transform_indices = @transform_5, window_bounds = array<i64: 2, 1, 32>}, {pipeline_mode = #tpu.pipeline_mode<synchronous>, transform_indices = @transform_6, window_bounds = array<i64: 2, 32, 64>}, {pipeline_mode = #tpu.pipeline_mode<synchronous>, transform_indices = @transform_7, window_bounds = array<i64: 2, 1, 64>}, {pipeline_mode = #tpu.pipeline_mode<synchronous>, transform_indices = @transform_8, window_bounds = array<i64: 2, 2, 32, 32>}, {pipeline_mode = #tpu.pipeline_mode<synchronous>, transform_indices = @transform_9, window_bounds = array<i64: 2, 2, 1, 32>}, {pipeline_mode = #tpu.pipeline_mode<synchronous>, transform_indices = @transform_10, window_bounds = array<i64: 2, 32, 64>}, {pipeline_mode = #tpu.pipeline_mode<synchronous>, transform_indices = @transform_11, window_bounds = array<i64: 2, 1, 64>}, {pipeline_mode = #tpu.pipeline_mode<synchronous>, transform_indices = @transform_12, window_bounds = array<i64: 2, 64, 32>}, {pipeline_mode = #tpu.pipeline_mode<synchronous>, transform_indices = @transform_13, window_bounds = array<i64: 2, 1, 32>}, {pipeline_mode = #tpu.pipeline_mode<synchronous>, transform_indices = @transform_14, window_bounds = array<i64: 2, 3, 1, 32>}, {pipeline_mode = #tpu.pipeline_mode<synchronous>, transform_indices = @transform_15, window_bounds = array<i64: 2, 3, 1, 32>}, {pipeline_mode = #tpu.pipeline_mode<synchronous>, transform_indices = @transform_16, window_bounds = array<i64: 1, 32>}, {pipeline_mode = #tpu.pipeline_mode<synchronous>, transform_indices = @transform_17, window_bounds = array<i64: 1, 32>}, {transform_indices = @transform_18, window_bounds = array<i64: 1, 8, 32>}]} {
    %c0 = arith.constant 0 : index
    %c0_0 = arith.constant 0 : index
    %c0_1 = arith.constant 0 : index
    %0 = vector.load %arg1[%c0, %c0_0, %c0_1] : memref<1x8x32xf32, #tpu.memory_space<vmem>>, vector<1x8x32xf32>
    %1 = vector.shape_cast %0 : vector<1x8x32xf32> to vector<8x32xf32>
    %c0_2 = arith.constant 0 : index
    %c0_3 = arith.constant 0 : index
    %c0_4 = arith.constant 0 : index
    %2 = vector.load %arg2[%c0_2, %c0_3, %c0_4] : memref<1x8x32xf32, #tpu.memory_space<vmem>>, vector<1x8x32xf32>
    %3 = vector.shape_cast %2 : vector<1x8x32xf32> to vector<8x32xf32>
    %c0_5 = arith.constant 0 : index
    %c0_6 = arith.constant 0 : index
    %c0_7 = arith.constant 0 : index
    %4 = vector.load %arg3[%c0_5, %c0_6, %c0_7] : memref<2x32x96xf32, #tpu.memory_space<vmem>>, vector<1x32x96xf32>
    %5 = vector.shape_cast %4 : vector<1x32x96xf32> to vector<32x96xf32>
    %cst = arith.constant dense<0.000000e+00> : vector<8x96xf32>
    %6 = tpu.matmul %1, %5, %cst {dimension_numbers = #tpu.dot_dimension_numbers<[1], [0], [0], [1], [0, 0, 1, 1], [], []>} : vector<8x32xf32>, vector<32x96xf32>, vector<8x96xf32> -> vector<8x96xf32>
    %c0_8 = arith.constant 0 : index
    %c0_9 = arith.constant 0 : index
    %c0_10 = arith.constant 0 : index
    %7 = vector.load %arg4[%c0_8, %c0_9, %c0_10] : memref<2x1x96xf32, #tpu.memory_space<vmem>>, vector<1x1x96xf32>
    %8 = vector.shape_cast %7 : vector<1x1x96xf32> to vector<1x96xf32>
    %9 = vector.broadcast %8 : vector<1x96xf32> to vector<8x96xf32>
    %10 = arith.addf %6, %9 : vector<8x96xf32>
    %11 = vector.extract_strided_slice %10 {offsets = [0, 0], sizes = [8, 32], strides = [1, 1]} : vector<8x96xf32> to vector<8x32xf32>
    %12 = vector.extract_strided_slice %10 {offsets = [0, 32], sizes = [8, 32], strides = [1, 1]} : vector<8x96xf32> to vector<8x32xf32>
    %13 = vector.extract_strided_slice %10 {offsets = [0, 64], sizes = [8, 32], strides = [1, 1]} : vector<8x96xf32> to vector<8x32xf32>
    %c0_11 = arith.constant 0 : index
    %c0_12 = arith.constant 0 : index
    %c0_13 = arith.constant 0 : index
    %c0_14 = arith.constant 0 : index
    %14 = vector.load %arg9[%c0_11, %c0_12, %c0_13, %c0_14] : memref<2x2x32x32xf32, #tpu.memory_space<vmem>>, vector<1x1x32x32xf32>
    %15 = vector.shape_cast %14 : vector<1x1x32x32xf32> to vector<32x32xf32>
    %c0_15 = arith.constant 0 : index
    %c0_16 = arith.constant 0 : index
    %c0_17 = arith.constant 0 : index
    %c0_18 = arith.constant 0 : index
    %16 = vector.load %arg10[%c0_15, %c0_16, %c0_17, %c0_18] : memref<2x2x1x32xf32, #tpu.memory_space<vmem>>, vector<1x1x1x32xf32>
    %17 = vector.shape_cast %16 : vector<1x1x1x32xf32> to vector<1x32xf32>
    %18 = vector.extract_strided_slice %11 {offsets = [0, 0], sizes = [8, 8], strides = [1, 1]} : vector<8x32xf32> to vector<8x8xf32>
    %19 = vector.extract_strided_slice %12 {offsets = [0, 0], sizes = [8, 8], strides = [1, 1]} : vector<8x32xf32> to vector<8x8xf32>
    %cst_19 = arith.constant dense<0.000000e+00> : vector<8x8xf32>
    %20 = tpu.matmul %18, %19, %cst_19 {dimension_numbers = #tpu.dot_dimension_numbers<[1], [1], [0], [0], [0, 0, 1, 0], [], []>} : vector<8x8xf32>, vector<8x8xf32>, vector<8x8xf32> -> vector<8x8xf32>
    %cst_20 = arith.constant 0.353553385 : f32
    %21 = vector.broadcast %cst_20 : f32 to vector<8x8xf32>
    %22 = arith.mulf %20, %21 : vector<8x8xf32>
    %cst_21 = arith.constant dense<0xFF800000> : vector<8xf32>
    %23 = vector.multi_reduction <maximumf>, %22, %cst_21 [1] : vector<8x8xf32> to vector<8xf32>
    %24 = vector.shape_cast %23 : vector<8xf32> to vector<8x1xf32>
    %25 = vector.broadcast %24 : vector<8x1xf32> to vector<8x8xf32>
    %26 = arith.subf %22, %25 : vector<8x8xf32>
    %27 = math.exp %26 : vector<8x8xf32>
    %cst_22 = arith.constant dense<0.000000e+00> : vector<8xf32>
    %28 = vector.multi_reduction <add>, %27, %cst_22 [1] : vector<8x8xf32> to vector<8xf32>
    %29 = vector.shape_cast %28 : vector<8xf32> to vector<8x1xf32>
    %30 = vector.broadcast %29 : vector<8x1xf32> to vector<8x8xf32>
    %31 = arith.divf %27, %30 : vector<8x8xf32>
    %32 = vector.extract_strided_slice %13 {offsets = [0, 0], sizes = [8, 8], strides = [1, 1]} : vector<8x32xf32> to vector<8x8xf32>
    %cst_23 = arith.constant dense<0.000000e+00> : vector<8x8xf32>
    %33 = tpu.matmul %31, %32, %cst_23 {dimension_numbers = #tpu.dot_dimension_numbers<[1], [0], [0], [1], [0, 0, 1, 1], [], []>} : vector<8x8xf32>, vector<8x8xf32>, vector<8x8xf32> -> vector<8x8xf32>
    %34 = vector.extract_strided_slice %11 {offsets = [0, 8], sizes = [8, 8], strides = [1, 1]} : vector<8x32xf32> to vector<8x8xf32>
    %35 = vector.extract_strided_slice %12 {offsets = [0, 8], sizes = [8, 8], strides = [1, 1]} : vector<8x32xf32> to vector<8x8xf32>
    %cst_24 = arith.constant dense<0.000000e+00> : vector<8x8xf32>
    %36 = tpu.matmul %34, %35, %cst_24 {dimension_numbers = #tpu.dot_dimension_numbers<[1], [1], [0], [0], [0, 0, 1, 0], [], []>} : vector<8x8xf32>, vector<8x8xf32>, vector<8x8xf32> -> vector<8x8xf32>
    %cst_25 = arith.constant 0.353553385 : f32
    %37 = vector.broadcast %cst_25 : f32 to vector<8x8xf32>
    %38 = arith.mulf %36, %37 : vector<8x8xf32>
    %cst_26 = arith.constant dense<0xFF800000> : vector<8xf32>
    %39 = vector.multi_reduction <maximumf>, %38, %cst_26 [1] : vector<8x8xf32> to vector<8xf32>
    %40 = vector.shape_cast %39 : vector<8xf32> to vector<8x1xf32>
    %41 = vector.broadcast %40 : vector<8x1xf32> to vector<8x8xf32>
    %42 = arith.subf %38, %41 : vector<8x8xf32>
    %43 = math.exp %42 : vector<8x8xf32>
    %cst_27 = arith.constant dense<0.000000e+00> : vector<8xf32>
    %44 = vector.multi_reduction <add>, %43, %cst_27 [1] : vector<8x8xf32> to vector<8xf32>
    %45 = vector.shape_cast %44 : vector<8xf32> to vector<8x1xf32>
    %46 = vector.broadcast %45 : vector<8x1xf32> to vector<8x8xf32>
    %47 = arith.divf %43, %46 : vector<8x8xf32>
    %48 = vector.extract_strided_slice %13 {offsets = [0, 8], sizes = [8, 8], strides = [1, 1]} : vector<8x32xf32> to vector<8x8xf32>
    %cst_28 = arith.constant dense<0.000000e+00> : vector<8x8xf32>
    %49 = tpu.matmul %47, %48, %cst_28 {dimension_numbers = #tpu.dot_dimension_numbers<[1], [0], [0], [1], [0, 0, 1, 1], [], []>} : vector<8x8xf32>, vector<8x8xf32>, vector<8x8xf32> -> vector<8x8xf32>
    %50 = vector.extract_strided_slice %11 {offsets = [0, 16], sizes = [8, 8], strides = [1, 1]} : vector<8x32xf32> to vector<8x8xf32>
    %51 = vector.extract_strided_slice %12 {offsets = [0, 16], sizes = [8, 8], strides = [1, 1]} : vector<8x32xf32> to vector<8x8xf32>
    %cst_29 = arith.constant dense<0.000000e+00> : vector<8x8xf32>
    %52 = tpu.matmul %50, %51, %cst_29 {dimension_numbers = #tpu.dot_dimension_numbers<[1], [1], [0], [0], [0, 0, 1, 0], [], []>} : vector<8x8xf32>, vector<8x8xf32>, vector<8x8xf32> -> vector<8x8xf32>
    %cst_30 = arith.constant 0.353553385 : f32
    %53 = vector.broadcast %cst_30 : f32 to vector<8x8xf32>
    %54 = arith.mulf %52, %53 : vector<8x8xf32>
    %cst_31 = arith.constant dense<0xFF800000> : vector<8xf32>
    %55 = vector.multi_reduction <maximumf>, %54, %cst_31 [1] : vector<8x8xf32> to vector<8xf32>
    %56 = vector.shape_cast %55 : vector<8xf32> to vector<8x1xf32>
    %57 = vector.broadcast %56 : vector<8x1xf32> to vector<8x8xf32>
    %58 = arith.subf %54, %57 : vector<8x8xf32>
    %59 = math.exp %58 : vector<8x8xf32>
    %cst_32 = arith.constant dense<0.000000e+00> : vector<8xf32>
    %60 = vector.multi_reduction <add>, %59, %cst_32 [1] : vector<8x8xf32> to vector<8xf32>
    %61 = vector.shape_cast %60 : vector<8xf32> to vector<8x1xf32>
    %62 = vector.broadcast %61 : vector<8x1xf32> to vector<8x8xf32>
    %63 = arith.divf %59, %62 : vector<8x8xf32>
    %64 = vector.extract_strided_slice %13 {offsets = [0, 16], sizes = [8, 8], strides = [1, 1]} : vector<8x32xf32> to vector<8x8xf32>
    %cst_33 = arith.constant dense<0.000000e+00> : vector<8x8xf32>
    %65 = tpu.matmul %63, %64, %cst_33 {dimension_numbers = #tpu.dot_dimension_numbers<[1], [0], [0], [1], [0, 0, 1, 1], [], []>} : vector<8x8xf32>, vector<8x8xf32>, vector<8x8xf32> -> vector<8x8xf32>
    %66 = vector.extract_strided_slice %11 {offsets = [0, 24], sizes = [8, 8], strides = [1, 1]} : vector<8x32xf32> to vector<8x8xf32>
    %67 = vector.extract_strided_slice %12 {offsets = [0, 24], sizes = [8, 8], strides = [1, 1]} : vector<8x32xf32> to vector<8x8xf32>
    %cst_34 = arith.constant dense<0.000000e+00> : vector<8x8xf32>
    %68 = tpu.matmul %66, %67, %cst_34 {dimension_numbers = #tpu.dot_dimension_numbers<[1], [1], [0], [0], [0, 0, 1, 0], [], []>} : vector<8x8xf32>, vector<8x8xf32>, vector<8x8xf32> -> vector<8x8xf32>
    %cst_35 = arith.constant 0.353553385 : f32
    %69 = vector.broadcast %cst_35 : f32 to vector<8x8xf32>
    %70 = arith.mulf %68, %69 : vector<8x8xf32>
    %cst_36 = arith.constant dense<0xFF800000> : vector<8xf32>
    %71 = vector.multi_reduction <maximumf>, %70, %cst_36 [1] : vector<8x8xf32> to vector<8xf32>
    %72 = vector.shape_cast %71 : vector<8xf32> to vector<8x1xf32>
    %73 = vector.broadcast %72 : vector<8x1xf32> to vector<8x8xf32>
    %74 = arith.subf %70, %73 : vector<8x8xf32>
    %75 = math.exp %74 : vector<8x8xf32>
    %cst_37 = arith.constant dense<0.000000e+00> : vector<8xf32>
    %76 = vector.multi_reduction <add>, %75, %cst_37 [1] : vector<8x8xf32> to vector<8xf32>
    %77 = vector.shape_cast %76 : vector<8xf32> to vector<8x1xf32>
    %78 = vector.broadcast %77 : vector<8x1xf32> to vector<8x8xf32>
    %79 = arith.divf %75, %78 : vector<8x8xf32>
    %80 = vector.extract_strided_slice %13 {offsets = [0, 24], sizes = [8, 8], strides = [1, 1]} : vector<8x32xf32> to vector<8x8xf32>
    %cst_38 = arith.constant dense<0.000000e+00> : vector<8x8xf32>
    %81 = tpu.matmul %79, %80, %cst_38 {dimension_numbers = #tpu.dot_dimension_numbers<[1], [0], [0], [1], [0, 0, 1, 1], [], []>} : vector<8x8xf32>, vector<8x8xf32>, vector<8x8xf32> -> vector<8x8xf32>
    %82 = tpu.concatenate %33, %49, %65, %81 in 1 : vector<8x8xf32>, vector<8x8xf32>, vector<8x8xf32>, vector<8x8xf32> -> vector<8x32xf32>
    %cst_39 = arith.constant dense<0.000000e+00> : vector<8x32xf32>
    %83 = tpu.matmul %82, %15, %cst_39 {dimension_numbers = #tpu.dot_dimension_numbers<[1], [0], [0], [1], [0, 0, 1, 1], [], []>} : vector<8x32xf32>, vector<32x32xf32>, vector<8x32xf32> -> vector<8x32xf32>
    %84 = vector.broadcast %17 : vector<1x32xf32> to vector<8x32xf32>
    %85 = arith.addf %83, %84 : vector<8x32xf32>
    %86 = arith.addf %1, %85 : vector<8x32xf32>
    %c0_40 = arith.constant 0 : index
    %c0_41 = arith.constant 0 : index
    %c0_42 = arith.constant 0 : index
    %c0_43 = arith.constant 0 : index
    %87 = vector.load %arg15[%c0_40, %c0_41, %c0_42, %c0_43] : memref<2x3x1x32xf32, #tpu.memory_space<vmem>>, vector<1x1x1x32xf32>
    %88 = vector.shape_cast %87 : vector<1x1x1x32xf32> to vector<1x32xf32>
    %c0_44 = arith.constant 0 : index
    %c0_45 = arith.constant 0 : index
    %c0_46 = arith.constant 0 : index
    %c0_47 = arith.constant 0 : index
    %89 = vector.load %arg16[%c0_44, %c0_45, %c0_46, %c0_47] : memref<2x3x1x32xf32, #tpu.memory_space<vmem>>, vector<1x1x1x32xf32>
    %90 = vector.shape_cast %89 : vector<1x1x1x32xf32> to vector<1x32xf32>
    %cst_48 = arith.constant dense<0.000000e+00> : vector<8xf32>
    %91 = vector.multi_reduction <add>, %86, %cst_48 [1] : vector<8x32xf32> to vector<8xf32>
    %92 = vector.shape_cast %91 : vector<8xf32> to vector<8x1xf32>
    %cst_49 = arith.constant 3.200000e+01 : f32
    %93 = vector.broadcast %cst_49 : f32 to vector<8x1xf32>
    %94 = arith.divf %92, %93 : vector<8x1xf32>
    %95 = arith.mulf %86, %86 : vector<8x32xf32>
    %cst_50 = arith.constant dense<0.000000e+00> : vector<8xf32>
    %96 = vector.multi_reduction <add>, %95, %cst_50 [1] : vector<8x32xf32> to vector<8xf32>
    %97 = vector.shape_cast %96 : vector<8xf32> to vector<8x1xf32>
    %cst_51 = arith.constant 3.200000e+01 : f32
    %98 = vector.broadcast %cst_51 : f32 to vector<8x1xf32>
    %99 = arith.divf %97, %98 : vector<8x1xf32>
    %100 = arith.mulf %94, %94 : vector<8x1xf32>
    %101 = arith.subf %99, %100 : vector<8x1xf32>
    %102 = vector.broadcast %94 : vector<8x1xf32> to vector<8x32xf32>
    %103 = arith.subf %86, %102 : vector<8x32xf32>
    %cst_52 = arith.constant 9.99999974E-6 : f32
    %104 = vector.broadcast %cst_52 : f32 to vector<8x1xf32>
    %105 = arith.addf %101, %104 : vector<8x1xf32>
    %106 = math.rsqrt %105 : vector<8x1xf32>
    %107 = vector.broadcast %106 : vector<8x1xf32> to vector<8x32xf32>
    %108 = arith.mulf %103, %107 : vector<8x32xf32>
    %109 = vector.broadcast %88 : vector<1x32xf32> to vector<8x32xf32>
    %110 = arith.mulf %108, %109 : vector<8x32xf32>
    %111 = vector.broadcast %90 : vector<1x32xf32> to vector<8x32xf32>
    %112 = arith.addf %110, %111 : vector<8x32xf32>
    %c0_53 = arith.constant 0 : index
    %c0_54 = arith.constant 0 : index
    %c0_55 = arith.constant 0 : index
    %113 = vector.load %arg5[%c0_53, %c0_54, %c0_55] : memref<2x32x32xf32, #tpu.memory_space<vmem>>, vector<1x32x32xf32>
    %114 = vector.shape_cast %113 : vector<1x32x32xf32> to vector<32x32xf32>
    %cst_56 = arith.constant dense<0.000000e+00> : vector<8x32xf32>
    %115 = tpu.matmul %112, %114, %cst_56 {dimension_numbers = #tpu.dot_dimension_numbers<[1], [0], [0], [1], [0, 0, 1, 1], [], []>} : vector<8x32xf32>, vector<32x32xf32>, vector<8x32xf32> -> vector<8x32xf32>
    %c0_57 = arith.constant 0 : index
    %c0_58 = arith.constant 0 : index
    %c0_59 = arith.constant 0 : index
    %116 = vector.load %arg6[%c0_57, %c0_58, %c0_59] : memref<2x1x32xf32, #tpu.memory_space<vmem>>, vector<1x1x32xf32>
    %117 = vector.shape_cast %116 : vector<1x1x32xf32> to vector<1x32xf32>
    %118 = vector.broadcast %117 : vector<1x32xf32> to vector<8x32xf32>
    %119 = arith.addf %115, %118 : vector<8x32xf32>
    %c0_60 = arith.constant 0 : index
    %c0_61 = arith.constant 0 : index
    %c0_62 = arith.constant 0 : index
    %120 = vector.load %arg7[%c0_60, %c0_61, %c0_62] : memref<2x32x64xf32, #tpu.memory_space<vmem>>, vector<1x32x64xf32>
    %121 = vector.shape_cast %120 : vector<1x32x64xf32> to vector<32x64xf32>
    %cst_63 = arith.constant dense<0.000000e+00> : vector<8x64xf32>
    %122 = tpu.matmul %3, %121, %cst_63 {dimension_numbers = #tpu.dot_dimension_numbers<[1], [0], [0], [1], [0, 0, 1, 1], [], []>} : vector<8x32xf32>, vector<32x64xf32>, vector<8x64xf32> -> vector<8x64xf32>
    %c0_64 = arith.constant 0 : index
    %c0_65 = arith.constant 0 : index
    %c0_66 = arith.constant 0 : index
    %123 = vector.load %arg8[%c0_64, %c0_65, %c0_66] : memref<2x1x64xf32, #tpu.memory_space<vmem>>, vector<1x1x64xf32>
    %124 = vector.shape_cast %123 : vector<1x1x64xf32> to vector<1x64xf32>
    %125 = vector.broadcast %124 : vector<1x64xf32> to vector<8x64xf32>
    %126 = arith.addf %122, %125 : vector<8x64xf32>
    %127 = vector.extract_strided_slice %126 {offsets = [0, 0], sizes = [8, 32], strides = [1, 1]} : vector<8x64xf32> to vector<8x32xf32>
    %128 = vector.extract_strided_slice %126 {offsets = [0, 32], sizes = [8, 32], strides = [1, 1]} : vector<8x64xf32> to vector<8x32xf32>
    %c0_67 = arith.constant 0 : index
    %c1 = arith.constant 1 : index
    %c0_68 = arith.constant 0 : index
    %c0_69 = arith.constant 0 : index
    %129 = vector.load %arg9[%c0_67, %c1, %c0_68, %c0_69] : memref<2x2x32x32xf32, #tpu.memory_space<vmem>>, vector<1x1x32x32xf32>
    %130 = vector.shape_cast %129 : vector<1x1x32x32xf32> to vector<32x32xf32>
    %c0_70 = arith.constant 0 : index
    %c1_71 = arith.constant 1 : index
    %c0_72 = arith.constant 0 : index
    %c0_73 = arith.constant 0 : index
    %131 = vector.load %arg10[%c0_70, %c1_71, %c0_72, %c0_73] : memref<2x2x1x32xf32, #tpu.memory_space<vmem>>, vector<1x1x1x32xf32>
    %132 = vector.shape_cast %131 : vector<1x1x1x32xf32> to vector<1x32xf32>
    %133 = vector.extract_strided_slice %119 {offsets = [0, 0], sizes = [8, 8], strides = [1, 1]} : vector<8x32xf32> to vector<8x8xf32>
    %134 = vector.extract_strided_slice %127 {offsets = [0, 0], sizes = [8, 8], strides = [1, 1]} : vector<8x32xf32> to vector<8x8xf32>
    %cst_74 = arith.constant dense<0.000000e+00> : vector<8x8xf32>
    %135 = tpu.matmul %133, %134, %cst_74 {dimension_numbers = #tpu.dot_dimension_numbers<[1], [1], [0], [0], [0, 0, 1, 0], [], []>} : vector<8x8xf32>, vector<8x8xf32>, vector<8x8xf32> -> vector<8x8xf32>
    %cst_75 = arith.constant 0.353553385 : f32
    %136 = vector.broadcast %cst_75 : f32 to vector<8x8xf32>
    %137 = arith.mulf %135, %136 : vector<8x8xf32>
    %cst_76 = arith.constant dense<0xFF800000> : vector<8xf32>
    %138 = vector.multi_reduction <maximumf>, %137, %cst_76 [1] : vector<8x8xf32> to vector<8xf32>
    %139 = vector.shape_cast %138 : vector<8xf32> to vector<8x1xf32>
    %140 = vector.broadcast %139 : vector<8x1xf32> to vector<8x8xf32>
    %141 = arith.subf %137, %140 : vector<8x8xf32>
    %142 = math.exp %141 : vector<8x8xf32>
    %cst_77 = arith.constant dense<0.000000e+00> : vector<8xf32>
    %143 = vector.multi_reduction <add>, %142, %cst_77 [1] : vector<8x8xf32> to vector<8xf32>
    %144 = vector.shape_cast %143 : vector<8xf32> to vector<8x1xf32>
    %145 = vector.broadcast %144 : vector<8x1xf32> to vector<8x8xf32>
    %146 = arith.divf %142, %145 : vector<8x8xf32>
    %147 = vector.extract_strided_slice %128 {offsets = [0, 0], sizes = [8, 8], strides = [1, 1]} : vector<8x32xf32> to vector<8x8xf32>
    %cst_78 = arith.constant dense<0.000000e+00> : vector<8x8xf32>
    %148 = tpu.matmul %146, %147, %cst_78 {dimension_numbers = #tpu.dot_dimension_numbers<[1], [0], [0], [1], [0, 0, 1, 1], [], []>} : vector<8x8xf32>, vector<8x8xf32>, vector<8x8xf32> -> vector<8x8xf32>
    %149 = vector.extract_strided_slice %119 {offsets = [0, 8], sizes = [8, 8], strides = [1, 1]} : vector<8x32xf32> to vector<8x8xf32>
    %150 = vector.extract_strided_slice %127 {offsets = [0, 8], sizes = [8, 8], strides = [1, 1]} : vector<8x32xf32> to vector<8x8xf32>
    %cst_79 = arith.constant dense<0.000000e+00> : vector<8x8xf32>
    %151 = tpu.matmul %149, %150, %cst_79 {dimension_numbers = #tpu.dot_dimension_numbers<[1], [1], [0], [0], [0, 0, 1, 0], [], []>} : vector<8x8xf32>, vector<8x8xf32>, vector<8x8xf32> -> vector<8x8xf32>
    %cst_80 = arith.constant 0.353553385 : f32
    %152 = vector.broadcast %cst_80 : f32 to vector<8x8xf32>
    %153 = arith.mulf %151, %152 : vector<8x8xf32>
    %cst_81 = arith.constant dense<0xFF800000> : vector<8xf32>
    %154 = vector.multi_reduction <maximumf>, %153, %cst_81 [1] : vector<8x8xf32> to vector<8xf32>
    %155 = vector.shape_cast %154 : vector<8xf32> to vector<8x1xf32>
    %156 = vector.broadcast %155 : vector<8x1xf32> to vector<8x8xf32>
    %157 = arith.subf %153, %156 : vector<8x8xf32>
    %158 = math.exp %157 : vector<8x8xf32>
    %cst_82 = arith.constant dense<0.000000e+00> : vector<8xf32>
    %159 = vector.multi_reduction <add>, %158, %cst_82 [1] : vector<8x8xf32> to vector<8xf32>
    %160 = vector.shape_cast %159 : vector<8xf32> to vector<8x1xf32>
    %161 = vector.broadcast %160 : vector<8x1xf32> to vector<8x8xf32>
    %162 = arith.divf %158, %161 : vector<8x8xf32>
    %163 = vector.extract_strided_slice %128 {offsets = [0, 8], sizes = [8, 8], strides = [1, 1]} : vector<8x32xf32> to vector<8x8xf32>
    %cst_83 = arith.constant dense<0.000000e+00> : vector<8x8xf32>
    %164 = tpu.matmul %162, %163, %cst_83 {dimension_numbers = #tpu.dot_dimension_numbers<[1], [0], [0], [1], [0, 0, 1, 1], [], []>} : vector<8x8xf32>, vector<8x8xf32>, vector<8x8xf32> -> vector<8x8xf32>
    %165 = vector.extract_strided_slice %119 {offsets = [0, 16], sizes = [8, 8], strides = [1, 1]} : vector<8x32xf32> to vector<8x8xf32>
    %166 = vector.extract_strided_slice %127 {offsets = [0, 16], sizes = [8, 8], strides = [1, 1]} : vector<8x32xf32> to vector<8x8xf32>
    %cst_84 = arith.constant dense<0.000000e+00> : vector<8x8xf32>
    %167 = tpu.matmul %165, %166, %cst_84 {dimension_numbers = #tpu.dot_dimension_numbers<[1], [1], [0], [0], [0, 0, 1, 0], [], []>} : vector<8x8xf32>, vector<8x8xf32>, vector<8x8xf32> -> vector<8x8xf32>
    %cst_85 = arith.constant 0.353553385 : f32
    %168 = vector.broadcast %cst_85 : f32 to vector<8x8xf32>
    %169 = arith.mulf %167, %168 : vector<8x8xf32>
    %cst_86 = arith.constant dense<0xFF800000> : vector<8xf32>
    %170 = vector.multi_reduction <maximumf>, %169, %cst_86 [1] : vector<8x8xf32> to vector<8xf32>
    %171 = vector.shape_cast %170 : vector<8xf32> to vector<8x1xf32>
    %172 = vector.broadcast %171 : vector<8x1xf32> to vector<8x8xf32>
    %173 = arith.subf %169, %172 : vector<8x8xf32>
    %174 = math.exp %173 : vector<8x8xf32>
    %cst_87 = arith.constant dense<0.000000e+00> : vector<8xf32>
    %175 = vector.multi_reduction <add>, %174, %cst_87 [1] : vector<8x8xf32> to vector<8xf32>
    %176 = vector.shape_cast %175 : vector<8xf32> to vector<8x1xf32>
    %177 = vector.broadcast %176 : vector<8x1xf32> to vector<8x8xf32>
    %178 = arith.divf %174, %177 : vector<8x8xf32>
    %179 = vector.extract_strided_slice %128 {offsets = [0, 16], sizes = [8, 8], strides = [1, 1]} : vector<8x32xf32> to vector<8x8xf32>
    %cst_88 = arith.constant dense<0.000000e+00> : vector<8x8xf32>
    %180 = tpu.matmul %178, %179, %cst_88 {dimension_numbers = #tpu.dot_dimension_numbers<[1], [0], [0], [1], [0, 0, 1, 1], [], []>} : vector<8x8xf32>, vector<8x8xf32>, vector<8x8xf32> -> vector<8x8xf32>
    %181 = vector.extract_strided_slice %119 {offsets = [0, 24], sizes = [8, 8], strides = [1, 1]} : vector<8x32xf32> to vector<8x8xf32>
    %182 = vector.extract_strided_slice %127 {offsets = [0, 24], sizes = [8, 8], strides = [1, 1]} : vector<8x32xf32> to vector<8x8xf32>
    %cst_89 = arith.constant dense<0.000000e+00> : vector<8x8xf32>
    %183 = tpu.matmul %181, %182, %cst_89 {dimension_numbers = #tpu.dot_dimension_numbers<[1], [1], [0], [0], [0, 0, 1, 0], [], []>} : vector<8x8xf32>, vector<8x8xf32>, vector<8x8xf32> -> vector<8x8xf32>
    %cst_90 = arith.constant 0.353553385 : f32
    %184 = vector.broadcast %cst_90 : f32 to vector<8x8xf32>
    %185 = arith.mulf %183, %184 : vector<8x8xf32>
    %cst_91 = arith.constant dense<0xFF800000> : vector<8xf32>
    %186 = vector.multi_reduction <maximumf>, %185, %cst_91 [1] : vector<8x8xf32> to vector<8xf32>
    %187 = vector.shape_cast %186 : vector<8xf32> to vector<8x1xf32>
    %188 = vector.broadcast %187 : vector<8x1xf32> to vector<8x8xf32>
    %189 = arith.subf %185, %188 : vector<8x8xf32>
    %190 = math.exp %189 : vector<8x8xf32>
    %cst_92 = arith.constant dense<0.000000e+00> : vector<8xf32>
    %191 = vector.multi_reduction <add>, %190, %cst_92 [1] : vector<8x8xf32> to vector<8xf32>
    %192 = vector.shape_cast %191 : vector<8xf32> to vector<8x1xf32>
    %193 = vector.broadcast %192 : vector<8x1xf32> to vector<8x8xf32>
    %194 = arith.divf %190, %193 : vector<8x8xf32>
    %195 = vector.extract_strided_slice %128 {offsets = [0, 24], sizes = [8, 8], strides = [1, 1]} : vector<8x32xf32> to vector<8x8xf32>
    %cst_93 = arith.constant dense<0.000000e+00> : vector<8x8xf32>
    %196 = tpu.matmul %194, %195, %cst_93 {dimension_numbers = #tpu.dot_dimension_numbers<[1], [0], [0], [1], [0, 0, 1, 1], [], []>} : vector<8x8xf32>, vector<8x8xf32>, vector<8x8xf32> -> vector<8x8xf32>
    %197 = tpu.concatenate %148, %164, %180, %196 in 1 : vector<8x8xf32>, vector<8x8xf32>, vector<8x8xf32>, vector<8x8xf32> -> vector<8x32xf32>
    %cst_94 = arith.constant dense<0.000000e+00> : vector<8x32xf32>
    %198 = tpu.matmul %197, %130, %cst_94 {dimension_numbers = #tpu.dot_dimension_numbers<[1], [0], [0], [1], [0, 0, 1, 1], [], []>} : vector<8x32xf32>, vector<32x32xf32>, vector<8x32xf32> -> vector<8x32xf32>
    %199 = vector.broadcast %132 : vector<1x32xf32> to vector<8x32xf32>
    %200 = arith.addf %198, %199 : vector<8x32xf32>
    %201 = arith.addf %112, %200 : vector<8x32xf32>
    %c0_95 = arith.constant 0 : index
    %c1_96 = arith.constant 1 : index
    %c0_97 = arith.constant 0 : index
    %c0_98 = arith.constant 0 : index
    %202 = vector.load %arg15[%c0_95, %c1_96, %c0_97, %c0_98] : memref<2x3x1x32xf32, #tpu.memory_space<vmem>>, vector<1x1x1x32xf32>
    %203 = vector.shape_cast %202 : vector<1x1x1x32xf32> to vector<1x32xf32>
    %c0_99 = arith.constant 0 : index
    %c1_100 = arith.constant 1 : index
    %c0_101 = arith.constant 0 : index
    %c0_102 = arith.constant 0 : index
    %204 = vector.load %arg16[%c0_99, %c1_100, %c0_101, %c0_102] : memref<2x3x1x32xf32, #tpu.memory_space<vmem>>, vector<1x1x1x32xf32>
    %205 = vector.shape_cast %204 : vector<1x1x1x32xf32> to vector<1x32xf32>
    %cst_103 = arith.constant dense<0.000000e+00> : vector<8xf32>
    %206 = vector.multi_reduction <add>, %201, %cst_103 [1] : vector<8x32xf32> to vector<8xf32>
    %207 = vector.shape_cast %206 : vector<8xf32> to vector<8x1xf32>
    %cst_104 = arith.constant 3.200000e+01 : f32
    %208 = vector.broadcast %cst_104 : f32 to vector<8x1xf32>
    %209 = arith.divf %207, %208 : vector<8x1xf32>
    %210 = arith.mulf %201, %201 : vector<8x32xf32>
    %cst_105 = arith.constant dense<0.000000e+00> : vector<8xf32>
    %211 = vector.multi_reduction <add>, %210, %cst_105 [1] : vector<8x32xf32> to vector<8xf32>
    %212 = vector.shape_cast %211 : vector<8xf32> to vector<8x1xf32>
    %cst_106 = arith.constant 3.200000e+01 : f32
    %213 = vector.broadcast %cst_106 : f32 to vector<8x1xf32>
    %214 = arith.divf %212, %213 : vector<8x1xf32>
    %215 = arith.mulf %209, %209 : vector<8x1xf32>
    %216 = arith.subf %214, %215 : vector<8x1xf32>
    %217 = vector.broadcast %209 : vector<8x1xf32> to vector<8x32xf32>
    %218 = arith.subf %201, %217 : vector<8x32xf32>
    %cst_107 = arith.constant 9.99999974E-6 : f32
    %219 = vector.broadcast %cst_107 : f32 to vector<8x1xf32>
    %220 = arith.addf %216, %219 : vector<8x1xf32>
    %221 = math.rsqrt %220 : vector<8x1xf32>
    %222 = vector.broadcast %221 : vector<8x1xf32> to vector<8x32xf32>
    %223 = arith.mulf %218, %222 : vector<8x32xf32>
    %224 = vector.broadcast %203 : vector<1x32xf32> to vector<8x32xf32>
    %225 = arith.mulf %223, %224 : vector<8x32xf32>
    %226 = vector.broadcast %205 : vector<1x32xf32> to vector<8x32xf32>
    %227 = arith.addf %225, %226 : vector<8x32xf32>
    %c0_108 = arith.constant 0 : index
    %c0_109 = arith.constant 0 : index
    %c0_110 = arith.constant 0 : index
    %228 = vector.load %arg11[%c0_108, %c0_109, %c0_110] : memref<2x32x64xf32, #tpu.memory_space<vmem>>, vector<1x32x64xf32>
    %229 = vector.shape_cast %228 : vector<1x32x64xf32> to vector<32x64xf32>
    %cst_111 = arith.constant dense<0.000000e+00> : vector<8x64xf32>
    %230 = tpu.matmul %227, %229, %cst_111 {dimension_numbers = #tpu.dot_dimension_numbers<[1], [0], [0], [1], [0, 0, 1, 1], [], []>} : vector<8x32xf32>, vector<32x64xf32>, vector<8x64xf32> -> vector<8x64xf32>
    %c0_112 = arith.constant 0 : index
    %c0_113 = arith.constant 0 : index
    %c0_114 = arith.constant 0 : index
    %231 = vector.load %arg12[%c0_112, %c0_113, %c0_114] : memref<2x1x64xf32, #tpu.memory_space<vmem>>, vector<1x1x64xf32>
    %232 = vector.shape_cast %231 : vector<1x1x64xf32> to vector<1x64xf32>
    %233 = vector.broadcast %232 : vector<1x64xf32> to vector<8x64xf32>
    %234 = arith.addf %230, %233 : vector<8x64xf32>
    %cst_115 = arith.constant 0.000000e+00 : f32
    %235 = vector.broadcast %cst_115 : f32 to vector<8x64xf32>
    %236 = arith.maximumf %234, %235 : vector<8x64xf32>
    %c0_116 = arith.constant 0 : index
    %c0_117 = arith.constant 0 : index
    %c0_118 = arith.constant 0 : index
    %237 = vector.load %arg13[%c0_116, %c0_117, %c0_118] : memref<2x64x32xf32, #tpu.memory_space<vmem>>, vector<1x64x32xf32>
    %238 = vector.shape_cast %237 : vector<1x64x32xf32> to vector<64x32xf32>
    %cst_119 = arith.constant dense<0.000000e+00> : vector<8x32xf32>
    %239 = tpu.matmul %236, %238, %cst_119 {dimension_numbers = #tpu.dot_dimension_numbers<[1], [0], [0], [1], [0, 0, 1, 1], [], []>} : vector<8x64xf32>, vector<64x32xf32>, vector<8x32xf32> -> vector<8x32xf32>
    %c0_120 = arith.constant 0 : index
    %c0_121 = arith.constant 0 : index
    %c0_122 = arith.constant 0 : index
    %240 = vector.load %arg14[%c0_120, %c0_121, %c0_122] : memref<2x1x32xf32, #tpu.memory_space<vmem>>, vector<1x1x32xf32>
    %241 = vector.shape_cast %240 : vector<1x1x32xf32> to vector<1x32xf32>
    %242 = vector.broadcast %241 : vector<1x32xf32> to vector<8x32xf32>
    %243 = arith.addf %239, %242 : vector<8x32xf32>
    %244 = arith.addf %227, %243 : vector<8x32xf32>
    %c0_123 = arith.constant 0 : index
    %c2 = arith.constant 2 : index
    %c0_124 = arith.constant 0 : index
    %c0_125 = arith.constant 0 : index
    %245 = vector.load %arg15[%c0_123, %c2, %c0_124, %c0_125] : memref<2x3x1x32xf32, #tpu.memory_space<vmem>>, vector<1x1x1x32xf32>
    %246 = vector.shape_cast %245 : vector<1x1x1x32xf32> to vector<1x32xf32>
    %c0_126 = arith.constant 0 : index
    %c2_127 = arith.constant 2 : index
    %c0_128 = arith.constant 0 : index
    %c0_129 = arith.constant 0 : index
    %247 = vector.load %arg16[%c0_126, %c2_127, %c0_128, %c0_129] : memref<2x3x1x32xf32, #tpu.memory_space<vmem>>, vector<1x1x1x32xf32>
    %248 = vector.shape_cast %247 : vector<1x1x1x32xf32> to vector<1x32xf32>
    %cst_130 = arith.constant dense<0.000000e+00> : vector<8xf32>
    %249 = vector.multi_reduction <add>, %244, %cst_130 [1] : vector<8x32xf32> to vector<8xf32>
    %250 = vector.shape_cast %249 : vector<8xf32> to vector<8x1xf32>
    %cst_131 = arith.constant 3.200000e+01 : f32
    %251 = vector.broadcast %cst_131 : f32 to vector<8x1xf32>
    %252 = arith.divf %250, %251 : vector<8x1xf32>
    %253 = arith.mulf %244, %244 : vector<8x32xf32>
    %cst_132 = arith.constant dense<0.000000e+00> : vector<8xf32>
    %254 = vector.multi_reduction <add>, %253, %cst_132 [1] : vector<8x32xf32> to vector<8xf32>
    %255 = vector.shape_cast %254 : vector<8xf32> to vector<8x1xf32>
    %cst_133 = arith.constant 3.200000e+01 : f32
    %256 = vector.broadcast %cst_133 : f32 to vector<8x1xf32>
    %257 = arith.divf %255, %256 : vector<8x1xf32>
    %258 = arith.mulf %252, %252 : vector<8x1xf32>
    %259 = arith.subf %257, %258 : vector<8x1xf32>
    %260 = vector.broadcast %252 : vector<8x1xf32> to vector<8x32xf32>
    %261 = arith.subf %244, %260 : vector<8x32xf32>
    %cst_134 = arith.constant 9.99999974E-6 : f32
    %262 = vector.broadcast %cst_134 : f32 to vector<8x1xf32>
    %263 = arith.addf %259, %262 : vector<8x1xf32>
    %264 = math.rsqrt %263 : vector<8x1xf32>
    %265 = vector.broadcast %264 : vector<8x1xf32> to vector<8x32xf32>
    %266 = arith.mulf %261, %265 : vector<8x32xf32>
    %267 = vector.broadcast %246 : vector<1x32xf32> to vector<8x32xf32>
    %268 = arith.mulf %266, %267 : vector<8x32xf32>
    %269 = vector.broadcast %248 : vector<1x32xf32> to vector<8x32xf32>
    %270 = arith.addf %268, %269 : vector<8x32xf32>
    %c1_135 = arith.constant 1 : index
    %c0_136 = arith.constant 0 : index
    %c0_137 = arith.constant 0 : index
    %271 = vector.load %arg3[%c1_135, %c0_136, %c0_137] : memref<2x32x96xf32, #tpu.memory_space<vmem>>, vector<1x32x96xf32>
    %272 = vector.shape_cast %271 : vector<1x32x96xf32> to vector<32x96xf32>
    %cst_138 = arith.constant dense<0.000000e+00> : vector<8x96xf32>
    %273 = tpu.matmul %270, %272, %cst_138 {dimension_numbers = #tpu.dot_dimension_numbers<[1], [0], [0], [1], [0, 0, 1, 1], [], []>} : vector<8x32xf32>, vector<32x96xf32>, vector<8x96xf32> -> vector<8x96xf32>
    %c1_139 = arith.constant 1 : index
    %c0_140 = arith.constant 0 : index
    %c0_141 = arith.constant 0 : index
    %274 = vector.load %arg4[%c1_139, %c0_140, %c0_141] : memref<2x1x96xf32, #tpu.memory_space<vmem>>, vector<1x1x96xf32>
    %275 = vector.shape_cast %274 : vector<1x1x96xf32> to vector<1x96xf32>
    %276 = vector.broadcast %275 : vector<1x96xf32> to vector<8x96xf32>
    %277 = arith.addf %273, %276 : vector<8x96xf32>
    %278 = vector.extract_strided_slice %277 {offsets = [0, 0], sizes = [8, 32], strides = [1, 1]} : vector<8x96xf32> to vector<8x32xf32>
    %279 = vector.extract_strided_slice %277 {offsets = [0, 32], sizes = [8, 32], strides = [1, 1]} : vector<8x96xf32> to vector<8x32xf32>
    %280 = vector.extract_strided_slice %277 {offsets = [0, 64], sizes = [8, 32], strides = [1, 1]} : vector<8x96xf32> to vector<8x32xf32>
    %c1_142 = arith.constant 1 : index
    %c0_143 = arith.constant 0 : index
    %c0_144 = arith.constant 0 : index
    %c0_145 = arith.constant 0 : index
    %281 = vector.load %arg9[%c1_142, %c0_143, %c0_144, %c0_145] : memref<2x2x32x32xf32, #tpu.memory_space<vmem>>, vector<1x1x32x32xf32>
    %282 = vector.shape_cast %281 : vector<1x1x32x32xf32> to vector<32x32xf32>
    %c1_146 = arith.constant 1 : index
    %c0_147 = arith.constant 0 : index
    %c0_148 = arith.constant 0 : index
    %c0_149 = arith.constant 0 : index
    %283 = vector.load %arg10[%c1_146, %c0_147, %c0_148, %c0_149] : memref<2x2x1x32xf32, #tpu.memory_space<vmem>>, vector<1x1x1x32xf32>
    %284 = vector.shape_cast %283 : vector<1x1x1x32xf32> to vector<1x32xf32>
    %285 = vector.extract_strided_slice %278 {offsets = [0, 0], sizes = [8, 8], strides = [1, 1]} : vector<8x32xf32> to vector<8x8xf32>
    %286 = vector.extract_strided_slice %279 {offsets = [0, 0], sizes = [8, 8], strides = [1, 1]} : vector<8x32xf32> to vector<8x8xf32>
    %cst_150 = arith.constant dense<0.000000e+00> : vector<8x8xf32>
    %287 = tpu.matmul %285, %286, %cst_150 {dimension_numbers = #tpu.dot_dimension_numbers<[1], [1], [0], [0], [0, 0, 1, 0], [], []>} : vector<8x8xf32>, vector<8x8xf32>, vector<8x8xf32> -> vector<8x8xf32>
    %cst_151 = arith.constant 0.353553385 : f32
    %288 = vector.broadcast %cst_151 : f32 to vector<8x8xf32>
    %289 = arith.mulf %287, %288 : vector<8x8xf32>
    %cst_152 = arith.constant dense<0xFF800000> : vector<8xf32>
    %290 = vector.multi_reduction <maximumf>, %289, %cst_152 [1] : vector<8x8xf32> to vector<8xf32>
    %291 = vector.shape_cast %290 : vector<8xf32> to vector<8x1xf32>
    %292 = vector.broadcast %291 : vector<8x1xf32> to vector<8x8xf32>
    %293 = arith.subf %289, %292 : vector<8x8xf32>
    %294 = math.exp %293 : vector<8x8xf32>
    %cst_153 = arith.constant dense<0.000000e+00> : vector<8xf32>
    %295 = vector.multi_reduction <add>, %294, %cst_153 [1] : vector<8x8xf32> to vector<8xf32>
    %296 = vector.shape_cast %295 : vector<8xf32> to vector<8x1xf32>
    %297 = vector.broadcast %296 : vector<8x1xf32> to vector<8x8xf32>
    %298 = arith.divf %294, %297 : vector<8x8xf32>
    %299 = vector.extract_strided_slice %280 {offsets = [0, 0], sizes = [8, 8], strides = [1, 1]} : vector<8x32xf32> to vector<8x8xf32>
    %cst_154 = arith.constant dense<0.000000e+00> : vector<8x8xf32>
    %300 = tpu.matmul %298, %299, %cst_154 {dimension_numbers = #tpu.dot_dimension_numbers<[1], [0], [0], [1], [0, 0, 1, 1], [], []>} : vector<8x8xf32>, vector<8x8xf32>, vector<8x8xf32> -> vector<8x8xf32>
    %301 = vector.extract_strided_slice %278 {offsets = [0, 8], sizes = [8, 8], strides = [1, 1]} : vector<8x32xf32> to vector<8x8xf32>
    %302 = vector.extract_strided_slice %279 {offsets = [0, 8], sizes = [8, 8], strides = [1, 1]} : vector<8x32xf32> to vector<8x8xf32>
    %cst_155 = arith.constant dense<0.000000e+00> : vector<8x8xf32>
    %303 = tpu.matmul %301, %302, %cst_155 {dimension_numbers = #tpu.dot_dimension_numbers<[1], [1], [0], [0], [0, 0, 1, 0], [], []>} : vector<8x8xf32>, vector<8x8xf32>, vector<8x8xf32> -> vector<8x8xf32>
    %cst_156 = arith.constant 0.353553385 : f32
    %304 = vector.broadcast %cst_156 : f32 to vector<8x8xf32>
    %305 = arith.mulf %303, %304 : vector<8x8xf32>
    %cst_157 = arith.constant dense<0xFF800000> : vector<8xf32>
    %306 = vector.multi_reduction <maximumf>, %305, %cst_157 [1] : vector<8x8xf32> to vector<8xf32>
    %307 = vector.shape_cast %306 : vector<8xf32> to vector<8x1xf32>
    %308 = vector.broadcast %307 : vector<8x1xf32> to vector<8x8xf32>
    %309 = arith.subf %305, %308 : vector<8x8xf32>
    %310 = math.exp %309 : vector<8x8xf32>
    %cst_158 = arith.constant dense<0.000000e+00> : vector<8xf32>
    %311 = vector.multi_reduction <add>, %310, %cst_158 [1] : vector<8x8xf32> to vector<8xf32>
    %312 = vector.shape_cast %311 : vector<8xf32> to vector<8x1xf32>
    %313 = vector.broadcast %312 : vector<8x1xf32> to vector<8x8xf32>
    %314 = arith.divf %310, %313 : vector<8x8xf32>
    %315 = vector.extract_strided_slice %280 {offsets = [0, 8], sizes = [8, 8], strides = [1, 1]} : vector<8x32xf32> to vector<8x8xf32>
    %cst_159 = arith.constant dense<0.000000e+00> : vector<8x8xf32>
    %316 = tpu.matmul %314, %315, %cst_159 {dimension_numbers = #tpu.dot_dimension_numbers<[1], [0], [0], [1], [0, 0, 1, 1], [], []>} : vector<8x8xf32>, vector<8x8xf32>, vector<8x8xf32> -> vector<8x8xf32>
    %317 = vector.extract_strided_slice %278 {offsets = [0, 16], sizes = [8, 8], strides = [1, 1]} : vector<8x32xf32> to vector<8x8xf32>
    %318 = vector.extract_strided_slice %279 {offsets = [0, 16], sizes = [8, 8], strides = [1, 1]} : vector<8x32xf32> to vector<8x8xf32>
    %cst_160 = arith.constant dense<0.000000e+00> : vector<8x8xf32>
    %319 = tpu.matmul %317, %318, %cst_160 {dimension_numbers = #tpu.dot_dimension_numbers<[1], [1], [0], [0], [0, 0, 1, 0], [], []>} : vector<8x8xf32>, vector<8x8xf32>, vector<8x8xf32> -> vector<8x8xf32>
    %cst_161 = arith.constant 0.353553385 : f32
    %320 = vector.broadcast %cst_161 : f32 to vector<8x8xf32>
    %321 = arith.mulf %319, %320 : vector<8x8xf32>
    %cst_162 = arith.constant dense<0xFF800000> : vector<8xf32>
    %322 = vector.multi_reduction <maximumf>, %321, %cst_162 [1] : vector<8x8xf32> to vector<8xf32>
    %323 = vector.shape_cast %322 : vector<8xf32> to vector<8x1xf32>
    %324 = vector.broadcast %323 : vector<8x1xf32> to vector<8x8xf32>
    %325 = arith.subf %321, %324 : vector<8x8xf32>
    %326 = math.exp %325 : vector<8x8xf32>
    %cst_163 = arith.constant dense<0.000000e+00> : vector<8xf32>
    %327 = vector.multi_reduction <add>, %326, %cst_163 [1] : vector<8x8xf32> to vector<8xf32>
    %328 = vector.shape_cast %327 : vector<8xf32> to vector<8x1xf32>
    %329 = vector.broadcast %328 : vector<8x1xf32> to vector<8x8xf32>
    %330 = arith.divf %326, %329 : vector<8x8xf32>
    %331 = vector.extract_strided_slice %280 {offsets = [0, 16], sizes = [8, 8], strides = [1, 1]} : vector<8x32xf32> to vector<8x8xf32>
    %cst_164 = arith.constant dense<0.000000e+00> : vector<8x8xf32>
    %332 = tpu.matmul %330, %331, %cst_164 {dimension_numbers = #tpu.dot_dimension_numbers<[1], [0], [0], [1], [0, 0, 1, 1], [], []>} : vector<8x8xf32>, vector<8x8xf32>, vector<8x8xf32> -> vector<8x8xf32>
    %333 = vector.extract_strided_slice %278 {offsets = [0, 24], sizes = [8, 8], strides = [1, 1]} : vector<8x32xf32> to vector<8x8xf32>
    %334 = vector.extract_strided_slice %279 {offsets = [0, 24], sizes = [8, 8], strides = [1, 1]} : vector<8x32xf32> to vector<8x8xf32>
    %cst_165 = arith.constant dense<0.000000e+00> : vector<8x8xf32>
    %335 = tpu.matmul %333, %334, %cst_165 {dimension_numbers = #tpu.dot_dimension_numbers<[1], [1], [0], [0], [0, 0, 1, 0], [], []>} : vector<8x8xf32>, vector<8x8xf32>, vector<8x8xf32> -> vector<8x8xf32>
    %cst_166 = arith.constant 0.353553385 : f32
    %336 = vector.broadcast %cst_166 : f32 to vector<8x8xf32>
    %337 = arith.mulf %335, %336 : vector<8x8xf32>
    %cst_167 = arith.constant dense<0xFF800000> : vector<8xf32>
    %338 = vector.multi_reduction <maximumf>, %337, %cst_167 [1] : vector<8x8xf32> to vector<8xf32>
    %339 = vector.shape_cast %338 : vector<8xf32> to vector<8x1xf32>
    %340 = vector.broadcast %339 : vector<8x1xf32> to vector<8x8xf32>
    %341 = arith.subf %337, %340 : vector<8x8xf32>
    %342 = math.exp %341 : vector<8x8xf32>
    %cst_168 = arith.constant dense<0.000000e+00> : vector<8xf32>
    %343 = vector.multi_reduction <add>, %342, %cst_168 [1] : vector<8x8xf32> to vector<8xf32>
    %344 = vector.shape_cast %343 : vector<8xf32> to vector<8x1xf32>
    %345 = vector.broadcast %344 : vector<8x1xf32> to vector<8x8xf32>
    %346 = arith.divf %342, %345 : vector<8x8xf32>
    %347 = vector.extract_strided_slice %280 {offsets = [0, 24], sizes = [8, 8], strides = [1, 1]} : vector<8x32xf32> to vector<8x8xf32>
    %cst_169 = arith.constant dense<0.000000e+00> : vector<8x8xf32>
    %348 = tpu.matmul %346, %347, %cst_169 {dimension_numbers = #tpu.dot_dimension_numbers<[1], [0], [0], [1], [0, 0, 1, 1], [], []>} : vector<8x8xf32>, vector<8x8xf32>, vector<8x8xf32> -> vector<8x8xf32>
    %349 = tpu.concatenate %300, %316, %332, %348 in 1 : vector<8x8xf32>, vector<8x8xf32>, vector<8x8xf32>, vector<8x8xf32> -> vector<8x32xf32>
    %cst_170 = arith.constant dense<0.000000e+00> : vector<8x32xf32>
    %350 = tpu.matmul %349, %282, %cst_170 {dimension_numbers = #tpu.dot_dimension_numbers<[1], [0], [0], [1], [0, 0, 1, 1], [], []>} : vector<8x32xf32>, vector<32x32xf32>, vector<8x32xf32> -> vector<8x32xf32>
    %351 = vector.broadcast %284 : vector<1x32xf32> to vector<8x32xf32>
    %352 = arith.addf %350, %351 : vector<8x32xf32>
    %353 = arith.addf %270, %352 : vector<8x32xf32>
    %c1_171 = arith.constant 1 : index
    %c0_172 = arith.constant 0 : index
    %c0_173 = arith.constant 0 : index
    %c0_174 = arith.constant 0 : index
    %354 = vector.load %arg15[%c1_171, %c0_172, %c0_173, %c0_174] : memref<2x3x1x32xf32, #tpu.memory_space<vmem>>, vector<1x1x1x32xf32>
    %355 = vector.shape_cast %354 : vector<1x1x1x32xf32> to vector<1x32xf32>
    %c1_175 = arith.constant 1 : index
    %c0_176 = arith.constant 0 : index
    %c0_177 = arith.constant 0 : index
    %c0_178 = arith.constant 0 : index
    %356 = vector.load %arg16[%c1_175, %c0_176, %c0_177, %c0_178] : memref<2x3x1x32xf32, #tpu.memory_space<vmem>>, vector<1x1x1x32xf32>
    %357 = vector.shape_cast %356 : vector<1x1x1x32xf32> to vector<1x32xf32>
    %cst_179 = arith.constant dense<0.000000e+00> : vector<8xf32>
    %358 = vector.multi_reduction <add>, %353, %cst_179 [1] : vector<8x32xf32> to vector<8xf32>
    %359 = vector.shape_cast %358 : vector<8xf32> to vector<8x1xf32>
    %cst_180 = arith.constant 3.200000e+01 : f32
    %360 = vector.broadcast %cst_180 : f32 to vector<8x1xf32>
    %361 = arith.divf %359, %360 : vector<8x1xf32>
    %362 = arith.mulf %353, %353 : vector<8x32xf32>
    %cst_181 = arith.constant dense<0.000000e+00> : vector<8xf32>
    %363 = vector.multi_reduction <add>, %362, %cst_181 [1] : vector<8x32xf32> to vector<8xf32>
    %364 = vector.shape_cast %363 : vector<8xf32> to vector<8x1xf32>
    %cst_182 = arith.constant 3.200000e+01 : f32
    %365 = vector.broadcast %cst_182 : f32 to vector<8x1xf32>
    %366 = arith.divf %364, %365 : vector<8x1xf32>
    %367 = arith.mulf %361, %361 : vector<8x1xf32>
    %368 = arith.subf %366, %367 : vector<8x1xf32>
    %369 = vector.broadcast %361 : vector<8x1xf32> to vector<8x32xf32>
    %370 = arith.subf %353, %369 : vector<8x32xf32>
    %cst_183 = arith.constant 9.99999974E-6 : f32
    %371 = vector.broadcast %cst_183 : f32 to vector<8x1xf32>
    %372 = arith.addf %368, %371 : vector<8x1xf32>
    %373 = math.rsqrt %372 : vector<8x1xf32>
    %374 = vector.broadcast %373 : vector<8x1xf32> to vector<8x32xf32>
    %375 = arith.mulf %370, %374 : vector<8x32xf32>
    %376 = vector.broadcast %355 : vector<1x32xf32> to vector<8x32xf32>
    %377 = arith.mulf %375, %376 : vector<8x32xf32>
    %378 = vector.broadcast %357 : vector<1x32xf32> to vector<8x32xf32>
    %379 = arith.addf %377, %378 : vector<8x32xf32>
    %c1_184 = arith.constant 1 : index
    %c0_185 = arith.constant 0 : index
    %c0_186 = arith.constant 0 : index
    %380 = vector.load %arg5[%c1_184, %c0_185, %c0_186] : memref<2x32x32xf32, #tpu.memory_space<vmem>>, vector<1x32x32xf32>
    %381 = vector.shape_cast %380 : vector<1x32x32xf32> to vector<32x32xf32>
    %cst_187 = arith.constant dense<0.000000e+00> : vector<8x32xf32>
    %382 = tpu.matmul %379, %381, %cst_187 {dimension_numbers = #tpu.dot_dimension_numbers<[1], [0], [0], [1], [0, 0, 1, 1], [], []>} : vector<8x32xf32>, vector<32x32xf32>, vector<8x32xf32> -> vector<8x32xf32>
    %c1_188 = arith.constant 1 : index
    %c0_189 = arith.constant 0 : index
    %c0_190 = arith.constant 0 : index
    %383 = vector.load %arg6[%c1_188, %c0_189, %c0_190] : memref<2x1x32xf32, #tpu.memory_space<vmem>>, vector<1x1x32xf32>
    %384 = vector.shape_cast %383 : vector<1x1x32xf32> to vector<1x32xf32>
    %385 = vector.broadcast %384 : vector<1x32xf32> to vector<8x32xf32>
    %386 = arith.addf %382, %385 : vector<8x32xf32>
    %c1_191 = arith.constant 1 : index
    %c0_192 = arith.constant 0 : index
    %c0_193 = arith.constant 0 : index
    %387 = vector.load %arg7[%c1_191, %c0_192, %c0_193] : memref<2x32x64xf32, #tpu.memory_space<vmem>>, vector<1x32x64xf32>
    %388 = vector.shape_cast %387 : vector<1x32x64xf32> to vector<32x64xf32>
    %cst_194 = arith.constant dense<0.000000e+00> : vector<8x64xf32>
    %389 = tpu.matmul %3, %388, %cst_194 {dimension_numbers = #tpu.dot_dimension_numbers<[1], [0], [0], [1], [0, 0, 1, 1], [], []>} : vector<8x32xf32>, vector<32x64xf32>, vector<8x64xf32> -> vector<8x64xf32>
    %c1_195 = arith.constant 1 : index
    %c0_196 = arith.constant 0 : index
    %c0_197 = arith.constant 0 : index
    %390 = vector.load %arg8[%c1_195, %c0_196, %c0_197] : memref<2x1x64xf32, #tpu.memory_space<vmem>>, vector<1x1x64xf32>
    %391 = vector.shape_cast %390 : vector<1x1x64xf32> to vector<1x64xf32>
    %392 = vector.broadcast %391 : vector<1x64xf32> to vector<8x64xf32>
    %393 = arith.addf %389, %392 : vector<8x64xf32>
    %394 = vector.extract_strided_slice %393 {offsets = [0, 0], sizes = [8, 32], strides = [1, 1]} : vector<8x64xf32> to vector<8x32xf32>
    %395 = vector.extract_strided_slice %393 {offsets = [0, 32], sizes = [8, 32], strides = [1, 1]} : vector<8x64xf32> to vector<8x32xf32>
    %c1_198 = arith.constant 1 : index
    %c1_199 = arith.constant 1 : index
    %c0_200 = arith.constant 0 : index
    %c0_201 = arith.constant 0 : index
    %396 = vector.load %arg9[%c1_198, %c1_199, %c0_200, %c0_201] : memref<2x2x32x32xf32, #tpu.memory_space<vmem>>, vector<1x1x32x32xf32>
    %397 = vector.shape_cast %396 : vector<1x1x32x32xf32> to vector<32x32xf32>
    %c1_202 = arith.constant 1 : index
    %c1_203 = arith.constant 1 : index
    %c0_204 = arith.constant 0 : index
    %c0_205 = arith.constant 0 : index
    %398 = vector.load %arg10[%c1_202, %c1_203, %c0_204, %c0_205] : memref<2x2x1x32xf32, #tpu.memory_space<vmem>>, vector<1x1x1x32xf32>
    %399 = vector.shape_cast %398 : vector<1x1x1x32xf32> to vector<1x32xf32>
    %400 = vector.extract_strided_slice %386 {offsets = [0, 0], sizes = [8, 8], strides = [1, 1]} : vector<8x32xf32> to vector<8x8xf32>
    %401 = vector.extract_strided_slice %394 {offsets = [0, 0], sizes = [8, 8], strides = [1, 1]} : vector<8x32xf32> to vector<8x8xf32>
    %cst_206 = arith.constant dense<0.000000e+00> : vector<8x8xf32>
    %402 = tpu.matmul %400, %401, %cst_206 {dimension_numbers = #tpu.dot_dimension_numbers<[1], [1], [0], [0], [0, 0, 1, 0], [], []>} : vector<8x8xf32>, vector<8x8xf32>, vector<8x8xf32> -> vector<8x8xf32>
    %cst_207 = arith.constant 0.353553385 : f32
    %403 = vector.broadcast %cst_207 : f32 to vector<8x8xf32>
    %404 = arith.mulf %402, %403 : vector<8x8xf32>
    %cst_208 = arith.constant dense<0xFF800000> : vector<8xf32>
    %405 = vector.multi_reduction <maximumf>, %404, %cst_208 [1] : vector<8x8xf32> to vector<8xf32>
    %406 = vector.shape_cast %405 : vector<8xf32> to vector<8x1xf32>
    %407 = vector.broadcast %406 : vector<8x1xf32> to vector<8x8xf32>
    %408 = arith.subf %404, %407 : vector<8x8xf32>
    %409 = math.exp %408 : vector<8x8xf32>
    %cst_209 = arith.constant dense<0.000000e+00> : vector<8xf32>
    %410 = vector.multi_reduction <add>, %409, %cst_209 [1] : vector<8x8xf32> to vector<8xf32>
    %411 = vector.shape_cast %410 : vector<8xf32> to vector<8x1xf32>
    %412 = vector.broadcast %411 : vector<8x1xf32> to vector<8x8xf32>
    %413 = arith.divf %409, %412 : vector<8x8xf32>
    %414 = vector.extract_strided_slice %395 {offsets = [0, 0], sizes = [8, 8], strides = [1, 1]} : vector<8x32xf32> to vector<8x8xf32>
    %cst_210 = arith.constant dense<0.000000e+00> : vector<8x8xf32>
    %415 = tpu.matmul %413, %414, %cst_210 {dimension_numbers = #tpu.dot_dimension_numbers<[1], [0], [0], [1], [0, 0, 1, 1], [], []>} : vector<8x8xf32>, vector<8x8xf32>, vector<8x8xf32> -> vector<8x8xf32>
    %416 = vector.extract_strided_slice %386 {offsets = [0, 8], sizes = [8, 8], strides = [1, 1]} : vector<8x32xf32> to vector<8x8xf32>
    %417 = vector.extract_strided_slice %394 {offsets = [0, 8], sizes = [8, 8], strides = [1, 1]} : vector<8x32xf32> to vector<8x8xf32>
    %cst_211 = arith.constant dense<0.000000e+00> : vector<8x8xf32>
    %418 = tpu.matmul %416, %417, %cst_211 {dimension_numbers = #tpu.dot_dimension_numbers<[1], [1], [0], [0], [0, 0, 1, 0], [], []>} : vector<8x8xf32>, vector<8x8xf32>, vector<8x8xf32> -> vector<8x8xf32>
    %cst_212 = arith.constant 0.353553385 : f32
    %419 = vector.broadcast %cst_212 : f32 to vector<8x8xf32>
    %420 = arith.mulf %418, %419 : vector<8x8xf32>
    %cst_213 = arith.constant dense<0xFF800000> : vector<8xf32>
    %421 = vector.multi_reduction <maximumf>, %420, %cst_213 [1] : vector<8x8xf32> to vector<8xf32>
    %422 = vector.shape_cast %421 : vector<8xf32> to vector<8x1xf32>
    %423 = vector.broadcast %422 : vector<8x1xf32> to vector<8x8xf32>
    %424 = arith.subf %420, %423 : vector<8x8xf32>
    %425 = math.exp %424 : vector<8x8xf32>
    %cst_214 = arith.constant dense<0.000000e+00> : vector<8xf32>
    %426 = vector.multi_reduction <add>, %425, %cst_214 [1] : vector<8x8xf32> to vector<8xf32>
    %427 = vector.shape_cast %426 : vector<8xf32> to vector<8x1xf32>
    %428 = vector.broadcast %427 : vector<8x1xf32> to vector<8x8xf32>
    %429 = arith.divf %425, %428 : vector<8x8xf32>
    %430 = vector.extract_strided_slice %395 {offsets = [0, 8], sizes = [8, 8], strides = [1, 1]} : vector<8x32xf32> to vector<8x8xf32>
    %cst_215 = arith.constant dense<0.000000e+00> : vector<8x8xf32>
    %431 = tpu.matmul %429, %430, %cst_215 {dimension_numbers = #tpu.dot_dimension_numbers<[1], [0], [0], [1], [0, 0, 1, 1], [], []>} : vector<8x8xf32>, vector<8x8xf32>, vector<8x8xf32> -> vector<8x8xf32>
    %432 = vector.extract_strided_slice %386 {offsets = [0, 16], sizes = [8, 8], strides = [1, 1]} : vector<8x32xf32> to vector<8x8xf32>
    %433 = vector.extract_strided_slice %394 {offsets = [0, 16], sizes = [8, 8], strides = [1, 1]} : vector<8x32xf32> to vector<8x8xf32>
    %cst_216 = arith.constant dense<0.000000e+00> : vector<8x8xf32>
    %434 = tpu.matmul %432, %433, %cst_216 {dimension_numbers = #tpu.dot_dimension_numbers<[1], [1], [0], [0], [0, 0, 1, 0], [], []>} : vector<8x8xf32>, vector<8x8xf32>, vector<8x8xf32> -> vector<8x8xf32>
    %cst_217 = arith.constant 0.353553385 : f32
    %435 = vector.broadcast %cst_217 : f32 to vector<8x8xf32>
    %436 = arith.mulf %434, %435 : vector<8x8xf32>
    %cst_218 = arith.constant dense<0xFF800000> : vector<8xf32>
    %437 = vector.multi_reduction <maximumf>, %436, %cst_218 [1] : vector<8x8xf32> to vector<8xf32>
    %438 = vector.shape_cast %437 : vector<8xf32> to vector<8x1xf32>
    %439 = vector.broadcast %438 : vector<8x1xf32> to vector<8x8xf32>
    %440 = arith.subf %436, %439 : vector<8x8xf32>
    %441 = math.exp %440 : vector<8x8xf32>
    %cst_219 = arith.constant dense<0.000000e+00> : vector<8xf32>
    %442 = vector.multi_reduction <add>, %441, %cst_219 [1] : vector<8x8xf32> to vector<8xf32>
    %443 = vector.shape_cast %442 : vector<8xf32> to vector<8x1xf32>
    %444 = vector.broadcast %443 : vector<8x1xf32> to vector<8x8xf32>
    %445 = arith.divf %441, %444 : vector<8x8xf32>
    %446 = vector.extract_strided_slice %395 {offsets = [0, 16], sizes = [8, 8], strides = [1, 1]} : vector<8x32xf32> to vector<8x8xf32>
    %cst_220 = arith.constant dense<0.000000e+00> : vector<8x8xf32>
    %447 = tpu.matmul %445, %446, %cst_220 {dimension_numbers = #tpu.dot_dimension_numbers<[1], [0], [0], [1], [0, 0, 1, 1], [], []>} : vector<8x8xf32>, vector<8x8xf32>, vector<8x8xf32> -> vector<8x8xf32>
    %448 = vector.extract_strided_slice %386 {offsets = [0, 24], sizes = [8, 8], strides = [1, 1]} : vector<8x32xf32> to vector<8x8xf32>
    %449 = vector.extract_strided_slice %394 {offsets = [0, 24], sizes = [8, 8], strides = [1, 1]} : vector<8x32xf32> to vector<8x8xf32>
    %cst_221 = arith.constant dense<0.000000e+00> : vector<8x8xf32>
    %450 = tpu.matmul %448, %449, %cst_221 {dimension_numbers = #tpu.dot_dimension_numbers<[1], [1], [0], [0], [0, 0, 1, 0], [], []>} : vector<8x8xf32>, vector<8x8xf32>, vector<8x8xf32> -> vector<8x8xf32>
    %cst_222 = arith.constant 0.353553385 : f32
    %451 = vector.broadcast %cst_222 : f32 to vector<8x8xf32>
    %452 = arith.mulf %450, %451 : vector<8x8xf32>
    %cst_223 = arith.constant dense<0xFF800000> : vector<8xf32>
    %453 = vector.multi_reduction <maximumf>, %452, %cst_223 [1] : vector<8x8xf32> to vector<8xf32>
    %454 = vector.shape_cast %453 : vector<8xf32> to vector<8x1xf32>
    %455 = vector.broadcast %454 : vector<8x1xf32> to vector<8x8xf32>
    %456 = arith.subf %452, %455 : vector<8x8xf32>
    %457 = math.exp %456 : vector<8x8xf32>
    %cst_224 = arith.constant dense<0.000000e+00> : vector<8xf32>
    %458 = vector.multi_reduction <add>, %457, %cst_224 [1] : vector<8x8xf32> to vector<8xf32>
    %459 = vector.shape_cast %458 : vector<8xf32> to vector<8x1xf32>
    %460 = vector.broadcast %459 : vector<8x1xf32> to vector<8x8xf32>
    %461 = arith.divf %457, %460 : vector<8x8xf32>
    %462 = vector.extract_strided_slice %395 {offsets = [0, 24], sizes = [8, 8], strides = [1, 1]} : vector<8x32xf32> to vector<8x8xf32>
    %cst_225 = arith.constant dense<0.000000e+00> : vector<8x8xf32>
    %463 = tpu.matmul %461, %462, %cst_225 {dimension_numbers = #tpu.dot_dimension_numbers<[1], [0], [0], [1], [0, 0, 1, 1], [], []>} : vector<8x8xf32>, vector<8x8xf32>, vector<8x8xf32> -> vector<8x8xf32>
    %464 = tpu.concatenate %415, %431, %447, %463 in 1 : vector<8x8xf32>, vector<8x8xf32>, vector<8x8xf32>, vector<8x8xf32> -> vector<8x32xf32>
    %cst_226 = arith.constant dense<0.000000e+00> : vector<8x32xf32>
    %465 = tpu.matmul %464, %397, %cst_226 {dimension_numbers = #tpu.dot_dimension_numbers<[1], [0], [0], [1], [0, 0, 1, 1], [], []>} : vector<8x32xf32>, vector<32x32xf32>, vector<8x32xf32> -> vector<8x32xf32>
    %466 = vector.broadcast %399 : vector<1x32xf32> to vector<8x32xf32>
    %467 = arith.addf %465, %466 : vector<8x32xf32>
    %468 = arith.addf %379, %467 : vector<8x32xf32>
    %c1_227 = arith.constant 1 : index
    %c1_228 = arith.constant 1 : index
    %c0_229 = arith.constant 0 : index
    %c0_230 = arith.constant 0 : index
    %469 = vector.load %arg15[%c1_227, %c1_228, %c0_229, %c0_230] : memref<2x3x1x32xf32, #tpu.memory_space<vmem>>, vector<1x1x1x32xf32>
    %470 = vector.shape_cast %469 : vector<1x1x1x32xf32> to vector<1x32xf32>
    %c1_231 = arith.constant 1 : index
    %c1_232 = arith.constant 1 : index
    %c0_233 = arith.constant 0 : index
    %c0_234 = arith.constant 0 : index
    %471 = vector.load %arg16[%c1_231, %c1_232, %c0_233, %c0_234] : memref<2x3x1x32xf32, #tpu.memory_space<vmem>>, vector<1x1x1x32xf32>
    %472 = vector.shape_cast %471 : vector<1x1x1x32xf32> to vector<1x32xf32>
    %cst_235 = arith.constant dense<0.000000e+00> : vector<8xf32>
    %473 = vector.multi_reduction <add>, %468, %cst_235 [1] : vector<8x32xf32> to vector<8xf32>
    %474 = vector.shape_cast %473 : vector<8xf32> to vector<8x1xf32>
    %cst_236 = arith.constant 3.200000e+01 : f32
    %475 = vector.broadcast %cst_236 : f32 to vector<8x1xf32>
    %476 = arith.divf %474, %475 : vector<8x1xf32>
    %477 = arith.mulf %468, %468 : vector<8x32xf32>
    %cst_237 = arith.constant dense<0.000000e+00> : vector<8xf32>
    %478 = vector.multi_reduction <add>, %477, %cst_237 [1] : vector<8x32xf32> to vector<8xf32>
    %479 = vector.shape_cast %478 : vector<8xf32> to vector<8x1xf32>
    %cst_238 = arith.constant 3.200000e+01 : f32
    %480 = vector.broadcast %cst_238 : f32 to vector<8x1xf32>
    %481 = arith.divf %479, %480 : vector<8x1xf32>
    %482 = arith.mulf %476, %476 : vector<8x1xf32>
    %483 = arith.subf %481, %482 : vector<8x1xf32>
    %484 = vector.broadcast %476 : vector<8x1xf32> to vector<8x32xf32>
    %485 = arith.subf %468, %484 : vector<8x32xf32>
    %cst_239 = arith.constant 9.99999974E-6 : f32
    %486 = vector.broadcast %cst_239 : f32 to vector<8x1xf32>
    %487 = arith.addf %483, %486 : vector<8x1xf32>
    %488 = math.rsqrt %487 : vector<8x1xf32>
    %489 = vector.broadcast %488 : vector<8x1xf32> to vector<8x32xf32>
    %490 = arith.mulf %485, %489 : vector<8x32xf32>
    %491 = vector.broadcast %470 : vector<1x32xf32> to vector<8x32xf32>
    %492 = arith.mulf %490, %491 : vector<8x32xf32>
    %493 = vector.broadcast %472 : vector<1x32xf32> to vector<8x32xf32>
    %494 = arith.addf %492, %493 : vector<8x32xf32>
    %c1_240 = arith.constant 1 : index
    %c0_241 = arith.constant 0 : index
    %c0_242 = arith.constant 0 : index
    %495 = vector.load %arg11[%c1_240, %c0_241, %c0_242] : memref<2x32x64xf32, #tpu.memory_space<vmem>>, vector<1x32x64xf32>
    %496 = vector.shape_cast %495 : vector<1x32x64xf32> to vector<32x64xf32>
    %cst_243 = arith.constant dense<0.000000e+00> : vector<8x64xf32>
    %497 = tpu.matmul %494, %496, %cst_243 {dimension_numbers = #tpu.dot_dimension_numbers<[1], [0], [0], [1], [0, 0, 1, 1], [], []>} : vector<8x32xf32>, vector<32x64xf32>, vector<8x64xf32> -> vector<8x64xf32>
    %c1_244 = arith.constant 1 : index
    %c0_245 = arith.constant 0 : index
    %c0_246 = arith.constant 0 : index
    %498 = vector.load %arg12[%c1_244, %c0_245, %c0_246] : memref<2x1x64xf32, #tpu.memory_space<vmem>>, vector<1x1x64xf32>
    %499 = vector.shape_cast %498 : vector<1x1x64xf32> to vector<1x64xf32>
    %500 = vector.broadcast %499 : vector<1x64xf32> to vector<8x64xf32>
    %501 = arith.addf %497, %500 : vector<8x64xf32>
    %cst_247 = arith.constant 0.000000e+00 : f32
    %502 = vector.broadcast %cst_247 : f32 to vector<8x64xf32>
    %503 = arith.maximumf %501, %502 : vector<8x64xf32>
    %c1_248 = arith.constant 1 : index
    %c0_249 = arith.constant 0 : index
    %c0_250 = arith.constant 0 : index
    %504 = vector.load %arg13[%c1_248, %c0_249, %c0_250] : memref<2x64x32xf32, #tpu.memory_space<vmem>>, vector<1x64x32xf32>
    %505 = vector.shape_cast %504 : vector<1x64x32xf32> to vector<64x32xf32>
    %cst_251 = arith.constant dense<0.000000e+00> : vector<8x32xf32>
    %506 = tpu.matmul %503, %505, %cst_251 {dimension_numbers = #tpu.dot_dimension_numbers<[1], [0], [0], [1], [0, 0, 1, 1], [], []>} : vector<8x64xf32>, vector<64x32xf32>, vector<8x32xf32> -> vector<8x32xf32>
    %c1_252 = arith.constant 1 : index
    %c0_253 = arith.constant 0 : index
    %c0_254 = arith.constant 0 : index
    %507 = vector.load %arg14[%c1_252, %c0_253, %c0_254] : memref<2x1x32xf32, #tpu.memory_space<vmem>>, vector<1x1x32xf32>
    %508 = vector.shape_cast %507 : vector<1x1x32xf32> to vector<1x32xf32>
    %509 = vector.broadcast %508 : vector<1x32xf32> to vector<8x32xf32>
    %510 = arith.addf %506, %509 : vector<8x32xf32>
    %511 = arith.addf %494, %510 : vector<8x32xf32>
    %c1_255 = arith.constant 1 : index
    %c2_256 = arith.constant 2 : index
    %c0_257 = arith.constant 0 : index
    %c0_258 = arith.constant 0 : index
    %512 = vector.load %arg15[%c1_255, %c2_256, %c0_257, %c0_258] : memref<2x3x1x32xf32, #tpu.memory_space<vmem>>, vector<1x1x1x32xf32>
    %513 = vector.shape_cast %512 : vector<1x1x1x32xf32> to vector<1x32xf32>
    %c1_259 = arith.constant 1 : index
    %c2_260 = arith.constant 2 : index
    %c0_261 = arith.constant 0 : index
    %c0_262 = arith.constant 0 : index
    %514 = vector.load %arg16[%c1_259, %c2_260, %c0_261, %c0_262] : memref<2x3x1x32xf32, #tpu.memory_space<vmem>>, vector<1x1x1x32xf32>
    %515 = vector.shape_cast %514 : vector<1x1x1x32xf32> to vector<1x32xf32>
    %cst_263 = arith.constant dense<0.000000e+00> : vector<8xf32>
    %516 = vector.multi_reduction <add>, %511, %cst_263 [1] : vector<8x32xf32> to vector<8xf32>
    %517 = vector.shape_cast %516 : vector<8xf32> to vector<8x1xf32>
    %cst_264 = arith.constant 3.200000e+01 : f32
    %518 = vector.broadcast %cst_264 : f32 to vector<8x1xf32>
    %519 = arith.divf %517, %518 : vector<8x1xf32>
    %520 = arith.mulf %511, %511 : vector<8x32xf32>
    %cst_265 = arith.constant dense<0.000000e+00> : vector<8xf32>
    %521 = vector.multi_reduction <add>, %520, %cst_265 [1] : vector<8x32xf32> to vector<8xf32>
    %522 = vector.shape_cast %521 : vector<8xf32> to vector<8x1xf32>
    %cst_266 = arith.constant 3.200000e+01 : f32
    %523 = vector.broadcast %cst_266 : f32 to vector<8x1xf32>
    %524 = arith.divf %522, %523 : vector<8x1xf32>
    %525 = arith.mulf %519, %519 : vector<8x1xf32>
    %526 = arith.subf %524, %525 : vector<8x1xf32>
    %527 = vector.broadcast %519 : vector<8x1xf32> to vector<8x32xf32>
    %528 = arith.subf %511, %527 : vector<8x32xf32>
    %cst_267 = arith.constant 9.99999974E-6 : f32
    %529 = vector.broadcast %cst_267 : f32 to vector<8x1xf32>
    %530 = arith.addf %526, %529 : vector<8x1xf32>
    %531 = math.rsqrt %530 : vector<8x1xf32>
    %532 = vector.broadcast %531 : vector<8x1xf32> to vector<8x32xf32>
    %533 = arith.mulf %528, %532 : vector<8x32xf32>
    %534 = vector.broadcast %513 : vector<1x32xf32> to vector<8x32xf32>
    %535 = arith.mulf %533, %534 : vector<8x32xf32>
    %536 = vector.broadcast %515 : vector<1x32xf32> to vector<8x32xf32>
    %537 = arith.addf %535, %536 : vector<8x32xf32>
    %c0_268 = arith.constant 0 : index
    %c0_269 = arith.constant 0 : index
    %538 = vector.load %arg17[%c0_268, %c0_269] : memref<1x32xf32, #tpu.memory_space<vmem>>, vector<1x32xf32>
    %c0_270 = arith.constant 0 : index
    %c0_271 = arith.constant 0 : index
    %539 = vector.load %arg18[%c0_270, %c0_271] : memref<1x32xf32, #tpu.memory_space<vmem>>, vector<1x32xf32>
    %cst_272 = arith.constant dense<0.000000e+00> : vector<8xf32>
    %540 = vector.multi_reduction <add>, %537, %cst_272 [1] : vector<8x32xf32> to vector<8xf32>
    %541 = vector.shape_cast %540 : vector<8xf32> to vector<8x1xf32>
    %cst_273 = arith.constant 3.200000e+01 : f32
    %542 = vector.broadcast %cst_273 : f32 to vector<8x1xf32>
    %543 = arith.divf %541, %542 : vector<8x1xf32>
    %544 = arith.mulf %537, %537 : vector<8x32xf32>
    %cst_274 = arith.constant dense<0.000000e+00> : vector<8xf32>
    %545 = vector.multi_reduction <add>, %544, %cst_274 [1] : vector<8x32xf32> to vector<8xf32>
    %546 = vector.shape_cast %545 : vector<8xf32> to vector<8x1xf32>
    %cst_275 = arith.constant 3.200000e+01 : f32
    %547 = vector.broadcast %cst_275 : f32 to vector<8x1xf32>
    %548 = arith.divf %546, %547 : vector<8x1xf32>
    %549 = arith.mulf %543, %543 : vector<8x1xf32>
    %550 = arith.subf %548, %549 : vector<8x1xf32>
    %551 = vector.broadcast %543 : vector<8x1xf32> to vector<8x32xf32>
    %552 = arith.subf %537, %551 : vector<8x32xf32>
    %cst_276 = arith.constant 9.99999974E-6 : f32
    %553 = vector.broadcast %cst_276 : f32 to vector<8x1xf32>
    %554 = arith.addf %550, %553 : vector<8x1xf32>
    %555 = math.rsqrt %554 : vector<8x1xf32>
    %556 = vector.broadcast %555 : vector<8x1xf32> to vector<8x32xf32>
    %557 = arith.mulf %552, %556 : vector<8x32xf32>
    %558 = vector.broadcast %538 : vector<1x32xf32> to vector<8x32xf32>
    %559 = arith.mulf %557, %558 : vector<8x32xf32>
    %560 = vector.broadcast %539 : vector<1x32xf32> to vector<8x32xf32>
    %561 = arith.addf %559, %560 : vector<8x32xf32>
    %c0_277 = arith.constant 0 : index
    %c0_278 = arith.constant 0 : index
    %c0_279 = arith.constant 0 : index
    %562 = vector.load %arg19[%c0_277, %c0_278, %c0_279] : memref<1x8x32xf32, #tpu.memory_space<vmem>>, vector<1x8x32xf32>
    %563 = vector.shape_cast %562 : vector<1x8x32xf32> to vector<8x32xf32>
    %564 = vector.shape_cast %561 : vector<8x32xf32> to vector<1x8x32xf32>
    tpu.vector_store %arg19[%c0_277, %c0_278, %c0_279], %564 {strides = array<i32>} : memref<1x8x32xf32, #tpu.memory_space<vmem>>, vector<1x8x32xf32>,
    return
  }
  func.func @transform_0(%arg0: i32) -> (i32, i32, i32) {
    %c0_i32 = arith.constant 0 : i32
    %c0_i32_0 = arith.constant 0 : i32
    %c0_i32_1 = arith.constant 0 : i32
    return %arg0, %c0_i32, %c0_i32_0 : i32, i32, i32
  }
  func.func @transform_1(%arg0: i32) -> (i32, i32, i32) {
    %c0_i32 = arith.constant 0 : i32
    %c0_i32_0 = arith.constant 0 : i32
    %c0_i32_1 = arith.constant 0 : i32
    return %arg0, %c0_i32, %c0_i32_0 : i32, i32, i32
  }
  func.func @transform_2(%arg0: i32) -> (i32, i32, i32) {
    %c0_i32 = arith.constant 0 : i32
    %c0_i32_0 = arith.constant 0 : i32
    %c0_i32_1 = arith.constant 0 : i32
    %c0_i32_2 = arith.constant 0 : i32
    return %c0_i32, %c0_i32_0, %c0_i32_1 : i32, i32, i32
  }
  func.func @transform_3(%arg0: i32) -> (i32, i32, i32) {
    %c0_i32 = arith.constant 0 : i32
    %c0_i32_0 = arith.constant 0 : i32
    %c0_i32_1 = arith.constant 0 : i32
    %c0_i32_2 = arith.constant 0 : i32
    return %c0_i32, %c0_i32_0, %c0_i32_1 : i32, i32, i32
  }
  func.func @transform_4(%arg0: i32) -> (i32, i32, i32) {
    %c0_i32 = arith.constant 0 : i32
    %c0_i32_0 = arith.constant 0 : i32
    %c0_i32_1 = arith.constant 0 : i32
    %c0_i32_2 = arith.constant 0 : i32
    return %c0_i32, %c0_i32_0, %c0_i32_1 : i32, i32, i32
  }
  func.func @transform_5(%arg0: i32) -> (i32, i32, i32) {
    %c0_i32 = arith.constant 0 : i32
    %c0_i32_0 = arith.constant 0 : i32
    %c0_i32_1 = arith.constant 0 : i32
    %c0_i32_2 = arith.constant 0 : i32
    return %c0_i32, %c0_i32_0, %c0_i32_1 : i32, i32, i32
  }
  func.func @transform_6(%arg0: i32) -> (i32, i32, i32) {
    %c0_i32 = arith.constant 0 : i32
    %c0_i32_0 = arith.constant 0 : i32
    %c0_i32_1 = arith.constant 0 : i32
    %c0_i32_2 = arith.constant 0 : i32
    return %c0_i32, %c0_i32_0, %c0_i32_1 : i32, i32, i32
  }
  func.func @transform_7(%arg0: i32) -> (i32, i32, i32) {
    %c0_i32 = arith.constant 0 : i32
    %c0_i32_0 = arith.constant 0 : i32
    %c0_i32_1 = arith.constant 0 : i32
    %c0_i32_2 = arith.constant 0 : i32
    return %c0_i32, %c0_i32_0, %c0_i32_1 : i32, i32, i32
  }
  func.func @transform_8(%arg0: i32) -> (i32, i32, i32, i32) {
    %c0_i32 = arith.constant 0 : i32
    %c0_i32_0 = arith.constant 0 : i32
    %c0_i32_1 = arith.constant 0 : i32
    %c0_i32_2 = arith.constant 0 : i32
    %c0_i32_3 = arith.constant 0 : i32
    return %c0_i32, %c0_i32_0, %c0_i32_1, %c0_i32_2 : i32, i32, i32, i32
  }
  func.func @transform_9(%arg0: i32) -> (i32, i32, i32, i32) {
    %c0_i32 = arith.constant 0 : i32
    %c0_i32_0 = arith.constant 0 : i32
    %c0_i32_1 = arith.constant 0 : i32
    %c0_i32_2 = arith.constant 0 : i32
    %c0_i32_3 = arith.constant 0 : i32
    return %c0_i32, %c0_i32_0, %c0_i32_1, %c0_i32_2 : i32, i32, i32, i32
  }
  func.func @transform_10(%arg0: i32) -> (i32, i32, i32) {
    %c0_i32 = arith.constant 0 : i32
    %c0_i32_0 = arith.constant 0 : i32
    %c0_i32_1 = arith.constant 0 : i32
    %c0_i32_2 = arith.constant 0 : i32
    return %c0_i32, %c0_i32_0, %c0_i32_1 : i32, i32, i32
  }
  func.func @transform_11(%arg0: i32) -> (i32, i32, i32) {
    %c0_i32 = arith.constant 0 : i32
    %c0_i32_0 = arith.constant 0 : i32
    %c0_i32_1 = arith.constant 0 : i32
    %c0_i32_2 = arith.constant 0 : i32
    return %c0_i32, %c0_i32_0, %c0_i32_1 : i32, i32, i32
  }
  func.func @transform_12(%arg0: i32) -> (i32, i32, i32) {
    %c0_i32 = arith.constant 0 : i32
    %c0_i32_0 = arith.constant 0 : i32
    %c0_i32_1 = arith.constant 0 : i32
    %c0_i32_2 = arith.constant 0 : i32
    return %c0_i32, %c0_i32_0, %c0_i32_1 : i32, i32, i32
  }
  func.func @transform_13(%arg0: i32) -> (i32, i32, i32) {
    %c0_i32 = arith.constant 0 : i32
    %c0_i32_0 = arith.constant 0 : i32
    %c0_i32_1 = arith.constant 0 : i32
    %c0_i32_2 = arith.constant 0 : i32
    return %c0_i32, %c0_i32_0, %c0_i32_1 : i32, i32, i32
  }
  func.func @transform_14(%arg0: i32) -> (i32, i32, i32, i32) {
    %c0_i32 = arith.constant 0 : i32
    %c0_i32_0 = arith.constant 0 : i32
    %c0_i32_1 = arith.constant 0 : i32
    %c0_i32_2 = arith.constant 0 : i32
    %c0_i32_3 = arith.constant 0 : i32
    return %c0_i32, %c0_i32_0, %c0_i32_1, %c0_i32_2 : i32, i32, i32, i32
  }
  func.func @transform_15(%arg0: i32) -> (i32, i32, i32, i32) {
    %c0_i32 = arith.constant 0 : i32
    %c0_i32_0 = arith.constant 0 : i32
    %c0_i32_1 = arith.constant 0 : i32
    %c0_i32_2 = arith.constant 0 : i32
    %c0_i32_3 = arith.constant 0 : i32
    return %c0_i32, %c0_i32_0, %c0_i32_1, %c0_i32_2 : i32, i32, i32, i32
  }
  func.func @transform_16(%arg0: i32) -> (i32, i32) {
    %c0_i32 = arith.constant 0 : i32
    %c0_i32_0 = arith.constant 0 : i32
    %c0_i32_1 = arith.constant 0 : i32
    return %c0_i32, %c0_i32_0 : i32, i32
  }
  func.func @transform_17(%arg0: i32) -> (i32, i32) {
    %c0_i32 = arith.constant 0 : i32
    %c0_i32_0 = arith.constant 0 : i32
    %c0_i32_1 = arith.constant 0 : i32
    return %c0_i32, %c0_i32_0 : i32, i32
  }
  func.func @transform_18(%arg0: i32) -> (i32, i32, i32) {
    %c0_i32 = arith.constant 0 : i32
    %c0_i32_0 = arith.constant 0 : i32
    %c0_i32_1 = arith.constant 0 : i32
    return %arg0, %c0_i32, %c0_i32_0 : i32, i32, i32
  }
}

</mosaic_0001>

<bundles_post_ra>
// kernel: tpu_custom_call.1
= control target key start
LH: loop header
LB: loop body
LE: loop exit
PB: predicated region body
PF: predicated region fallthrough
CT: control target
= control target key end

     0   :  { %s7174_s0 = inlined_call_operand.vmem [shape: f32[2,8,32], index: 0, kind: input, shape index: {}]   ;;  %s7175_s1 = inlined_call_operand.hbm [shape: f32[2,8,32], index: 1, kind: input, shape index: {}]   ;;  %s7176_s2 = inlined_call_operand.vmem [shape: f32[2,32,96], index: 2, kind: input, shape index: {}]   ;;  %s7177_s3 = inlined_call_operand.vmem [shape: f32[2,1,96], index: 3, kind: input, shape index: {}]   ;;  %s7178_s4 = inlined_call_operand.hbm [shape: f32[2,32,32], index: 4, kind: input, shape index: {}]   ;;  %s7179_s5 = inlined_call_operand.hbm [shape: f32[2,1,32], index: 5, kind: input, shape index: {}]   ;;  %s7180_s6 = inlined_call_operand.hbm [shape: f32[2,32,64], index: 6, kind: input, shape index: {}]   ;;  %s7181_s7 = inlined_call_operand.hbm [shape: f32[2,1,64], index: 7, kind: input, shape index: {}]   ;;  %s7182_s8 = inlined_call_operand.vmem [shape: f32[2,2,32,32], index: 8, kind: input, shape index: {}]   ;;  %s7183_s9 = inlined_call_operand.vmem [shape: f32[2,2,1,32], index: 9, kind: input, shape index: {}]   ;;  %s7184_s10 = inlined_call_operand.hbm [shape: f32[2,32,64], index: 10, kind: input, shape index: {}]   ;;  %s7185_s11 = inlined_call_operand.vmem [shape: f32[2,1,64], index: 11, kind: input, shape index: {}]   ;;  %s7186_s12 = inlined_call_operand.vmem [shape: f32[2,64,32], index: 12, kind: input, shape index: {}]   ;;  %s7187_s13 = inlined_call_operand.vmem [shape: f32[2,1,32], index: 13, kind: input, shape index: {}]   ;;  %s7188_s14 = inlined_call_operand.vmem [shape: f32[2,3,1,32], index: 14, kind: input, shape index: {}]   ;;  %s7189_s15 = inlined_call_operand.vmem [shape: f32[2,3,1,32], index: 15, kind: input, shape index: {}]   ;;  %s7190_s16 = inlined_call_operand.vmem [shape: f32[1,32], index: 16, kind: input, shape index: {}]   ;;  %s7191_s17 = inlined_call_operand.vmem [shape: f32[1,32], index: 17, kind: input, shape index: {}]   ;;  %s7192_s18 = inlined_call_operand.hbm [shape: f32[2,8,32], index: 18, kind: output, shape index: {}]  }
   0x1   :  { %7233 = sst [smem:[#allocation21_spill]] %s7174_s0 }
   0x2   :  { %7234 = sst [smem:[#allocation22_spill]] %s7175_s1 }
   0x3   :  { %7235 = sst [smem:[#allocation23_spill]] %s7176_s2 }
   0x4   :  { %7236 = sst [smem:[#allocation24_spill]] %s7177_s3 }
   0x5   :  { %7237 = sst [smem:[#allocation25_spill]] %s7178_s4 }
   0x6   :  { %7238 = sst [smem:[#allocation26_spill]] %s7179_s5 }
   0x7   :  { %7239 = sst [smem:[#allocation27_spill]] %s7180_s6 }
   0x8   :  { %7240 = sst [smem:[#allocation28_spill]] %s7181_s7 }
   0x9   :  { %7241 = sst [smem:[#allocation29_spill]] %s7184_s10 }
   0xa   :  { %7242 = sst [smem:[#allocation30_spill]] %s7185_s11 }
   0xb   :  { %7243 = sst [smem:[#allocation31_spill]] %s7186_s12 }
   0xc   :  { %7244 = sst [smem:[#allocation32_spill]] %s7187_s13 }
   0xd   :  { %7245 = sst [smem:[#allocation33_spill]] %s7189_s15 }
   0xe   :  { %7246 = sst [smem:[#allocation34_spill]] %s7190_s16 }
   0xf   :  { %7247 = sst [smem:[#allocation35_spill]] %s7191_s17 }
  0x10   :  { %7248 = sst [smem:[#allocation36_spill]] %s7192_s18 }
  0x11   :  { %23 = vsyncpa [#allocation3], 0 }
  0x12   :  { %25 = vsyncpa [#allocation3 + $0x1], 0 }
  0x13   :  { %26 = vsyncpa [#allocation6], 0 }
  0x14   :  { %27 = vsyncpa [#allocation9], 0 }
  0x15   :  { %28 = vsyncpa [#allocation12], 0 }
  0x16   :  { %29 = vsyncpa [#allocation4], 0 }
  0x17   :  { %31 = vsyncpa [#allocation4 + $0x1], 0  ;;  %s6266_s27 = smov 0   ;;  %s6268_s28 = smov 0  }
  0x18   :  { %s6270_s29 = smov 0   ;;  %s6272_s30 = smov 0  }
  0x19 LB: > { %7249 = sst [smem:[#allocation19_spill]] %s6137_s29  ;;  %s6143_s0 = smov [#allocation5]   ;;  %s6141_s30 = sphi %s6272_s30, %s7306_s30   ;;  %s6137_s29 = sphi %s6270_s29, %s7303_s29   ;;  %s6133_s28 = sphi %s6268_s28, %s7305_s28   ;;  %s6129_s27 = sphi %s6266_s27, %s7304_s27  }
  0x1a   : > { %s474_s19 = sshll.u32 %s6143_s0, 4  ;;  %s6287_s1 = sadd.s32 4294967295, %s6141_s30   ;;  %s6292_s19 = int_to_ptr.vmem [resolvable:$true] %s474_s19 }
  0x1b   : > { %p4977_p0 = scmp.ge.s32.totalorder %s6141_s30, 1  ;;  %p7202_p1 = scmp.eq.s32.totalorder %s6287_s1, 0 }
  0x1c   : > { %p456_p2 = scmp.lt.s32.totalorder %s6141_s30, 3  ;;  %s6144_s21 = smov [#allocation8]  }
  0x1d   : > { %s500_s22 = sshll.u32 %s6144_s21, 4  ;;  %s6145_s23 = smov [#allocation7]   ;;  %s6307_s22 = int_to_ptr.vmem [resolvable:$true] %s500_s22 }
  0x1e   : > { %p6294_p3 = pnand %p4977_p0, %p456_p2  ;;  %s487_s24 = sshll.u32 %s6145_s23, 4  ;;  %s6309_s24 = int_to_ptr.vmem [resolvable:$true] %s487_s24 }
  0x1f   : > { %s7252_s4 = sld [smem:[#allocation25_spill]] }
  0x20   : > { %s7250_s20 = scalar_select %p6294_p3, 1, 0 }
  0x21   : > { %p5721_p5 = pneg %p6294_p3 }
  0x23   : > { %p6303_p6 = pnand %p5721_p5, %p7202_p1 }
  0x25   : > { %s5893_s0 = scalar_lea.hbm %s7252_s4, 1024  ;;  %p6319_p8 = pneg %p6303_p6 }
  0x26   : > { %p5894_p7 = scmp.ne.s32.totalorder %s7252_s4, %s5893_s0  ;;  %p5900_p11 = scmp.lt.u32.totalorder %s5893_s0, %s7252_s4 }
  0x28   : > { %p5896_p9 = pnand %p6319_p8, %p5894_p7 }
  0x2a   : > { %p5897_p10 = pneg %p5896_p9 }
  0x2c   : > { %p5902_p12 = pnand %p5900_p11, %p5897_p10 }
  0x2e   : > { %5905 = shalt.err (!%p5902_p12)
}
  0x2f   : > { %s5906_s17 = scalar_lea.vmem %s6292_s19, 1024  ;;  %p5914_p5 = scmp.lt.s32.totalorder %s6292_s19, %s6292_s19 }
  0x30   : > { %p5907_p13 = scmp.ne.s32.totalorder %s6292_s19, %s5906_s17  ;;  %p5915_p4 = scmp.lt.s32.totalorder %s5906_s17, %s5906_s17 }
  0x32   : > { %p5909_p0 = pnand %p5907_p13, %p6319_p8  ;;  %p5916_p7 = por %p5915_p4, %p5914_p5 }
  0x34   : > { %p5910_p2 = pneg %p5909_p0 }
  0x36   : > { %p5917_p9 = pnand %p5916_p7, %p5910_p2 }
  0x38   : > { %5920 = shalt.err (!%p5917_p9)
}
  0x39   : > { %s7200_s18 = smov 128   ;;  %s7201_s16 = smov 8  }
  0x3a   : > { %5724 = dma.hbm_to_vmem [thread:$0]  (!%p6303_p6), %s7252_s4, 1024, %s6292_s19, [#allocation6], %s7200_s18, %s7200_s18, %s7201_s16  }
  0x3b   : > { %s7254_s6 = sld [smem:[#allocation27_spill]] }
  0x41   : > { %s5921_s17 = scalar_lea.hbm %s7254_s6, 1024 }
  0x42   : > { %p5922_p4 = scmp.ne.s32.totalorder %s7254_s6, %s5921_s17  ;;  %p5928_p12 = scmp.lt.u32.totalorder %s5921_s17, %s7254_s6 }
  0x44   : > { %p5924_p10 = pnand %p5922_p4, %p6319_p8 }
  0x46   : > { %p5925_p11 = pneg %p5924_p10 }
  0x48   : > { %p5930_p13 = pnand %p5928_p12, %p5925_p11 }
  0x4a   : > { %5933 = shalt.err (!%p5930_p13)
}
  0x4b   : > { %s5934_s19 = scalar_lea.vmem %s6307_s22, 1024  ;;  %p5942_p7 = scmp.lt.s32.totalorder %s6307_s22, %s6307_s22 }
  0x4c   : > { %p5935_p0 = scmp.ne.s32.totalorder %s6307_s22, %s5934_s19  ;;  %p5943_p9 = scmp.lt.s32.totalorder %s5934_s19, %s5934_s19 }
  0x4e   : > { %p5937_p2 = pnand %p5935_p0, %p6319_p8  ;;  %p5944_p4 = por %p5943_p9, %p5942_p7 }
  0x50   : > { %p5938_p5 = pneg %p5937_p2 }
  0x52   : > { %p5945_p10 = pnand %p5944_p4, %p5938_p5 }
  0x54   : > { %5948 = shalt.err (!%p5945_p10)
}
  0x55   : > { %5730 = dma.hbm_to_vmem [thread:$0]  (!%p6303_p6), %s7254_s6, 1024, %s6307_s22, [#allocation9], %s7200_s18, %s7200_s18, %s7201_s16  }
  0x56   : > { %s7255_s5 = sld [smem:[#allocation26_spill]] }
  0x5c   : > { %s5949_s25 = scalar_lea.hbm %s7255_s5, 32 }
  0x5d   : > { %p5950_p11 = scmp.ne.s32.totalorder %s7255_s5, %s5949_s25  ;;  %p5956_p0 = scmp.lt.u32.totalorder %s5949_s25, %s7255_s5 }
  0x5f   : > { %p5952_p12 = pnand %p5950_p11, %p6319_p8 }
  0x61   : > { %p5953_p13 = pneg %p5952_p12 }
  0x63   : > { %p5958_p2 = pnand %p5956_p0, %p5953_p13 }
  0x65   : > { %5961 = shalt.err (!%p5958_p2)
}
  0x66   : > { %s5962_s22 = scalar_lea.vmem %s6309_s24, 32  ;;  %p5970_p4 = scmp.lt.s32.totalorder %s6309_s24, %s6309_s24 }
  0x67   : > { %p5963_p5 = scmp.ne.s32.totalorder %s6309_s24, %s5962_s22  ;;  %p5971_p10 = scmp.lt.s32.totalorder %s5962_s22, %s5962_s22 }
  0x69   : > { %p5965_p7 = pnand %p5963_p5, %p6319_p8  ;;  %p5972_p11 = por %p5971_p10, %p5970_p4 }
  0x6b   : > { %p5966_p9 = pneg %p5965_p7 }
  0x6d   : > { %p5973_p12 = pnand %p5972_p11, %p5966_p9 }
  0x6f   : > { %5976 = shalt.err (!%p5973_p12)
}
  0x70   : > { %s6148_s19 = smov 16   ;;  %s6149_s11 = smov 1  }
  0x71   : > { %5727 = dma.hbm_to_vmem [thread:$0]  (!%p6303_p6), %s7255_s5, 32, %s6309_s24, [#allocation6], %s6148_s19, %s6148_s19, %s6149_s11  }
  0x72   : > { %s6150_s15 = smov [#allocation10]   ;;  %s6151_s26 = smov [#allocation11]  }
  0x73   : > { %s513_s25 = sshll.u32 %s6150_s15, 4  ;;  %s532_s0 = sshll.u32 %s6151_s26, 4  ;;  %s514_s25 = int_to_ptr.vmem [resolvable:$true] %s513_s25  ;;  %s533_s0 = int_to_ptr.vmem [resolvable:$true] %s532_s0 }
  0x74   : > { %s7256_s7 = sld [smem:[#allocation28_spill]] }
  0x7a   : > { %s5977_s22 = scalar_lea.hbm %s7256_s7, 32 }
  0x7b   : > { %p5978_p13 = scmp.ne.s32.totalorder %s7256_s7, %s5977_s22  ;;  %p5984_p5 = scmp.lt.u32.totalorder %s5977_s22, %s7256_s7 }
  0x7d   : > { %p5980_p0 = pnand %p5978_p13, %p6319_p8 }
  0x7f   : > { %p5981_p2 = pneg %p5980_p0 }
  0x81   : > { %p5986_p7 = pnand %p5984_p5, %p5981_p2 }
  0x83   : > { %5989 = shalt.err (!%p5986_p7)
}
  0x84   : > { %s5990_s24 = scalar_lea.vmem %s514_s25, 32  ;;  %p5998_p11 = scmp.lt.s32.totalorder %s514_s25, %s514_s25 }
  0x85   : > { %p5991_p9 = scmp.ne.s32.totalorder %s514_s25, %s5990_s24  ;;  %p5999_p12 = scmp.lt.s32.totalorder %s5990_s24, %s5990_s24 }
  0x87   : > { %p5993_p4 = pnand %p5991_p9, %p6319_p8  ;;  %p6000_p1 = por %p5999_p12, %p5998_p11 }
  0x89   : > { %p5994_p10 = pneg %p5993_p4 }
  0x8b   : > { %p6001_p3 = pnand %p6000_p1, %p5994_p10 }
  0x8d   : > { %6004 = shalt.err (!%p6001_p3)
}
  0x8e   : > { %5733 = dma.hbm_to_vmem [thread:$0]  (!%p6303_p6), %s7256_s7, 32, %s514_s25, [#allocation9], %s6148_s19, %s6148_s19, %s6149_s11  }
  0x8f   : > { %s7257_s10 = sld [smem:[#allocation29_spill]] }
  0x95   : > { %s6005_s12 = scalar_lea.hbm %s7257_s10, 1024 }
  0x96   : > { %p6006_p13 = scmp.ne.s32.totalorder %s7257_s10, %s6005_s12  ;;  %p6012_p3 = scmp.lt.u32.totalorder %s6005_s12, %s7257_s10 }
  0x98   : > { %p6008_p0 = pnand %p6006_p13, %p6319_p8 }
  0x9a   : > { %p6009_p1 = pneg %p6008_p0 }
  0x9c   : > { %p6014_p2 = pnand %p6012_p3, %p6009_p1 }
  0x9e   : > { %6017 = shalt.err (!%p6014_p2)
}
  0x9f   : > { %s6018_s17 = scalar_lea.vmem %s533_s0, 1024  ;;  %p6026_p4 = scmp.lt.s32.totalorder %s533_s0, %s533_s0 }
  0xa0   : > { %p6019_p5 = scmp.ne.s32.totalorder %s533_s0, %s6018_s17  ;;  %p6027_p10 = scmp.lt.s32.totalorder %s6018_s17, %s6018_s17 }
  0xa2   : > { %p6021_p7 = pnand %p6019_p5, %p6319_p8  ;;  %p6028_p11 = por %p6027_p10, %p6026_p4 }
  0xa4   : > { %p6022_p9 = pneg %p6021_p7 }
  0xa6   : > { %p6029_p12 = pnand %p6028_p11, %p6022_p9 }
  0xa8   : > { %6032 = shalt.err (!%p6029_p12)
}
  0xa9   : > { %s7258_s19 = smov 8   ;;  %s7259_s11 = smov 128  }
  0xaa   : > { %5736 = dma.hbm_to_vmem [thread:$0]  (!%p6303_p6), %s7257_s10, 1024, %s533_s0, [#allocation12], %s7259_s11, %s7259_s11, %s7258_s19  }
  0xab   : > { %s4976_s2 = sadd.s32 4294967294, %s6141_s30   ;;  %s6433_s21 = sadd.s32 1, %s6141_s30  }
  0xac   : > { %s70_s24 = sadd.s32 1, %s6137_s29  ;;  %s67_s18 = ssub.s32 %s6141_s30, %s6433_s21 }
  0xad   : > { %p77_p8 = scmp.ne.s32.totalorder %s6137_s29, %s6133_s28  ;;  %p68_p13 = scmp.eq.s32.totalorder %s67_s18, 0 }
  0xae   : > { %p78_p0 = scmp.eq.s32.totalorder %s6141_s30, 0  ;;  %p83_p1 = scmp.ne.s32.totalorder %s6133_s28, %s6129_s27 }
  0xaf   : > { %p443_p3 = scmp.eq.s32.totalorder %s6287_s1, 1  ;;  %p7261_p5 = scmp.eq.s32.totalorder %s6287_s1, 0 }
  0xb0   : > { %s6445_s16 = scalar_select %p68_p13, %s6137_s29, %s70_s24  }
  0xb1   : > { %p79_p2 = por %p78_p0, %p77_p8  ;;  %p6449_p7 = por %p7261_p5, %p83_p1 }
  0xb2   : > { %7260 = sst [smem:[#allocation20_spill]] %s6445_s16  ;;  %p6453_p6 = por %p443_p3, %p77_p8 }
  0xb3   : > { %p449_p9 = scmp.eq.s32.totalorder %s4976_s2, 1  ;;  %p5750_p4 = scmp.lt.s32.totalorder %s6141_s30, 2 }
  0xb4   : > { %s7263_s0 = scalar_select %p6453_p6, 1, 0 }
  0xb5   : > { %s574_s6 = sand.u32 1, %s6137_s29   ;;  %p6459_p10 = por %p449_p9, %p83_p1 }
  0xb6   : > { %s4984_s13 = sshll.u32 %s574_s6, 3  ;;  %s4985_s15 = sshll.u32 %s6141_s30, 7 }
  0xb7   : > { %s7264_s12 = scalar_select %p6459_p10, 1, 0 }
  0xb8   : > { %s7265_s17 = sld [smem:[#allocation22_spill]]  ;;  %s578_s11 = scalar_lea.vmem [#allocation2], %s4984_s13 }
  0xb9   : > { %s585_s25 = sshll.u32 %s578_s11, 4  ;;  %p6469_p11 = pnand %p5750_p4, %p79_p2  ;;  %s6473_s25 = int_to_ptr.vmem [resolvable:$true] %s585_s25 }
  0xba   : > { %s575_s2 = scalar_lea.sflag [#allocation3], %s574_s6 }
  0xbb   : > { %p6035_p8 = pneg %p6469_p11 }
  0xbe   : > { %s6467_s19 = scalar_lea.hbm %s7265_s17, %s4985_s15  ;;  %s6038_s15 = scalar_lea.hbm %s7265_s17, 256 }
  0xbf   : > { %s6033_s24 = scalar_lea.hbm %s6467_s19, 128  ;;  %p6039_p1 = scmp.lt.u32.totalorder %s6467_s19, %s7265_s17 }
  0xc0   : > { %p6034_p12 = scmp.ne.s32.totalorder %s6467_s19, %s6033_s24  ;;  %p6040_p3 = scmp.lt.u32.totalorder %s6038_s15, %s6033_s24 }
  0xc1   : > { %p6042_p5 = scmp.lt.u32.totalorder %s6033_s24, %s6467_s19 }
  0xc2   : > { %p6036_p13 = pnand %p6035_p8, %p6034_p12  ;;  %p6041_p2 = por %p6040_p3, %p6039_p1 }
  0xc4   : > { %p6037_p0 = pneg %p6036_p13  ;;  %p6043_p9 = por %p6042_p5, %p6041_p2 }
  0xc6   : > { %p6044_p4 = pnand %p6043_p9, %p6037_p0 }
  0xc8   : > { %6047 = shalt.err (!%p6044_p4)
}
  0xc9   : > { %s6048_s6 = scalar_lea.vmem %s6473_s25, 128  ;;  %s6152_s11 = smov [#allocation2]  }
  0xca   : > { %p6049_p12 = scmp.ne.s32.totalorder %s6473_s25, %s6048_s6  ;;  %s6053_s18 = sshll.u32 %s6152_s11, 4  ;;  %s6054_s18 = int_to_ptr.vmem [resolvable:$false] %s6053_s18 }
  0xcb   : > { %s6055_s13 = scalar_lea.vmem %s6054_s18, 256  ;;  %p6056_p6 = scmp.lt.s32.totalorder %s6473_s25, %s6054_s18 }
  0xcc   : > { %p6051_p13 = pnand %p6049_p12, %p6035_p8  ;;  %p6057_p1 = scmp.lt.s32.totalorder %s6055_s13, %s6048_s6 }
  0xce   : > { %p6052_p10 = pneg %p6051_p13  ;;  %p6058_p3 = por %p6057_p1, %p6056_p6 }
  0xd0   : > { %p6059_p2 = pnand %p6058_p3, %p6052_p10 }
  0xd2   : > { %6062 = shalt.err (!%p6059_p2)
}
  0xd3   : > { %5740 = dma.hbm_to_vmem [thread:$0]  (!%p6469_p11), %s6467_s19, 128, %s6473_s25, %s575_s2  }
  0xd4   : > { %p7267_p0 = scmp.ne.s32.totalorder %s7250_s20, 0 }
  0xd5   : > { %s6503_s24 = sand.u32 (!%p7267_p0), 1, %s6133_s28  }
  0xd6   : > { %594 = sbr.rel (%p7267_p0) target bundleno = 8001 (0x1f41), region = 92  ;;  %s7205_s15 = sshll.u32 (!%p7267_p0), %s6503_s24, 3 }
  0xd7   : > { %s597_s26 = scalar_lea.sflag (!%p7267_p0), [#allocation3], %s6503_s24  ;;  %s6509_s23 = scalar_lea.vmem (!%p7267_p0), [#allocation2], %s7205_s15 }
  0xdd   : > { %6108 = dma.done.wait (%p6449_p7), %s597_s26, 128  }
  0xde   : > { %6110 = vsyncadd (%p6449_p7), %s597_s26, 4294967168  ;;  %p7268_p6 = scmp.eq.s32.totalorder %s6287_s1, 0 }
  0xe0   : > { %6112 = dma.done.wait (%p7268_p6), [#allocation6], 1056   ;;  %p7269_p10 = pmov %p7268_p6 }
  0xe1   : > { %p7270_p11 = pmov %p7268_p6 }
  0xe2   : > { %6114 = vsyncadd (%p7269_p10), [#allocation6], 4294966240 }
  0xe3   : > { %6116 = dma.done.wait (%p7270_p11), [#allocation9], 1056   ;;  %p7271_p8 = pmov %p7268_p6 }
  0xe4   : > { %p7272_p5 = pmov %p7268_p6 }
  0xe5   : > { %6118 = vsyncadd (%p7271_p8), [#allocation9], 4294966240 }
  0xe6   : > { %6120 = dma.done.wait (%p7272_p5), [#allocation12], 1024   ;;  %p7273_p9 = pmov %p7272_p5 }
  0xe7   : > { %p677_p7 = scmp.lt.s32.totalorder %s6287_s1, 1  ;;  %v6153_v0 = vmov 0.0|0.0   ;;  %vm6154_vm0 = vmmov 0   ;;  %v6155_v1 = vmov 0.0   ;;  %s7274_s25 = sld [smem:[#allocation23_spill]]  ;;  %vm694_vm1 = vcmask 261120  }
  0xe8   : > { %6122 = vsyncadd (%p7273_p9), [#allocation12], 4294966272  ;;  %5601 = vmatprep.subr.bf16.mxu1 %v6153_v0  ;;  %5279 = vmatprep.mubr.msk.f32.mxu1 %vm6154_vm0, %v6155_v1  ;;  %s7275_s15 = sld [smem:[#allocation21_spill]]  ;;  %s7276_s3 = sld [smem:[#allocation24_spill]]  ;;  %vm776_vm2 = vcmask 64512   ;;  %vm1450_vm3 = vcmask 130048  }
  0xe9   : > { %5292 = vmatprep.subr.mxu0 %v6155_v1  ;;  %5294 = vmatprep.mubr.msk.f32.mxu0 %vm6154_vm0, %v6155_v1  ;;  %s678_s20 = scalar_select %p677_p7, %s6287_s1, 1  ;;  %vm1452_vm4 = vcmask 195584   ;;  %vm2631_vm5 = vcmask 523264  }
  0xea   : > { %s7218_s2 = smov 80   ;;  %s7210_s6 = smov 88  }
  0xeb   : > { %s4994_s26 = sshll.u32 %s678_s20, 3  ;;  %s7212_s11 = smov 72  }
  0xec   : > { %s7216_s18 = smov 112   ;;  %s7214_s13 = smov 104  }
  0xed   : > { %v683_v2 = vld [vmem:[%s7274_s25] sm:$0xff]  ;;  %v684_v3 = vld [vmem:[%s7274_s25 + $0x8] sm:$0xff]  ;;  %v685_v4 = vld [vmem:[%s7274_s25 + $0x10] sm:$0xff]  ;;  %s7209_s4 = smov 64   ;;  %s7208_s19 = smov 48  }
  0xee   : > { %v5602_v5 = vpack.c.bf16 %v684_v3, %v683_v2  ;;  %v686_v6 = vld [vmem:[%s7274_s25 + $0x18] sm:$0xff]  ;;  %s680_s5 = scalar_lea.vmem %s7275_s15, %s4994_s26  ;;  %v4995_v9 = vld [vmem:[%s7276_s3] ss:$0 sm:$0xff]  ;;  %s7220_s15 = smov 120  }
  0xef   : > { %v5605_v7 = vpack.c.bf16 %v686_v6, %v685_v4  ;;  %v6551_v8 = vld [vmem:[%s680_s5] sm:$0xff]  ;;  %s7222_s5 = smov 96   ;;  %s7206_s26 = smov 56  }
  0xf0   : > { %5603 = vmatpush3.bf16.msra.mxu1 %v5602_v5  ;;  %s7207_s20 = smov 40   ;;  %s7288_s10 = smov 104  }
  0xf1   : > { %5604 = vmatprep.subr.bf16.mxu1 %v6153_v0  ;;  %s7290_s22 = smov 48   ;;  %s7291_s7 = smov 40  }
  0xf2   : > { %s7296_s16 = sld [smem:[#allocation35_spill]]  ;;  %s5126_s17 = sshll.u32 %s6287_s1, 7 }
  0xf3   : > { %p7299_p12 = scmp.ne.s32.totalorder %s7263_s0, 0  ;;  %s6170_s1 = smov [#allocation13]  }
  0xf4   : > { %5606 = vmatpush3.bf16.msra.mxu1 %v5605_v7 }
  0xf5   : > { %5282 = vmatprep.subr.mxu1 %v6155_v1 }
  0xf7   : > { %5280 = vmatmul.mubr.msk.f32.vlgmr.msra.gmra.mrb[0].mxu1 %vm694_vm1, %v6551_v8 }
  0xf8   : > { %5284 = vmatprep.mubr.msk.f32.mxu1 %vm6154_vm0, %v6155_v1 }
 0x1ca   : > { %v764_v10 = vpop.f32.mrb[0].mxu1 }
 0x1cb   : > { %v6561_v11 = vadd.f32 %v4995_v9, %v764_v10  ;;  %v5281_v12 = vpop.f32.mrb[1].mxu1 }
 0x1cc   : > { %v769_v12 = vld [vmem:[%s7182_s8 + $0x8] sm:$0xff] }
 0x1cd   : > { %939 = vrot.lane.b32.xlu1 %v6561_v11, %s7220_s15  ;;  %774 = vrot.lane.b32.xlu0 %v6561_v11, %s7222_s5 }
 0x1d1   : > { %1107 = vrot.lane.b32.xlu1 %v6561_v11, %s7218_s2  ;;  %941 = vrot.lane.b32.xlu0 %v6561_v11, %s7210_s6  ;;  %s7285_s6 = smov 120  }
 0x1d5   : > { %1273 = vrot.lane.b32.xlu1 %v6561_v11, %s7212_s11  ;;  %1105 = vrot.lane.b32.xlu0 %v6561_v11, %s7216_s18  ;;  %s7277_s11 = sld [smem:[#allocation33_spill]] }
 0x1d9   : > { %1271 = vrot.lane.b32.xlu0 %v6561_v11, %s7214_s13 }
 0x23f   : > { %v940_v13 = vpop.permute.xlu1 %939  ;;  %v775_v14 = vpop.permute.xlu0 %774 }
 0x240   : > { %5283 = vmatpush3.xpose.msk.msra.mxu1 %vm776_vm2, %v775_v14 }
 0x241   : > { %5287 = vmatprep.subr.mxu1 %v6155_v1 }
 0x243   : > { %5285 = vmatmul.mubr.msk.f32.vlgmr.msra.gmra.mrb[2].mxu1 %vm776_vm2, %v6561_v11  ;;  %v942_v15 = vpop.permute.xlu0 %941  ;;  %v1108_v16 = vpop.permute.xlu1 %1107 }
 0x244   : > { %5293 = vmatpush3.xpose.msk.msra.mxu0 %vm776_vm2, %v942_v15  ;;  %5289 = vmatprep.mubr.msk.f32.mxu1 %vm6154_vm0, %v6155_v1 }
 0x245   : > { %5302 = vmatprep.subr.mxu0 %v6155_v1 }
 0x247   : > { %5295 = vmatmul.mubr.msk.f32.vlgmr.msra.gmra.mrb[0].mxu0 %vm776_vm2, %v940_v13  ;;  %v1106_v17 = vpop.permute.xlu0 %1105  ;;  %v1274_v18 = vpop.permute.xlu1 %1273 }
 0x248   : > { %5303 = vmatpush3.xpose.msk.msra.mxu0 %vm776_vm2, %v1108_v16  ;;  %5304 = vmatprep.mubr.msk.f32.mxu0 %vm6154_vm0, %v6155_v1 }
 0x249   : > { %5312 = vmatprep.subr.mxu0 %v6155_v1 }
 0x24b   : > { %5305 = vmatmul.mubr.msk.f32.vlgmr.msra.gmra.mrb[2].mxu0 %vm776_vm2, %v1106_v17  ;;  %v1272_v19 = vpop.permute.xlu0 %1271 }
 0x24c   : > { %5313 = vmatpush3.xpose.msk.msra.mxu0 %vm776_vm2, %v1274_v18  ;;  %5314 = vmatprep.mubr.msk.f32.mxu0 %vm6154_vm0, %v6155_v1  ;;  %v770_v18 = vld [vmem:[%s7182_s8 + $0x10] sm:$0xff] }
 0x24d   : > { %5607 = vmatprep.subr.bf16.mxu0 %v6153_v0 }
 0x24f   : > { %5315 = vmatmul.mubr.msk.f32.vlgmr.msra.gmra.mrb[4].mxu0 %vm776_vm2, %v1272_v19  ;;  %v771_v19 = vld [vmem:[%s7182_s8 + $0x18] sm:$0xff] }
 0x250   : > { %5330 = vmatprep.mubr.msk.f32.mxu0 %vm6154_vm0, %v6155_v1 }
 0x316   : > { %v847_v20 = vpop.f32.mrb[2].mxu1 }
 0x317   : > { %v851_v21 = vmul.f32 0.35355338, %v847_v20  ;;  %v5286_v22 = vpop.f32.mrb[3].mxu1  ;;  %v5611_v20 = vpack.c.bf16 %v771_v19, %v770_v18 }
 0x319   : > { %v852_v23 = vsel %vm776_vm2, %v851_v21, -inf }
 0x31a   : > { %v1013_v24 = vpop.f32.mrb[0].mxu0  ;;  %853 = vmax.xlane.f32.xlu1 %v852_v23 }
 0x31b   : > { %v1017_v25 = vmul.f32 0.35355338, %v1013_v24  ;;  %v5296_v26 = vpop.f32.mrb[1].mxu0 }
 0x31d   : > { %v1018_v27 = vsel %vm776_vm2, %v1017_v25, -inf }
 0x31e   : > { %1019 = vmax.xlane.f32.xlu0 %v1018_v27  ;;  %v1179_v28 = vpop.f32.mrb[2].mxu0 }
 0x31f   : > { %v1183_v29 = vmul.f32 0.35355338, %v1179_v28  ;;  %v5306_v30 = vpop.f32.mrb[3].mxu0 }
 0x321   : > { %v1184_v31 = vsel %vm776_vm2, %v1183_v29, -inf }
 0x322   : > { %1185 = vmax.xlane.f32.xlu0 %v1184_v31  ;;  %v1345_v32 = vpop.f32.mrb[4].mxu0  ;;  %v5009_v31 = vld [vmem:[%s7183_s9] ss:$0 sm:$0xff] }
 0x323   : > { %v1349_v33 = vmul.f32 0.35355338, %v1345_v32  ;;  %v5316_v34 = vpop.f32.mrb[5].mxu0 }
 0x325   : > { %v1350_v35 = vsel %vm776_vm2, %v1349_v33, -inf }
 0x326   : > { %1351 = vmax.xlane.f32.xlu1 %v1350_v35 }
 0x337   : > { %1029 = vrot.lane.b32.xlu1 %v6561_v11, %s7206_s26  ;;  %s7279_s26 = smov 88  }
 0x3a7   : > { %v854_v36 = vpop.xlane.xlu1 %853 }
 0x3a8   : > { %v855_v37 = vsub.f32 %v851_v21, %v854_v36 }
 0x3aa   : > { %v856_v38 = vmul.f32 1.442695, %v855_v37 }
 0x3ab   : > { %v1020_v39 = vpop.xlane.xlu0 %1019 }
 0x3ac   : > { %5815 = vpow2.f32 %v856_v38  ;;  %v1021_v40 = vsub.f32 %v1017_v25, %v1020_v39  ;;  %v1650_v39 = vld [vmem:[#allocation8] sm:$0xff] }
 0x3ae   : > { %v1022_v41 = vmul.f32 1.442695, %v1021_v40  ;;  %v1651_v40 = vld [vmem:[#allocation8 + $0x8] sm:$0xff] }
 0x3af   : > { %v1186_v51 = vpop.xlane.xlu0 %1185 }
 0x3b0   : > { %5817 = vpow2.f32 %v1022_v41  ;;  %v1187_v52 = vsub.f32 %v1183_v29, %v1186_v51  ;;  %v5620_v41 = vpack.c.bf16 %v1651_v40, %v1650_v39 }
 0x3b2   : > { %v1188_v53 = vmul.f32 1.442695, %v1187_v52 }
 0x3b3   : > { %v1352_v42 = vpop.xlane.xlu1 %1351 }
 0x3b4   : > { %v1353_v43 = vsub.f32 %v1349_v33, %v1352_v42  ;;  %v1652_v42 = vld [vmem:[#allocation8 + $0x10] sm:$0xff] }
 0x3b6   : > { %v5816_v44 = vpop.eup %5815  ;;  %v1354_v45 = vmul.f32 1.442695, %v1353_v43  ;;  %v1653_v43 = vld [vmem:[#allocation8 + $0x18] sm:$0xff] }
 0x3b7   : > { %v858_v46 = vsel %vm776_vm2, %v5816_v44, 0.0  ;;  %v1030_v56 = vpop.permute.xlu1 %1029 }
 0x3b8   : > { %5819 = vpow2.f32 %v1354_v45  ;;  %859 = vadd.xlane.f32.xlu0 %v858_v46  ;;  %v1566_v45 = vld [vmem:[#allocation5] sm:$0xff]  ;;  %v1567_v46 = vld [vmem:[#allocation5 + $0x8] sm:$0xff] }
 0x3b9   : > { %5821 = vpow2.f32 %v1188_v53 }
 0x3ba   : > { %v5818_v47 = vpop.eup %5817 }
 0x3bb   : > { %v1024_v48 = vsel %vm776_vm2, %v5818_v47, 0.0 }
 0x3bc   : > { %1025 = vadd.xlane.f32.xlu1 %v1024_v48  ;;  %v1568_v48 = vld [vmem:[#allocation5 + $0x10] sm:$0xff] }
 0x3c2   : > { %v5820_v49 = vpop.eup %5819 }
 0x3c3   : > { %v1356_v50 = vsel %vm776_vm2, %v5820_v49, 0.0  ;;  %v5822_v54 = vpop.eup %5821 }
 0x3c4   : > { %1357 = vadd.xlane.f32.xlu1 %v1356_v50  ;;  %v1190_v55 = vsel %vm776_vm2, %v5822_v54, 0.0 }
 0x3ce   : > { %863 = vrot.lane.b32.xlu0 %v6561_v11, %s7209_s4  ;;  %s7228_s4 = smov 8  }
 0x3d5   : > { %1195 = vrot.lane.b32.xlu1 %v6561_v11, %s7208_s19  ;;  %s7226_s19 = smov 16  }
 0x3ed   : > { %1191 = vadd.xlane.f32.xlu0 %v1190_v55 }
 0x403   : > { %1361 = vrot.lane.b32.xlu0 %v6561_v11, %s7207_s20  ;;  %v768_v11 = vld [vmem:[%s7182_s8] sm:$0xff]  ;;  %s7224_s20 = smov 24  }
 0x404   : > { %v5608_v13 = vpack.c.bf16 %v769_v12, %v768_v11 }
 0x406   : > { %5609 = vmatpush3.bf16.msra.mxu0 %v5608_v13 }
 0x407   : > { %5610 = vmatprep.subr.bf16.mxu0 %v6153_v0 }
 0x40a   : > { %5612 = vmatpush3.bf16.msra.mxu0 %v5611_v20 }
 0x40b   : > { %5619 = vmatprep.subr.bf16.mxu0 %v6153_v0 }
 0x445   : > { %v860_v57 = vpop.xlane.xlu0 %859 }
 0x446   : > { %5823 = vrcp.f32 %v860_v57 }
 0x449   : > { %v864_v58 = vpop.permute.xlu0 %863  ;;  %v1026_v59 = vpop.xlane.xlu1 %1025 }
 0x44a   : > { %5825 = vrcp.f32 %v1026_v59  ;;  %5288 = vmatpush3.msra.mxu1 %v864_v58 }
 0x44b   : > { %5297 = vmatprep.subr.mxu1 %v6155_v1 }
 0x450   : > { %v5824_v60 = vpop.eup %5823 }
 0x451   : > { %v862_v61 = vmul.f32 %v5824_v60, %v5816_v44  ;;  %v1358_v62 = vpop.xlane.xlu1 %1357  ;;  %v5623_v44 = vpack.c.bf16 %v1653_v43, %v1652_v42  ;;  %v5011_v60 = vld [vmem:[%s7188_s14] ss:$0 sm:$0xff] }
 0x453   : > { %5290 = vmatmul.mubr.msk.f32.vlgmr.msra.gmra.mrb[4].mxu1 %vm776_vm2, %v862_v61 }
 0x454   : > { %v5826_v63 = vpop.eup %5825  ;;  %5298 = vmatpush3.msra.mxu1 %v1030_v56  ;;  %5299 = vmatprep.mubr.msk.f32.mxu1 %vm6154_vm0, %v6155_v1 }
 0x455   : > { %v1028_v2 = vmul.f32 %v5826_v63, %v5818_v47  ;;  %v1196_v3 = vpop.permute.xlu1 %1195  ;;  %5307 = vmatprep.subr.mxu1 %v6155_v1  ;;  %v5614_v47 = vpack.c.bf16 %v1567_v46, %v1566_v45 }
 0x457   : > { %5300 = vmatmul.mubr.msk.f32.vlgmr.msra.gmra.mrb[6].mxu1 %vm776_vm2, %v1028_v2 }
 0x458   : > { %5308 = vmatpush3.msra.mxu1 %v1196_v3  ;;  %5309 = vmatprep.mubr.msk.f32.mxu1 %vm6154_vm0, %v6155_v1  ;;  %v5015_v3 = vld [vmem:[#allocation10] ss:$0 sm:$0xff] }
 0x459   : > { %5317 = vmatprep.subr.mxu1 %v6155_v1 }
 0x47a   : > { %v1192_v4 = vpop.xlane.xlu0 %1191 }
 0x47b   : > { %5827 = vrcp.f32 %v1192_v4 }
 0x47c   : > { %5829 = vrcp.f32 %v1358_v62  ;;  %v5012_v62 = vld [vmem:[%s7277_s11] ss:$0 sm:$0xff] }
 0x47e   : > { %v1362_v9 = vpop.permute.xlu0 %1361 }
 0x485   : > { %v5828_v5 = vpop.eup %5827 }
 0x486   : > { %v1194_v6 = vmul.f32 %v5828_v5, %v5822_v54  ;;  %v5830_v7 = vpop.eup %5829 }
 0x487   : > { %v1360_v10 = vmul.f32 %v5830_v7, %v5820_v49  ;;  %v1569_v49 = vld [vmem:[#allocation5 + $0x18] sm:$0xff] }
 0x488   : > { %5310 = vmatmul.mubr.msk.f32.vlgmr.msra.gmra.mrb[8].mxu1 %vm776_vm2, %v1194_v6  ;;  %v5617_v50 = vpack.c.bf16 %v1569_v49, %v1568_v48 }
 0x489   : > { %5318 = vmatpush3.msra.mxu1 %v1362_v9  ;;  %5319 = vmatprep.mubr.msk.f32.mxu1 %vm6154_vm0, %v6155_v1  ;;  %v5013_v9 = vld [vmem:[#allocation7] ss:$0 sm:$0xff] }
 0x48a   : > { %5613 = vmatprep.subr.bf16.mxu1 %v6153_v0 }
 0x48c   : > { %5320 = vmatmul.mubr.msk.f32.vlgmr.msra.gmra.mrb[10].mxu1 %vm776_vm2, %v1360_v10 }
 0x48d   : > { %5341 = vmatprep.mubr.msk.f32.mxu1 %vm6154_vm0, %v6155_v1  ;;  %5615 = vmatpush3.bf16.msra.mxu1 %v5614_v47 }
 0x48e   : > { %5616 = vmatprep.subr.bf16.mxu1 %v6153_v0 }
 0x491   : > { %5618 = vmatpush3.bf16.msra.mxu1 %v5617_v50 }
 0x492   : > { %5355 = vmatprep.subr.mxu1 %v6155_v1 }
 0x526   : > { %v935_v14 = vpop.f32.mrb[4].mxu1 }
 0x527   : > { %v5291_v15 = vpop.f32.mrb[5].mxu1 }
 0x52a   : > { %v1101_v16 = vpop.f32.mrb[6].mxu1 }
 0x52b   : > { %1438 = vrot.lane.b32.xlu1 %v1101_v16, %s7228_s4  ;;  %v5301_v17 = vpop.f32.mrb[7].mxu1 }
 0x55b   : > { %v1267_v21 = vpop.f32.mrb[8].mxu1 }
 0x55c   : > { %1442 = vrot.lane.b32.xlu0 %v1267_v21, %s7226_s19  ;;  %v5311_v22 = vpop.f32.mrb[9].mxu1 }
 0x55f   : > { %v1433_v23 = vpop.f32.mrb[10].mxu1 }
 0x560   : > { %1446 = vrot.lane.b32.xlu1 %v1433_v23, %s7224_s20  ;;  %v5321_v24 = vpop.f32.mrb[11].mxu1  ;;  %s7281_s20 = sld [smem:[#allocation31_spill]] }
 0x59d   : > { %v1439_v25 = vpop.permute.xlu1 %1438 }
 0x59e   : > { %v1449_v27 = vsel %vm776_vm2, %v935_v14, %v1439_v25 }
 0x5ce   : > { %v1443_v26 = vpop.permute.xlu0 %1442 }
 0x5cf   : > { %v1451_v28 = vsel %vm1450_vm3, %v1449_v27, %v1443_v26 }
 0x5d2   : > { %v1447_v29 = vpop.permute.xlu1 %1446 }
 0x5d3   : > { %v1453_v30 = vsel %vm1452_vm4, %v1451_v28, %v1447_v29 }
 0x5d4   : > { %5331 = vmatmul.mubr.msk.f32.vlgmr.msra.gmra.mrb[6].mxu0 %vm694_vm1, %v1453_v30 }
 0x5d5   : > { %5352 = vmatprep.mubr.msk.f32.mxu0 %vm6154_vm0, %v6155_v1  ;;  %5621 = vmatpush3.bf16.msra.mxu0 %v5620_v41 }
 0x5d6   : > { %5622 = vmatprep.subr.bf16.mxu0 %v6153_v0 }
 0x5d9   : > { %5624 = vmatpush3.bf16.msra.mxu0 %v5623_v44 }
 0x5da   : > { %5365 = vmatprep.subr.mxu0 %v6155_v1 }
 0x6a7   : > { %v1529_v32 = vpop.f32.mrb[6].mxu0 }
 0x6a8   : > { %v1530_v33 = vadd.f32 %v5009_v31, %v1529_v32  ;;  %v5332_v34 = vpop.f32.mrb[7].mxu0 }
 0x6aa   : > { %v1533_v35 = vadd.f32 %v1530_v33, %v6551_v8  ;;  %v6662_v8 = vld [vmem:[%s6509_s23] sm:$0xff]  ;;  %s7278_s23 = smov 72  }
 0x6ab   : > { %5353 = vmatmul.mubr.msk.f32.vlgmr.msra.gmra.mrb[8].mxu0 %vm694_vm1, %v6662_v8 }
 0x6ac   : > { %v1536_v36 = vsel %vm694_vm1, %v1533_v35, 0.0  ;;  %v1541_v37 = vmul.f32 %v1533_v35, %v1533_v35  ;;  %5367 = vmatprep.mubr.msk.f32.mxu0 %vm6154_vm0, %v6155_v1 }
 0x6ad   : > { %1537 = vadd.xlane.f32.xlu0 %v1536_v36 }
 0x6ae   : > { %v1542_v38 = vsel %vm694_vm1, %v1541_v37, 0.0 }
 0x6af   : > { %1543 = vadd.xlane.f32.xlu1 %v1542_v38 }
 0x73a   : > { %v1538_v51 = vpop.xlane.xlu0 %1537 }
 0x73b   : > { %v1540_v52 = vmul.f32 0.03125, %v1538_v51 }
 0x73c   : > { %v1544_v53 = vpop.xlane.xlu1 %1543 }
 0x73d   : > { %v1546_v54 = vmul.f32 %v1540_v52, %v1540_v52  ;;  %v1545_v55 = vmul.f32 0.03125, %v1544_v53  ;;  %v1548_v58 = vsub.f32 %v1533_v35, %v1540_v52 }
 0x73f   : > { %v1547_v56 = vsub.f32 %v1545_v55, %v1546_v54 }
 0x741   : > { %v1549_v57 = vadd.f32 1e-05, %v1547_v56 }
 0x743   : > { %5831 = vrsqrt.f32 %v1549_v57 }
 0x74d   : > { %v5832_v59 = vpop.eup %5831 }
 0x74e   : > { %v1551_v61 = vmul.f32 %v5832_v59, %v1548_v58 }
 0x750   : > { %v1558_v63 = vmul.f32 %v5011_v60, %v1551_v61 }
 0x752   : > { %v6676_v2 = vadd.f32 %v5012_v62, %v1558_v63 }
 0x754   : > { %5342 = vmatmul.mubr.msk.f32.vlgmr.msra.gmra.mrb[12].mxu1 %vm694_vm1, %v6676_v2 }
 0x755   : > { %5357 = vmatprep.mubr.msk.f32.mxu1 %vm6154_vm0, %v6155_v1 }
 0x77e   : > { %v1730_v4 = vpop.f32.mrb[8].mxu0 }
 0x77f   : > { %v6682_v5 = vadd.f32 %v5015_v3, %v1730_v4  ;;  %v5354_v6 = vpop.f32.mrb[9].mxu0 }
 0x781   : > { %1907 = vrot.lane.b32.xlu0 %v6682_v5, %s7220_s15  ;;  %5356 = vmatpush3.xpose.msk.msra.mxu1 %vm776_vm2, %v6682_v5 }
 0x782   : > { %5360 = vmatprep.subr.mxu1 %v6155_v1 }
 0x785   : > { %2073 = vrot.lane.b32.xlu0 %v6682_v5, %s7216_s18 }
 0x789   : > { %2239 = vrot.lane.b32.xlu0 %v6682_v5, %s7214_s13 }
 0x7f3   : > { %v1908_v7 = vpop.permute.xlu0 %1907 }
 0x7f4   : > { %5366 = vmatpush3.xpose.msk.msra.mxu0 %vm776_vm2, %v1908_v7 }
 0x7f5   : > { %5375 = vmatprep.subr.mxu0 %v6155_v1 }
 0x7f7   : > { %v2074_v13 = vpop.permute.xlu0 %2073 }
 0x7fb   : > { %v2240_v16 = vpop.permute.xlu0 %2239 }
 0x827   : > { %v1646_v10 = vpop.f32.mrb[12].mxu1 }
 0x828   : > { %v1647_v11 = vadd.f32 %v5013_v9, %v1646_v10  ;;  %v5343_v12 = vpop.f32.mrb[13].mxu1 }
 0x829   : > { %v5017_v12 = vld [vmem:[%s7182_s8 + $0x20] sm:$0xff] }
 0x82a   : > { %1905 = vrot.lane.b32.xlu1 %v1647_v11, %s7220_s15  ;;  %5358 = vmatmul.mubr.msk.f32.vlgmr.msra.gmra.mrb[14].mxu1 %vm776_vm2, %v1647_v11  ;;  %s7283_s15 = sld [smem:[#allocation32_spill]] }
 0x82b   : > { %5362 = vmatprep.mubr.msk.f32.mxu1 %vm6154_vm0, %v6155_v1 }
 0x82e   : > { %2071 = vrot.lane.b32.xlu1 %v1647_v11, %s7216_s18  ;;  %s7280_s18 = smov 24  }
 0x832   : > { %2237 = vrot.lane.b32.xlu1 %v1647_v11, %s7214_s13  ;;  %s7289_s13 = smov 64  }
 0x89c   : > { %v1906_v14 = vpop.permute.xlu1 %1905 }
 0x89d   : > { %5368 = vmatmul.mubr.msk.f32.vlgmr.msra.gmra.mrb[10].mxu0 %vm776_vm2, %v1906_v14 }
 0x89e   : > { %5376 = vmatpush3.xpose.msk.msra.mxu0 %vm776_vm2, %v2074_v13  ;;  %5377 = vmatprep.mubr.msk.f32.mxu0 %vm6154_vm0, %v6155_v1  ;;  %v5018_v13 = vld [vmem:[%s7182_s8 + $0x28] sm:$0xff] }
 0x89f   : > { %5385 = vmatprep.subr.mxu0 %v6155_v1  ;;  %v5626_v14 = vpack.c.bf16 %v5018_v13, %v5017_v12 }
 0x8a0   : > { %v2072_v15 = vpop.permute.xlu1 %2071 }
 0x8a1   : > { %5378 = vmatmul.mubr.msk.f32.vlgmr.msra.gmra.mrb[12].mxu0 %vm776_vm2, %v2072_v15  ;;  %v5019_v15 = vld [vmem:[%s7182_s8 + $0x30] sm:$0xff] }
 0x8a2   : > { %5386 = vmatpush3.xpose.msk.msra.mxu0 %vm776_vm2, %v2240_v16  ;;  %5387 = vmatprep.mubr.msk.f32.mxu0 %vm6154_vm0, %v6155_v1  ;;  %v5020_v16 = vld [vmem:[%s7182_s8 + $0x38] sm:$0xff] }
 0x8a3   : > { %5625 = vmatprep.subr.bf16.mxu0 %v6153_v0 }
 0x8a4   : > { %v2238_v17 = vpop.permute.xlu1 %2237 }
 0x8a5   : > { %5388 = vmatmul.mubr.msk.f32.vlgmr.msra.gmra.mrb[14].mxu0 %vm776_vm2, %v2238_v17  ;;  %v5629_v17 = vpack.c.bf16 %v5020_v16, %v5019_v15 }
 0x8a6   : > { %5403 = vmatprep.mubr.msk.f32.mxu0 %vm6154_vm0, %v6155_v1  ;;  %5627 = vmatpush3.bf16.msra.mxu0 %v5626_v14  ;;  %v5042_v14 = vld [vmem:[%s7283_s15] ss:$0 sm:$0xff] }
 0x8a7   : > { %5628 = vmatprep.subr.bf16.mxu0 %v6153_v0 }
 0x8aa   : > { %5630 = vmatpush3.bf16.msra.mxu0 %v5629_v17 }
 0x8ab   : > { %5637 = vmatprep.subr.bf16.mxu0 %v6153_v0 }
 0x8fd   : > { %v1813_v18 = vpop.f32.mrb[14].mxu1 }
 0x8fe   : > { %v1817_v19 = vmul.f32 0.35355338, %v1813_v18  ;;  %v5359_v20 = vpop.f32.mrb[15].mxu1 }
 0x900   : > { %v1818_v21 = vsel %vm776_vm2, %v1817_v19, -inf }
 0x901   : > { %1819 = vmax.xlane.f32.xlu0 %v1818_v21 }
 0x970   : > { %v1979_v22 = vpop.f32.mrb[10].mxu0 }
 0x971   : > { %v1983_v23 = vmul.f32 0.35355338, %v1979_v22  ;;  %v5369_v24 = vpop.f32.mrb[11].mxu0 }
 0x973   : > { %v1984_v25 = vsel %vm776_vm2, %v1983_v23, -inf }
 0x974   : > { %1985 = vmax.xlane.f32.xlu1 %v1984_v25  ;;  %v2145_v26 = vpop.f32.mrb[12].mxu0 }
 0x975   : > { %v2149_v27 = vmul.f32 0.35355338, %v2145_v26  ;;  %v5379_v28 = vpop.f32.mrb[13].mxu0 }
 0x977   : > { %v2150_v29 = vsel %vm776_vm2, %v2149_v27, -inf }
 0x978   : > { %v2311_v30 = vpop.f32.mrb[14].mxu0  ;;  %2151 = vmax.xlane.f32.xlu0 %v2150_v29 }
 0x979   : > { %v2315_v31 = vmul.f32 0.35355338, %v2311_v30  ;;  %v5389_v32 = vpop.f32.mrb[15].mxu0  ;;  %v5034_v30 = vld [vmem:[%s7183_s9 + $0x1] ss:$0 sm:$0xff] }
 0x97b   : > { %v2316_v33 = vsel %vm776_vm2, %v2315_v31, -inf }
 0x97c   : > { %2317 = vmax.xlane.f32.xlu0 %v2316_v33 }
 0x985   : > { %1829 = vrot.lane.b32.xlu1 %v6682_v5, %s7222_s5  ;;  %s7286_s5 = smov 80  }
 0x98e   : > { %v1820_v34 = vpop.xlane.xlu0 %1819 }
 0x98f   : > { %v1821_v35 = vsub.f32 %v1817_v19, %v1820_v34 }
 0x991   : > { %v1822_v36 = vmul.f32 1.442695, %v1821_v35 }
 0x993   : > { %5833 = vpow2.f32 %v1822_v36 }
 0x99d   : > { %v5834_v37 = vpop.eup %5833 }
 0x99e   : > { %v1824_v38 = vsel %vm776_vm2, %v5834_v37, 0.0 }
 0x9a9   : > { %1825 = vadd.xlane.f32.xlu1 %v1824_v38  ;;  %v2531_v38 = vld [vmem:[#allocation11] sm:$0xff] }
 0xa01   : > { %v1986_v39 = vpop.xlane.xlu1 %1985 }
 0xa02   : > { %v1987_v40 = vsub.f32 %v1983_v23, %v1986_v39  ;;  %v2532_v39 = vld [vmem:[#allocation11 + $0x8] sm:$0xff] }
 0xa04   : > { %v1988_v41 = vmul.f32 1.442695, %v1987_v40  ;;  %v5632_v40 = vpack.c.bf16 %v2532_v39, %v2531_v38  ;;  %v5047_v39 = vld [vmem:[%s7277_s11 + $0x2] ss:$0 sm:$0xff] }
 0xa05   : > { %v1830_v42 = vpop.permute.xlu1 %1829  ;;  %v2152_v43 = vpop.xlane.xlu0 %2151 }
 0xa06   : > { %5835 = vpow2.f32 %v1988_v41  ;;  %v2153_v44 = vsub.f32 %v2149_v27, %v2152_v43  ;;  %5361 = vmatpush3.msra.mxu1 %v1830_v42  ;;  %v2533_v41 = vld [vmem:[#allocation11 + $0x10] sm:$0xff]  ;;  %v2534_v42 = vld [vmem:[#allocation11 + $0x18] sm:$0xff] }
 0xa07   : > { %5370 = vmatprep.subr.mxu1 %v6155_v1  ;;  %v5635_v43 = vpack.c.bf16 %v2534_v42, %v2533_v41  ;;  %v5053_v42 = vld [vmem:[%s7276_s3 + $0x1] ss:$0 sm:$0xff]  ;;  %s7293_s3 = smov 8  }
 0xa08   : > { %v2154_v45 = vmul.f32 1.442695, %v2153_v44  ;;  %v2617_v44 = vld [vmem:[%s7281_s20 + $0x8] sm:$0xff] }
 0xa09   : > { %v2318_v46 = vpop.xlane.xlu0 %2317 }
 0xa0a   : > { %5837 = vpow2.f32 %v2154_v45  ;;  %v2319_v47 = vsub.f32 %v2315_v31, %v2318_v46  ;;  %v2618_v45 = vld [vmem:[%s7281_s20 + $0x10] sm:$0xff] }
 0xa0c   : > { %v2320_v48 = vmul.f32 1.442695, %v2319_v47  ;;  %v2619_v47 = vld [vmem:[%s7281_s20 + $0x18] sm:$0xff] }
 0xa0e   : > { %5839 = vpow2.f32 %v2320_v48  ;;  %v5641_v48 = vpack.c.bf16 %v2619_v47, %v2618_v45 }
 0xa10   : > { %v5836_v49 = vpop.eup %5835 }
 0xa11   : > { %v1990_v50 = vsel %vm776_vm2, %v5836_v49, 0.0 }
 0xa12   : > { %1991 = vadd.xlane.f32.xlu0 %v1990_v50  ;;  %v2621_v50 = vld [vmem:[%s7281_s20 + $0x28] sm:$0xff] }
 0xa14   : > { %v5838_v51 = vpop.eup %5837 }
 0xa15   : > { %v2156_v52 = vsel %vm776_vm2, %v5838_v51, 0.0 }
 0xa16   : > { %2157 = vadd.xlane.f32.xlu1 %v2156_v52 }
 0xa18   : > { %v5840_v53 = vpop.eup %5839 }
 0xa19   : > { %v2322_v54 = vsel %vm776_vm2, %v5840_v53, 0.0 }
 0xa1a   : > { %2323 = vadd.xlane.f32.xlu0 %v2322_v54 }
 0xa27   : > { %2161 = vrot.lane.b32.xlu1 %v6682_v5, %s7218_s2  ;;  %s7287_s2 = smov 112  }
 0xa2b   : > { %2327 = vrot.lane.b32.xlu1 %v6682_v5, %s7278_s23 }
 0xa30   : > { %1995 = vrot.lane.b32.xlu0 %v6682_v5, %s7279_s26 }
 0xa36   : > { %v1826_v55 = vpop.xlane.xlu1 %1825 }
 0xa37   : > { %5841 = vrcp.f32 %v1826_v55 }
 0xa41   : > { %v5842_v56 = vpop.eup %5841 }
 0xa42   : > { %v1828_v57 = vmul.f32 %v5842_v56, %v5834_v37 }
 0xa44   : > { %5363 = vmatmul.mubr.msk.f32.vlgmr.msra.gmra.mrb[16].mxu1 %vm776_vm2, %v1828_v57 }
 0xa45   : > { %5372 = vmatprep.mubr.msk.f32.mxu1 %vm6154_vm0, %v6155_v1 }
 0xa9f   : > { %v1992_v58 = vpop.xlane.xlu0 %1991 }
 0xaa0   : > { %5843 = vrcp.f32 %v1992_v58 }
 0xaa3   : > { %v2158_v59 = vpop.xlane.xlu1 %2157 }
 0xaa4   : > { %5845 = vrcp.f32 %v2158_v59 }
 0xaa7   : > { %v2324_v60 = vpop.xlane.xlu0 %2323  ;;  %v2162_v63 = vpop.permute.xlu1 %2161 }
 0xaa8   : > { %5847 = vrcp.f32 %v2324_v60 }
 0xaaa   : > { %v5844_v61 = vpop.eup %5843 }
 0xaab   : > { %v1994_v62 = vmul.f32 %v5844_v61, %v5836_v49  ;;  %v1996_v3 = vpop.permute.xlu0 %1995  ;;  %v2328_v6 = vpop.permute.xlu1 %2327  ;;  %v2620_v49 = vld [vmem:[%s7281_s20 + $0x20] sm:$0xff] }
 0xaac   : > { %5371 = vmatpush3.msra.mxu1 %v1996_v3  ;;  %v5038_v61 = vld [vmem:[%s7188_s14 + $0x1] ss:$0 sm:$0xff] }
 0xaad   : > { %5373 = vmatmul.mubr.msk.f32.vlgmr.msra.gmra.mrb[18].mxu1 %vm776_vm2, %v1994_v62  ;;  %5380 = vmatprep.subr.mxu1 %v6155_v1 }
 0xaae   : > { %v5846_v4 = vpop.eup %5845  ;;  %5381 = vmatpush3.msra.mxu1 %v2162_v63  ;;  %5382 = vmatprep.mubr.msk.f32.mxu1 %vm6154_vm0, %v6155_v1  ;;  %v5039_v63 = vld [vmem:[%s7277_s11 + $0x1] ss:$0 sm:$0xff] }
 0xaaf   : > { %v2160_v5 = vmul.f32 %v5846_v4, %v5838_v51  ;;  %5390 = vmatprep.subr.mxu1 %v6155_v1  ;;  %v5644_v51 = vpack.c.bf16 %v2621_v50, %v2620_v49 }
 0xab1   : > { %5383 = vmatmul.mubr.msk.f32.vlgmr.msra.gmra.mrb[20].mxu1 %vm776_vm2, %v2160_v5  ;;  %v2622_v5 = vld [vmem:[%s7281_s20 + $0x30] sm:$0xff] }
 0xab2   : > { %v5848_v7 = vpop.eup %5847  ;;  %5391 = vmatpush3.msra.mxu1 %v2328_v6  ;;  %5392 = vmatprep.mubr.msk.f32.mxu1 %vm6154_vm0, %v6155_v1  ;;  %v2623_v6 = vld [vmem:[%s7281_s20 + $0x38] sm:$0xff] }
 0xab3   : > { %v2326_v9 = vmul.f32 %v5848_v7, %v5840_v53  ;;  %5631 = vmatprep.subr.bf16.mxu1 %v6153_v0  ;;  %v5647_v7 = vpack.c.bf16 %v2623_v6, %v2622_v5 }
 0xab5   : > { %5393 = vmatmul.mubr.msk.f32.vlgmr.msra.gmra.mrb[22].mxu1 %vm776_vm2, %v2326_v9 }
 0xab6   : > { %5414 = vmatprep.mubr.msk.f32.mxu1 %vm6154_vm0, %v6155_v1  ;;  %5633 = vmatpush3.bf16.msra.mxu1 %v5632_v40 }
 0xab7   : > { %5634 = vmatprep.subr.bf16.mxu1 %v6153_v0 }
 0xaba   : > { %5636 = vmatpush3.bf16.msra.mxu1 %v5635_v43 }
 0xabb   : > { %5649 = vmatprep.subr.bf16.mxu1 %v6153_v0 }
 0xb17   : > { %v1901_v10 = vpop.f32.mrb[16].mxu1 }
 0xb18   : > { %v5364_v11 = vpop.f32.mrb[17].mxu1 }
 0xb80   : > { %v2067_v18 = vpop.f32.mrb[18].mxu1 }
 0xb81   : > { %2404 = vrot.lane.b32.xlu0 %v2067_v18, %s7228_s4  ;;  %v5374_v19 = vpop.f32.mrb[19].mxu1  ;;  %s7282_s4 = sld [smem:[#allocation30_spill]] }
 0xb84   : > { %v2233_v20 = vpop.f32.mrb[20].mxu1 }
 0xb85   : > { %2408 = vrot.lane.b32.xlu1 %v2233_v20, %s7226_s19  ;;  %v5384_v21 = vpop.f32.mrb[21].mxu1  ;;  %s7284_s19 = smov 96  }
 0xb87   : > { %v5040_v9 = vld [vmem:[%s7282_s4] ss:$0 sm:$0xff] }
 0xb88   : > { %v2399_v22 = vpop.f32.mrb[22].mxu1 }
 0xb89   : > { %2412 = vrot.lane.b32.xlu0 %v2399_v22, %s7280_s18  ;;  %v5394_v23 = vpop.f32.mrb[23].mxu1  ;;  %v5048_v22 = vld [vmem:[%s7274_s25 + $0x20] sm:$0xff] }
 0xb8a   : > { %v5049_v23 = vld [vmem:[%s7274_s25 + $0x28] sm:$0xff] }
 0xbf3   : > { %v2405_v24 = vpop.permute.xlu0 %2404 }
 0xbf4   : > { %v2415_v26 = vsel %vm776_vm2, %v1901_v10, %v2405_v24  ;;  %v5650_v24 = vpack.c.bf16 %v5049_v23, %v5048_v22 }
 0xbf7   : > { %v2409_v25 = vpop.permute.xlu1 %2408 }
 0xbf8   : > { %v2416_v27 = vsel %vm1450_vm3, %v2415_v26, %v2409_v25  ;;  %v5050_v25 = vld [vmem:[%s7274_s25 + $0x30] sm:$0xff]  ;;  %v5051_v26 = vld [vmem:[%s7274_s25 + $0x38] sm:$0xff]  ;;  %s7297_s25 = sshll.u32 %s6503_s24, 3 }
 0xbfb   : > { %v2413_v28 = vpop.permute.xlu0 %2412 }
 0xbfc   : > { %v2417_v29 = vsel %vm1452_vm4, %v2416_v27, %v2413_v28  ;;  %v5653_v27 = vpack.c.bf16 %v5051_v26, %v5050_v25 }
 0xbfd   : > { %5404 = vmatmul.mubr.msk.f32.vlgmr.msra.gmra.mrb[16].mxu0 %vm694_vm1, %v2417_v29 }
 0xbfe   : > { %5433 = vmatprep.mubr.msk.f32.mxu0 %vm6154_vm0, %v6155_v1 }
 0xcd0   : > { %v2493_v31 = vpop.f32.mrb[16].mxu0 }
 0xcd1   : > { %v2494_v32 = vadd.f32 %v5034_v30, %v2493_v31  ;;  %v5405_v33 = vpop.f32.mrb[17].mxu0 }
 0xcd3   : > { %v2497_v34 = vadd.f32 %v2494_v32, %v6676_v2  ;;  %v2616_v2 = vld [vmem:[%s7281_s20] sm:$0xff] }
 0xcd4   : > { %v5638_v46 = vpack.c.bf16 %v2617_v44, %v2616_v2 }
 0xcd5   : > { %v2502_v35 = vsel %vm694_vm1, %v2497_v34, 0.0  ;;  %v2506_v36 = vmul.f32 %v2497_v34, %v2497_v34 }
 0xcd6   : > { %2503 = vadd.xlane.f32.xlu1 %v2502_v35  ;;  %5639 = vmatpush3.bf16.msra.mxu0 %v5638_v46 }
 0xcd7   : > { %v2507_v37 = vsel %vm694_vm1, %v2506_v36, 0.0  ;;  %5640 = vmatprep.subr.bf16.mxu0 %v6153_v0 }
 0xcd8   : > { %2508 = vadd.xlane.f32.xlu0 %v2507_v37  ;;  %v5046_v37 = vld [vmem:[%s7188_s14 + $0x2] ss:$0 sm:$0xff] }
 0xcda   : > { %5642 = vmatpush3.bf16.msra.mxu0 %v5641_v48 }
 0xcdb   : > { %5643 = vmatprep.subr.bf16.mxu0 %v6153_v0 }
 0xcde   : > { %5645 = vmatpush3.bf16.msra.mxu0 %v5644_v51 }
 0xcdf   : > { %5646 = vmatprep.subr.bf16.mxu0 %v6153_v0 }
 0xce2   : > { %5648 = vmatpush3.bf16.msra.mxu0 %v5647_v7 }
 0xce3   : > { %5457 = vmatprep.subr.mxu0 %v6155_v1 }
 0xd63   : > { %v2504_v52 = vpop.xlane.xlu1 %2503 }
 0xd64   : > { %v2505_v53 = vmul.f32 0.03125, %v2504_v52 }
 0xd65   : > { %v2509_v54 = vpop.xlane.xlu0 %2508 }
 0xd66   : > { %v2511_v55 = vmul.f32 %v2505_v53, %v2505_v53  ;;  %v2510_v56 = vmul.f32 0.03125, %v2509_v54  ;;  %v2513_v59 = vsub.f32 %v2497_v34, %v2505_v53 }
 0xd68   : > { %v2512_v57 = vsub.f32 %v2510_v56, %v2511_v55 }
 0xd6a   : > { %v2514_v58 = vadd.f32 1e-05, %v2512_v57 }
 0xd6c   : > { %5849 = vrsqrt.f32 %v2514_v58 }
 0xd76   : > { %v5850_v60 = vpop.eup %5849 }
 0xd77   : > { %v2516_v62 = vmul.f32 %v5850_v60, %v2513_v59 }
 0xd79   : > { %v2523_v3 = vmul.f32 %v5038_v61, %v2516_v62 }
 0xd7b   : > { %v2530_v4 = vadd.f32 %v5039_v63, %v2523_v3 }
 0xd7d   : > { %5415 = vmatmul.mubr.msk.f32.vlgmr.msra.gmra.mrb[24].mxu1 %vm694_vm1, %v2530_v4 }
 0xd7e   : > { %5444 = vmatprep.mubr.msk.f32.mxu1 %vm6154_vm0, %v6155_v1  ;;  %5651 = vmatpush3.bf16.msra.mxu1 %v5650_v24 }
 0xd7f   : > { %5652 = vmatprep.subr.bf16.mxu1 %v6153_v0 }
 0xd82   : > { %5654 = vmatpush3.bf16.msra.mxu1 %v5653_v27 }
 0xd83   : > { %5447 = vmatprep.subr.mxu1 %v6155_v1 }
 0xe50   : > { %v2611_v10 = vpop.f32.mrb[24].mxu1 }
 0xe51   : > { %v2612_v11 = vadd.f32 %v5040_v9, %v2611_v10  ;;  %v5416_v12 = vpop.f32.mrb[25].mxu1 }
 0xe53   : > { %v2615_v13 = vmax.f32 %v2612_v11, 0.0 }
 0xe55   : > { %5434 = vmatmul.mubr.msk.f32.vlgmr.msra.gmra.mrb[18].mxu0 %vm2631_vm5, %v2615_v13 }
 0xe56   : > { %5459 = vmatprep.mubr.msk.f32.mxu0 %vm6154_vm0, %v6155_v1 }
 0xf28   : > { %v2701_v15 = vpop.f32.mrb[18].mxu0 }
 0xf29   : > { %v2702_v16 = vadd.f32 %v5042_v14, %v2701_v15  ;;  %v5435_v17 = vpop.f32.mrb[19].mxu0 }
 0xf2b   : > { %v2705_v18 = vadd.f32 %v2702_v16, %v2530_v4 }
 0xf2d   : > { %v2710_v19 = vsel %vm694_vm1, %v2705_v18, 0.0  ;;  %v2714_v20 = vmul.f32 %v2705_v18, %v2705_v18 }
 0xf2e   : > { %2711 = vadd.xlane.f32.xlu0 %v2710_v19 }
 0xf2f   : > { %v2715_v21 = vsel %vm694_vm1, %v2714_v20, 0.0 }
 0xf30   : > { %2716 = vadd.xlane.f32.xlu1 %v2715_v21 }
 0xfbb   : > { %v2712_v28 = vpop.xlane.xlu0 %2711 }
 0xfbc   : > { %v2713_v29 = vmul.f32 0.03125, %v2712_v28 }
 0xfbd   : > { %v2717_v30 = vpop.xlane.xlu1 %2716 }
 0xfbe   : > { %v2719_v31 = vmul.f32 %v2713_v29, %v2713_v29  ;;  %v2718_v32 = vmul.f32 0.03125, %v2717_v30  ;;  %v2721_v35 = vsub.f32 %v2705_v18, %v2713_v29 }
 0xfc0   : > { %v2720_v33 = vsub.f32 %v2718_v32, %v2719_v31 }
 0xfc2   : > { %v2722_v34 = vadd.f32 1e-05, %v2720_v33 }
 0xfc4   : > { %5851 = vrsqrt.f32 %v2722_v34 }
 0xfce   : > { %v5852_v36 = vpop.eup %5851 }
 0xfcf   : > { %v2724_v38 = vmul.f32 %v5852_v36, %v2721_v35 }
 0xfd1   : > { %v2731_v40 = vmul.f32 %v5046_v37, %v2724_v38 }
 0xfd3   : > { %v6845_v41 = vadd.f32 %v5047_v39, %v2731_v40 }
 0xfd5   : > { %5445 = vmatmul.mubr.msk.f32.vlgmr.msra.gmra.mrb[26].mxu1 %vm694_vm1, %v6845_v41 }
 0xfd6   : > { %5449 = vmatprep.mubr.msk.f32.mxu1 %vm6154_vm0, %v6155_v1 }
0x10a8   : > { %v2821_v43 = vpop.f32.mrb[26].mxu1 }
0x10a9   : > { %v6854_v2 = vadd.f32 %v5053_v42, %v2821_v43  ;;  %v5446_v44 = vpop.f32.mrb[27].mxu1 }
0x10aa   : > { %v5055_v44 = vld [vmem:[%s7182_s8 + $0x40] sm:$0xff] }
0x10ab   : > { %2999 = vrot.lane.b32.xlu1 %v6854_v2, %s7279_s26  ;;  %2833 = vrot.lane.b32.xlu0 %v6854_v2, %s7284_s19 }
0x10af   : > { %2997 = vrot.lane.b32.xlu1 %v6854_v2, %s7285_s6  ;;  %3165 = vrot.lane.b32.xlu0 %v6854_v2, %s7286_s5 }
0x10b3   : > { %3163 = vrot.lane.b32.xlu1 %v6854_v2, %s7287_s2  ;;  %3331 = vrot.lane.b32.xlu0 %v6854_v2, %s7278_s23 }
0x10b7   : > { %3329 = vrot.lane.b32.xlu1 %v6854_v2, %s7288_s10 }
0x111d   : > { %v3000_v45 = vpop.permute.xlu1 %2999  ;;  %v2834_v46 = vpop.permute.xlu0 %2833 }
0x111e   : > { %5448 = vmatpush3.xpose.msk.msra.mxu1 %vm776_vm2, %v2834_v46  ;;  %5458 = vmatpush3.xpose.msk.msra.mxu0 %vm776_vm2, %v3000_v45  ;;  %v5056_v45 = vld [vmem:[%s7182_s8 + $0x48] sm:$0xff] }
0x111f   : > { %5467 = vmatprep.subr.mxu0 %v6155_v1  ;;  %5452 = vmatprep.subr.mxu1 %v6155_v1  ;;  %v5656_v46 = vpack.c.bf16 %v5056_v45, %v5055_v44 }
0x1121   : > { %v2998_v47 = vpop.permute.xlu1 %2997  ;;  %5450 = vmatmul.mubr.msk.f32.vlgmr.msra.gmra.mrb[28].mxu1 %vm776_vm2, %v6854_v2  ;;  %v3166_v48 = vpop.permute.xlu0 %3165 }
0x1122   : > { %5460 = vmatmul.mubr.msk.f32.vlgmr.msra.gmra.mrb[20].mxu0 %vm776_vm2, %v2998_v47  ;;  %5454 = vmatprep.mubr.msk.f32.mxu1 %vm6154_vm0, %v6155_v1  ;;  %v5057_v47 = vld [vmem:[%s7182_s8 + $0x50] sm:$0xff] }
0x1123   : > { %5468 = vmatpush3.xpose.msk.msra.mxu0 %vm776_vm2, %v3166_v48  ;;  %5469 = vmatprep.mubr.msk.f32.mxu0 %vm6154_vm0, %v6155_v1  ;;  %v5058_v48 = vld [vmem:[%s7182_s8 + $0x58] sm:$0xff] }
0x1124   : > { %5477 = vmatprep.subr.mxu0 %v6155_v1 }
0x1125   : > { %v3164_v49 = vpop.permute.xlu1 %3163  ;;  %v3332_v50 = vpop.permute.xlu0 %3331 }
0x1126   : > { %5470 = vmatmul.mubr.msk.f32.vlgmr.msra.gmra.mrb[22].mxu0 %vm776_vm2, %v3164_v49  ;;  %v5659_v49 = vpack.c.bf16 %v5058_v48, %v5057_v47 }
0x1127   : > { %5478 = vmatpush3.xpose.msk.msra.mxu0 %vm776_vm2, %v3332_v50  ;;  %5479 = vmatprep.mubr.msk.f32.mxu0 %vm6154_vm0, %v6155_v1 }
0x1128   : > { %5655 = vmatprep.subr.bf16.mxu0 %v6153_v0 }
0x1129   : > { %v3330_v51 = vpop.permute.xlu1 %3329 }
0x112a   : > { %5480 = vmatmul.mubr.msk.f32.vlgmr.msra.gmra.mrb[24].mxu0 %vm776_vm2, %v3330_v51 }
0x112b   : > { %5495 = vmatprep.mubr.msk.f32.mxu0 %vm6154_vm0, %v6155_v1  ;;  %5657 = vmatpush3.bf16.msra.mxu0 %v5656_v46 }
0x112c   : > { %5658 = vmatprep.subr.bf16.mxu0 %v6153_v0 }
0x112f   : > { %5660 = vmatpush3.bf16.msra.mxu0 %v5659_v49 }
0x1130   : > { %5667 = vmatprep.subr.bf16.mxu0 %v6153_v0 }
0x11f4   : > { %v2905_v52 = vpop.f32.mrb[28].mxu1 }
0x11f5   : > { %v2909_v53 = vmul.f32 0.35355338, %v2905_v52  ;;  %v5451_v54 = vpop.f32.mrb[29].mxu1  ;;  %v3071_v55 = vpop.f32.mrb[20].mxu0 }
0x11f6   : > { %v3075_v56 = vmul.f32 0.35355338, %v3071_v55  ;;  %v5461_v57 = vpop.f32.mrb[21].mxu0 }
0x11f7   : > { %v2910_v58 = vsel %vm776_vm2, %v2909_v53, -inf }
0x11f8   : > { %2911 = vmax.xlane.f32.xlu0 %v2910_v58  ;;  %v3076_v59 = vsel %vm776_vm2, %v3075_v56, -inf }
0x11f9   : > { %3077 = vmax.xlane.f32.xlu1 %v3076_v59  ;;  %v3237_v60 = vpop.f32.mrb[22].mxu0 }
0x11fa   : > { %v3241_v61 = vmul.f32 0.35355338, %v3237_v60  ;;  %v5471_v62 = vpop.f32.mrb[23].mxu0 }
0x11fc   : > { %v3242_v63 = vsel %vm776_vm2, %v3241_v61, -inf }
0x11fd   : > { %v3403_v3 = vpop.f32.mrb[24].mxu0  ;;  %3243 = vmax.xlane.f32.xlu0 %v3242_v63 }
0x11fe   : > { %v3407_v4 = vmul.f32 0.35355338, %v3403_v3  ;;  %v5481_v5 = vpop.f32.mrb[25].mxu0  ;;  %v5072_v3 = vld [vmem:[%s7183_s9 + $0x2] ss:$0 sm:$0xff] }
0x1200   : > { %v3408_v6 = vsel %vm776_vm2, %v3407_v4, -inf }
0x1201   : > { %3409 = vmax.xlane.f32.xlu0 %v3408_v6 }
0x120a   : > { %2921 = vrot.lane.b32.xlu1 %v6854_v2, %s7289_s13  ;;  %s7292_s13 = smov 56  }
0x1285   : > { %v2912_v7 = vpop.xlane.xlu0 %2911 }
0x1286   : > { %v2913_v9 = vsub.f32 %v2909_v53, %v2912_v7  ;;  %v3078_v10 = vpop.xlane.xlu1 %3077 }
0x1287   : > { %v3079_v11 = vsub.f32 %v3075_v56, %v3078_v10 }
0x1288   : > { %v2914_v12 = vmul.f32 1.442695, %v2913_v9 }
0x1289   : > { %v3080_v13 = vmul.f32 1.442695, %v3079_v11 }
0x128a   : > { %5853 = vpow2.f32 %v2914_v12  ;;  %v2922_v14 = vpop.permute.xlu1 %2921  ;;  %v3244_v15 = vpop.xlane.xlu0 %3243  ;;  %v3710_v12 = vld [vmem:[#allocation8 + $0x20] sm:$0xff] }
0x128b   : > { %5855 = vpow2.f32 %v3080_v13  ;;  %v3245_v16 = vsub.f32 %v3241_v61, %v3244_v15  ;;  %5453 = vmatpush3.msra.mxu1 %v2922_v14  ;;  %v3711_v13 = vld [vmem:[#allocation8 + $0x28] sm:$0xff]  ;;  %v3624_v15 = vld [vmem:[#allocation5 + $0x20] sm:$0xff] }
0x128c   : > { %5462 = vmatprep.subr.mxu1 %v6155_v1  ;;  %v5668_v14 = vpack.c.bf16 %v3711_v13, %v3710_v12 }
0x128d   : > { %v3246_v17 = vmul.f32 1.442695, %v3245_v16  ;;  %v3625_v16 = vld [vmem:[#allocation5 + $0x28] sm:$0xff] }
0x128e   : > { %v3410_v18 = vpop.xlane.xlu0 %3409 }
0x128f   : > { %5857 = vpow2.f32 %v3246_v17  ;;  %v3411_v19 = vsub.f32 %v3407_v4, %v3410_v18  ;;  %v3712_v17 = vld [vmem:[#allocation8 + $0x30] sm:$0xff]  ;;  %v5662_v18 = vpack.c.bf16 %v3625_v16, %v3624_v15 }
0x1291   : > { %v3412_v20 = vmul.f32 1.442695, %v3411_v19  ;;  %v3713_v19 = vld [vmem:[#allocation8 + $0x38] sm:$0xff] }
0x1293   : > { %5859 = vpow2.f32 %v3412_v20  ;;  %v5671_v20 = vpack.c.bf16 %v3713_v19, %v3712_v17 }
0x1294   : > { %v5854_v21 = vpop.eup %5853 }
0x1295   : > { %v5856_v22 = vpop.eup %5855  ;;  %v2916_v23 = vsel %vm776_vm2, %v5854_v21, 0.0 }
0x1296   : > { %2917 = vadd.xlane.f32.xlu1 %v2916_v23  ;;  %v3082_v24 = vsel %vm776_vm2, %v5856_v22, 0.0 }
0x1297   : > { %3083 = vadd.xlane.f32.xlu0 %v3082_v24 }
0x1299   : > { %v5858_v25 = vpop.eup %5857 }
0x129a   : > { %v3248_v26 = vsel %vm776_vm2, %v5858_v25, 0.0 }
0x129b   : > { %3249 = vadd.xlane.f32.xlu1 %v3248_v26 }
0x129d   : > { %v5860_v27 = vpop.eup %5859 }
0x129e   : > { %v3414_v28 = vsel %vm776_vm2, %v5860_v27, 0.0 }
0x129f   : > { %3415 = vadd.xlane.f32.xlu0 %v3414_v28 }
0x12ac   : > { %3253 = vrot.lane.b32.xlu1 %v6854_v2, %s7290_s22  ;;  %s7294_s22 = smov 16  }
0x12b0   : > { %3419 = vrot.lane.b32.xlu1 %v6854_v2, %s7291_s7  ;;  %s676_s7 = scalar_lea.vmem [#allocation13], %s7297_s25 }
0x12b5   : > { %3087 = vrot.lane.b32.xlu0 %v6854_v2, %s7292_s13  ;;  %s4846_s13 = sshll.u32 %s676_s7, 4  ;;  %s7131_s13 = int_to_ptr.vmem [resolvable:$true] %s4846_s13 }
0x1323   : > { %v2918_v29 = vpop.xlane.xlu1 %2917 }
0x1324   : > { %5861 = vrcp.f32 %v2918_v29  ;;  %v3084_v30 = vpop.xlane.xlu0 %3083 }
0x1325   : > { %5863 = vrcp.f32 %v3084_v30 }
0x1328   : > { %v3250_v31 = vpop.xlane.xlu1 %3249 }
0x1329   : > { %5865 = vrcp.f32 %v3250_v31 }
0x132c   : > { %v3416_v32 = vpop.xlane.xlu0 %3415  ;;  %v3254_v38 = vpop.permute.xlu1 %3253 }
0x132d   : > { %5867 = vrcp.f32 %v3416_v32 }
0x132e   : > { %v5862_v33 = vpop.eup %5861 }
0x132f   : > { %v2920_v34 = vmul.f32 %v5862_v33, %v5854_v21  ;;  %v5864_v35 = vpop.eup %5863  ;;  %v3627_v21 = vld [vmem:[#allocation5 + $0x38] sm:$0xff]  ;;  %v5077_v33 = vld [vmem:[%s7277_s11 + $0x3] ss:$0 sm:$0xff] }
0x1330   : > { %v3088_v36 = vpop.permute.xlu0 %3087  ;;  %v3086_v37 = vmul.f32 %v5864_v35, %v5856_v22  ;;  %v3420_v43 = vpop.permute.xlu1 %3419 }
0x1331   : > { %5455 = vmatmul.mubr.msk.f32.vlgmr.msra.gmra.mrb[30].mxu1 %vm776_vm2, %v2920_v34 }
0x1332   : > { %5463 = vmatpush3.msra.mxu1 %v3088_v36  ;;  %5464 = vmatprep.mubr.msk.f32.mxu1 %vm6154_vm0, %v6155_v1  ;;  %v5080_v36 = vld [vmem:[#allocation10 + $0x1] ss:$0 sm:$0xff] }
0x1333   : > { %5472 = vmatprep.subr.mxu1 %v6155_v1  ;;  %v5866_v39 = vpop.eup %5865 }
0x1334   : > { %v3252_v40 = vmul.f32 %v5866_v39, %v5858_v25 }
0x1335   : > { %5465 = vmatmul.mubr.msk.f32.vlgmr.msra.gmra.mrb[32].mxu1 %vm776_vm2, %v3086_v37 }
0x1336   : > { %5473 = vmatpush3.msra.mxu1 %v3254_v38  ;;  %5474 = vmatprep.mubr.msk.f32.mxu1 %vm6154_vm0, %v6155_v1 }
0x1337   : > { %5482 = vmatprep.subr.mxu1 %v6155_v1  ;;  %v5868_v42 = vpop.eup %5867 }
0x1338   : > { %v3418_v2 = vmul.f32 %v5868_v42, %v5860_v27  ;;  %v5078_v42 = vld [vmem:[#allocation7 + $0x1] ss:$0 sm:$0xff] }
0x1339   : > { %5475 = vmatmul.mubr.msk.f32.vlgmr.msra.gmra.mrb[34].mxu1 %vm776_vm2, %v3252_v40 }
0x133a   : > { %5483 = vmatpush3.msra.mxu1 %v3420_v43  ;;  %5484 = vmatprep.mubr.msk.f32.mxu1 %vm6154_vm0, %v6155_v1 }
0x133b   : > { %5661 = vmatprep.subr.bf16.mxu1 %v6153_v0 }
0x133d   : > { %5485 = vmatmul.mubr.msk.f32.vlgmr.msra.gmra.mrb[36].mxu1 %vm776_vm2, %v3418_v2 }
0x133e   : > { %5506 = vmatprep.mubr.msk.f32.mxu1 %vm6154_vm0, %v6155_v1  ;;  %5663 = vmatpush3.bf16.msra.mxu1 %v5662_v18 }
0x133f   : > { %5664 = vmatprep.subr.bf16.mxu1 %v6153_v0 }
0x1404   : > { %v2993_v50 = vpop.f32.mrb[30].mxu1 }
0x1405   : > { %v5456_v51 = vpop.f32.mrb[31].mxu1 }
0x1408   : > { %v3159_v52 = vpop.f32.mrb[32].mxu1 }
0x1409   : > { %3496 = vrot.lane.b32.xlu0 %v3159_v52, %s7293_s3  ;;  %v5466_v53 = vpop.f32.mrb[33].mxu1 }
0x140c   : > { %v3325_v54 = vpop.f32.mrb[34].mxu1 }
0x140d   : > { %3500 = vrot.lane.b32.xlu1 %v3325_v54, %s7294_s22  ;;  %v5476_v55 = vpop.f32.mrb[35].mxu1 }
0x1410   : > { %v3491_v56 = vpop.f32.mrb[36].mxu1 }
0x1411   : > { %3504 = vrot.lane.b32.xlu0 %v3491_v56, %s7280_s18  ;;  %v5486_v57 = vpop.f32.mrb[37].mxu1 }
0x147b   : > { %v3497_v58 = vpop.permute.xlu0 %3496 }
0x147c   : > { %v3507_v60 = vsel %vm776_vm2, %v2993_v50, %v3497_v58 }
0x147f   : > { %v3501_v59 = vpop.permute.xlu1 %3500 }
0x1480   : > { %v3508_v61 = vsel %vm1450_vm3, %v3507_v60, %v3501_v59 }
0x1483   : > { %v3505_v62 = vpop.permute.xlu0 %3504 }
0x1484   : > { %v3509_v63 = vsel %vm1452_vm4, %v3508_v61, %v3505_v62 }
0x1485   : > { %5496 = vmatmul.mubr.msk.f32.vlgmr.msra.gmra.mrb[26].mxu0 %vm694_vm1, %v3509_v63 }
0x1486   : > { %5517 = vmatprep.mubr.msk.f32.mxu0 %vm6154_vm0, %v6155_v1  ;;  %5669 = vmatpush3.bf16.msra.mxu0 %v5668_v14 }
0x1487   : > { %5670 = vmatprep.subr.bf16.mxu0 %v6153_v0 }
0x148a   : > { %5672 = vmatpush3.bf16.msra.mxu0 %v5671_v20 }
0x148b   : > { %5530 = vmatprep.subr.mxu0 %v6155_v1 }
0x148d   : > { %5518 = vmatmul.mubr.msk.f32.vlgmr.msra.gmra.mrb[28].mxu0 %vm694_vm1, %v6662_v8  ;;  %v5076_v8 = vld [vmem:[%s7188_s14 + $0x3] ss:$0 sm:$0xff] }
0x148e   : > { %5532 = vmatprep.mubr.msk.f32.mxu0 %vm6154_vm0, %v6155_v1 }
0x1558   : > { %v3585_v4 = vpop.f32.mrb[26].mxu0 }
0x1559   : > { %v3586_v5 = vadd.f32 %v5072_v3, %v3585_v4  ;;  %v5497_v6 = vpop.f32.mrb[27].mxu0 }
0x155b   : > { %v3589_v7 = vadd.f32 %v3586_v5, %v6845_v41  ;;  %v3626_v41 = vld [vmem:[#allocation5 + $0x30] sm:$0xff] }
0x155c   : > { %v5665_v22 = vpack.c.bf16 %v3627_v21, %v3626_v41 }
0x155d   : > { %v3594_v9 = vsel %vm694_vm1, %v3589_v7, 0.0  ;;  %v3598_v10 = vmul.f32 %v3589_v7, %v3589_v7 }
0x155e   : > { %3595 = vadd.xlane.f32.xlu1 %v3594_v9  ;;  %5666 = vmatpush3.bf16.msra.mxu1 %v5665_v22 }
0x155f   : > { %v3599_v11 = vsel %vm694_vm1, %v3598_v10, 0.0  ;;  %5520 = vmatprep.subr.mxu1 %v6155_v1 }
0x1560   : > { %3600 = vadd.xlane.f32.xlu0 %v3599_v11  ;;  %v3788_v37 = vpop.f32.mrb[28].mxu0 }
0x1561   : > { %v6972_v38 = vadd.f32 %v5080_v36, %v3788_v37  ;;  %v5519_v39 = vpop.f32.mrb[29].mxu0 }
0x1576   : > { %3965 = vrot.lane.b32.xlu0 %v6972_v38, %s7285_s6 }
0x15eb   : > { %v3596_v23 = vpop.xlane.xlu1 %3595 }
0x15ec   : > { %v3597_v24 = vmul.f32 0.03125, %v3596_v23 }
0x15ed   : > { %v3601_v25 = vpop.xlane.xlu0 %3600 }
0x15ee   : > { %v3603_v26 = vmul.f32 %v3597_v24, %v3597_v24  ;;  %v3602_v27 = vmul.f32 0.03125, %v3601_v25  ;;  %v3605_v30 = vsub.f32 %v3589_v7, %v3597_v24 }
0x15f0   : > { %v3604_v28 = vsub.f32 %v3602_v27, %v3603_v26 }
0x15f1   : > { %v3966_v40 = vpop.permute.xlu0 %3965 }
0x15f2   : > { %v3606_v29 = vadd.f32 1e-05, %v3604_v28  ;;  %5531 = vmatpush3.xpose.msk.msra.mxu0 %vm776_vm2, %v3966_v40 }
0x15f3   : > { %5540 = vmatprep.subr.mxu0 %v6155_v1 }
0x15f4   : > { %5869 = vrsqrt.f32 %v3606_v29 }
0x15fe   : > { %v5870_v31 = vpop.eup %5869 }
0x15ff   : > { %v3608_v32 = vmul.f32 %v5870_v31, %v3605_v30 }
0x1601   : > { %v3615_v34 = vmul.f32 %v5076_v8, %v3608_v32 }
0x1603   : > { %v6966_v35 = vadd.f32 %v5077_v33, %v3615_v34 }
0x1605   : > { %5507 = vmatmul.mubr.msk.f32.vlgmr.msra.gmra.mrb[38].mxu1 %vm694_vm1, %v6966_v35 }
0x1606   : > { %5522 = vmatprep.mubr.msk.f32.mxu1 %vm6154_vm0, %v6155_v1  ;;  %5521 = vmatpush3.xpose.msk.msra.mxu1 %vm776_vm2, %v6972_v38 }
0x1607   : > { %5525 = vmatprep.subr.mxu1 %v6155_v1 }
0x16d8   : > { %v3705_v43 = vpop.f32.mrb[38].mxu1 }
0x16d9   : > { %v3706_v2 = vadd.f32 %v5078_v42, %v3705_v43  ;;  %v5508_v44 = vpop.f32.mrb[39].mxu1 }
0x16da   : > { %v5083_v44 = vld [vmem:[%s7182_s8 + $0x68] sm:$0xff] }
0x16db   : > { %4129 = vrot.lane.b32.xlu0 %v3706_v2, %s7287_s2  ;;  %3963 = vrot.lane.b32.xlu1 %v3706_v2, %s7285_s6 }
0x16dc   : > { %5523 = vmatmul.mubr.msk.f32.vlgmr.msra.gmra.mrb[40].mxu1 %vm776_vm2, %v3706_v2 }
0x16dd   : > { %5527 = vmatprep.mubr.msk.f32.mxu1 %vm6154_vm0, %v6155_v1 }
0x16df   : > { %4295 = vrot.lane.b32.xlu0 %v3706_v2, %s7288_s10  ;;  %4131 = vrot.lane.b32.xlu1 %v6972_v38, %s7287_s2  ;;  %v5082_v2 = vld [vmem:[%s7182_s8 + $0x60] sm:$0xff]  ;;  %s6063_s2 = scalar_lea.vmem %s7131_s13, 128 }
0x16e0   : > { %p6064_p4 = scmp.ne.s32.totalorder %s7131_s13, %s6063_s2 }
0x16e2   : > { %p6065_p13 = pnand %p6064_p4, %p7299_p12 }
0x16e3   : > { %4297 = vrot.lane.b32.xlu1 %v6972_v38, %s7288_s10  ;;  %s6067_s10 = sshll.u32 %s6170_s1, 4  ;;  %s6068_s10 = int_to_ptr.vmem [resolvable:$false] %s6067_s10 }
0x16e4   : > { %p6066_p1 = pneg %p6065_p13  ;;  %s6069_s29 = scalar_lea.vmem %s6068_s10, 256 }
0x16e5   : > { %p6070_p3 = scmp.lt.s32.totalorder %s7131_s13, %s6068_s10  ;;  %p6071_p2 = scmp.lt.s32.totalorder %s6069_s29, %s6063_s2 }
0x16e7   : > { %p6072_p0 = por %p6071_p2, %p6070_p3 }
0x16e9   : > { %p6073_p6 = pnand %p6072_p0, %p6066_p1 }
0x174d   : > { %v3964_v45 = vpop.permute.xlu1 %3963  ;;  %v4130_v47 = vpop.permute.xlu0 %4129 }
0x174e   : > { %5533 = vmatmul.mubr.msk.f32.vlgmr.msra.gmra.mrb[30].mxu0 %vm776_vm2, %v3964_v45  ;;  %v5674_v45 = vpack.c.bf16 %v5083_v44, %v5082_v2 }
0x174f   : > { %5542 = vmatprep.mubr.msk.f32.mxu0 %vm6154_vm0, %v6155_v1 }
0x1751   : > { %v4132_v46 = vpop.permute.xlu1 %4131  ;;  %v4296_v49 = vpop.permute.xlu0 %4295 }
0x1752   : > { %5541 = vmatpush3.xpose.msk.msra.mxu0 %vm776_vm2, %v4132_v46  ;;  %v5084_v46 = vld [vmem:[%s7182_s8 + $0x70] sm:$0xff] }
0x1753   : > { %5550 = vmatprep.subr.mxu0 %v6155_v1 }
0x1755   : > { %5543 = vmatmul.mubr.msk.f32.vlgmr.msra.gmra.mrb[32].mxu0 %vm776_vm2, %v4130_v47  ;;  %v4298_v48 = vpop.permute.xlu1 %4297  ;;  %v5085_v47 = vld [vmem:[%s7182_s8 + $0x78] sm:$0xff] }
0x1756   : > { %5551 = vmatpush3.xpose.msk.msra.mxu0 %vm776_vm2, %v4298_v48  ;;  %5552 = vmatprep.mubr.msk.f32.mxu0 %vm6154_vm0, %v6155_v1  ;;  %v5677_v48 = vpack.c.bf16 %v5085_v47, %v5084_v46 }
0x1757   : > { %5673 = vmatprep.subr.bf16.mxu0 %v6153_v0 }
0x1759   : > { %5553 = vmatmul.mubr.msk.f32.vlgmr.msra.gmra.mrb[34].mxu0 %vm776_vm2, %v4296_v49 }
0x175a   : > { %5568 = vmatprep.mubr.msk.f32.mxu0 %vm6154_vm0, %v6155_v1  ;;  %5675 = vmatpush3.bf16.msra.mxu0 %v5674_v45 }
0x175b   : > { %5676 = vmatprep.subr.bf16.mxu0 %v6153_v0 }
0x175e   : > { %5678 = vmatpush3.bf16.msra.mxu0 %v5677_v48 }
0x175f   : > { %5685 = vmatprep.subr.bf16.mxu0 %v6153_v0 }
0x17af   : > { %v3871_v50 = vpop.f32.mrb[40].mxu1 }
0x17b0   : > { %v3875_v51 = vmul.f32 0.35355338, %v3871_v50  ;;  %v5524_v52 = vpop.f32.mrb[41].mxu1 }
0x17b2   : > { %v3876_v53 = vsel %vm776_vm2, %v3875_v51, -inf }
0x17b3   : > { %3877 = vmax.xlane.f32.xlu1 %v3876_v53 }
0x1821   : > { %v4037_v54 = vpop.f32.mrb[30].mxu0 }
0x1822   : > { %v4041_v55 = vmul.f32 0.35355338, %v4037_v54  ;;  %v5534_v56 = vpop.f32.mrb[31].mxu0 }
0x1824   : > { %v4042_v57 = vsel %vm776_vm2, %v4041_v55, -inf }
0x1825   : > { %4043 = vmax.xlane.f32.xlu0 %v4042_v57 }
0x1828   : > { %v4203_v58 = vpop.f32.mrb[32].mxu0 }
0x1829   : > { %v4207_v59 = vmul.f32 0.35355338, %v4203_v58  ;;  %v5544_v60 = vpop.f32.mrb[33].mxu0 }
0x182b   : > { %v4208_v61 = vsel %vm776_vm2, %v4207_v59, -inf }
0x182c   : > { %4209 = vmax.xlane.f32.xlu0 %v4208_v61  ;;  %v4369_v62 = vpop.f32.mrb[34].mxu0  ;;  %v5099_v61 = vld [vmem:[%s7183_s9 + $0x3] ss:$0 sm:$0xff] }
0x182d   : > { %v4373_v63 = vmul.f32 0.35355338, %v4369_v62  ;;  %v5554_v3 = vpop.f32.mrb[35].mxu0 }
0x182f   : > { %v4374_v4 = vsel %vm776_vm2, %v4373_v63, -inf }
0x1830   : > { %4375 = vmax.xlane.f32.xlu1 %v4374_v4 }
0x1840   : > { %v3878_v5 = vpop.xlane.xlu1 %3877 }
0x1841   : > { %v3879_v6 = vsub.f32 %v3875_v51, %v3878_v5  ;;  %4053 = vrot.lane.b32.xlu1 %v6972_v38, %s7279_s26 }
0x1843   : > { %v3880_v7 = vmul.f32 1.442695, %v3879_v6 }
0x1845   : > { %5871 = vpow2.f32 %v3880_v7 }
0x184f   : > { %v5872_v9 = vpop.eup %5871 }
0x1850   : > { %v3882_v10 = vsel %vm776_vm2, %v5872_v9, 0.0 }
0x1851   : > { %3883 = vadd.xlane.f32.xlu0 %v3882_v10  ;;  %v4591_v10 = vld [vmem:[#allocation11 + $0x28] sm:$0xff] }
0x1867   : > { %3887 = vrot.lane.b32.xlu0 %v6972_v38, %s7284_s19  ;;  %s7298_s19 = sld [smem:[#allocation36_spill]] }
0x186d   : > { %s7129_s6 = scalar_lea.hbm %s7298_s19, %s5126_s17 }
0x18b2   : > { %v4044_v11 = vpop.xlane.xlu0 %4043 }
0x18b3   : > { %v4045_v12 = vsub.f32 %v4041_v55, %v4044_v11 }
0x18b5   : > { %v4046_v13 = vmul.f32 1.442695, %v4045_v12  ;;  %v4593_v12 = vld [vmem:[#allocation11 + $0x38] sm:$0xff] }
0x18b7   : > { %5873 = vpow2.f32 %v4046_v13 }
0x18b9   : > { %v4210_v14 = vpop.xlane.xlu0 %4209 }
0x18ba   : > { %v4211_v15 = vsub.f32 %v4207_v59, %v4210_v14  ;;  %v5109_v14 = vld [vmem:[%s7281_s20 + $0x48] sm:$0xff] }
0x18bc   : > { %v4212_v16 = vmul.f32 1.442695, %v4211_v15  ;;  %v5110_v15 = vld [vmem:[%s7281_s20 + $0x50] sm:$0xff] }
0x18bd   : > { %v4376_v17 = vpop.xlane.xlu1 %4375 }
0x18be   : > { %5875 = vpow2.f32 %v4212_v16  ;;  %v4377_v18 = vsub.f32 %v4373_v63, %v4376_v17  ;;  %v5111_v17 = vld [vmem:[%s7281_s20 + $0x58] sm:$0xff] }
0x18c0   : > { %v4378_v19 = vmul.f32 1.442695, %v4377_v18  ;;  %v5689_v18 = vpack.c.bf16 %v5111_v17, %v5110_v15 }
0x18c1   : > { %v5874_v20 = vpop.eup %5873  ;;  %v4054_v29 = vpop.permute.xlu1 %4053 }
0x18c2   : > { %5877 = vpow2.f32 %v4378_v19  ;;  %v4048_v41 = vsel %vm776_vm2, %v5874_v20, 0.0  ;;  %v5112_v19 = vld [vmem:[%s7281_s20 + $0x60] sm:$0xff] }
0x18c3   : > { %4049 = vadd.xlane.f32.xlu1 %v4048_v41 }
0x18c8   : > { %v5876_v21 = vpop.eup %5875 }
0x18c9   : > { %v4214_v22 = vsel %vm776_vm2, %v5876_v21, 0.0 }
0x18ca   : > { %4215 = vadd.xlane.f32.xlu0 %v4214_v22 }
0x18cc   : > { %v5878_v23 = vpop.eup %5877 }
0x18cd   : > { %v4380_v24 = vsel %vm776_vm2, %v5878_v23, 0.0 }
0x18ce   : > { %4381 = vadd.xlane.f32.xlu1 %v4380_v24 }
0x18de   : > { %v3884_v25 = vpop.xlane.xlu0 %3883 }
0x18df   : > { %5879 = vrcp.f32 %v3884_v25  ;;  %4219 = vrot.lane.b32.xlu1 %v6972_v38, %s7286_s5  ;;  %s4833_s5 = scalar_lea.sflag [#allocation4], %s6503_s24 }
0x18e0   : > { %4385 = vrot.lane.b32.xlu0 %v6972_v38, %s7278_s23 }
0x18e2   : > { %v3888_v26 = vpop.permute.xlu0 %3887 }
0x18e3   : > { %5526 = vmatpush3.msra.mxu1 %v3888_v26 }
0x18e4   : > { %5535 = vmatprep.subr.mxu1 %v6155_v1 }
0x18e9   : > { %v5880_v27 = vpop.eup %5879 }
0x18ea   : > { %v3886_v28 = vmul.f32 %v5880_v27, %v5872_v9  ;;  %v4590_v9 = vld [vmem:[#allocation11 + $0x20] sm:$0xff] }
0x18eb   : > { %v5680_v11 = vpack.c.bf16 %v4591_v10, %v4590_v9 }
0x18ec   : > { %5528 = vmatmul.mubr.msk.f32.vlgmr.msra.gmra.mrb[42].mxu1 %vm776_vm2, %v3886_v28 }
0x18ed   : > { %5536 = vmatpush3.msra.mxu1 %v4054_v29  ;;  %5537 = vmatprep.mubr.msk.f32.mxu1 %vm6154_vm0, %v6155_v1 }
0x18ee   : > { %5545 = vmatprep.subr.mxu1 %v6155_v1 }
0x1950   : > { %v4050_v30 = vpop.xlane.xlu1 %4049 }
0x1951   : > { %5881 = vrcp.f32 %v4050_v30  ;;  %v5103_v30 = vld [vmem:[%s7188_s14 + $0x4] ss:$0 sm:$0xff] }
0x1957   : > { %v4216_v31 = vpop.xlane.xlu0 %4215 }
0x1958   : > { %5883 = vrcp.f32 %v4216_v31 }
0x195b   : > { %v5882_v8 = vpop.eup %5881  ;;  %v4382_v32 = vpop.xlane.xlu1 %4381 }
0x195c   : > { %v4052_v33 = vmul.f32 %v5882_v8, %v5874_v20  ;;  %5885 = vrcp.f32 %v4382_v32  ;;  %v4386_v38 = vpop.permute.xlu0 %4385  ;;  %v5113_v20 = vld [vmem:[%s7281_s20 + $0x68] sm:$0xff]  ;;  %v5104_v8 = vld [vmem:[%s7277_s11 + $0x4] ss:$0 sm:$0xff] }
0x195d   : > { %v5692_v41 = vpack.c.bf16 %v5113_v20, %v5112_v19 }
0x195e   : > { %5538 = vmatmul.mubr.msk.f32.vlgmr.msra.gmra.mrb[44].mxu1 %vm776_vm2, %v4052_v33  ;;  %v5114_v33 = vld [vmem:[%s7281_s20 + $0x70] sm:$0xff] }
0x195f   : > { %v4220_v34 = vpop.permute.xlu1 %4219  ;;  %5547 = vmatprep.mubr.msk.f32.mxu1 %vm6154_vm0, %v6155_v1 }
0x1960   : > { %5546 = vmatpush3.msra.mxu1 %v4220_v34  ;;  %v5115_v34 = vld [vmem:[%s7281_s20 + $0x78] sm:$0xff] }
0x1961   : > { %5555 = vmatprep.subr.mxu1 %v6155_v1 }
0x1962   : > { %v5884_v36 = vpop.eup %5883 }
0x1963   : > { %v4218_v37 = vmul.f32 %v5884_v36, %v5876_v21  ;;  %v5695_v36 = vpack.c.bf16 %v5115_v34, %v5114_v33 }
0x1965   : > { %5548 = vmatmul.mubr.msk.f32.vlgmr.msra.gmra.mrb[46].mxu1 %vm776_vm2, %v4218_v37  ;;  %v5106_v37 = vld [vmem:[%s7282_s4 + $0x1] ss:$0 sm:$0xff] }
0x1966   : > { %v5886_v39 = vpop.eup %5885  ;;  %5556 = vmatpush3.msra.mxu1 %v4386_v38  ;;  %5557 = vmatprep.mubr.msk.f32.mxu1 %vm6154_vm0, %v6155_v1 }
0x1967   : > { %v4384_v40 = vmul.f32 %v5886_v39, %v5878_v23  ;;  %5679 = vmatprep.subr.bf16.mxu1 %v6153_v0 }
0x1969   : > { %5558 = vmatmul.mubr.msk.f32.vlgmr.msra.gmra.mrb[48].mxu1 %vm776_vm2, %v4384_v40 }
0x196a   : > { %5579 = vmatprep.mubr.msk.f32.mxu1 %vm6154_vm0, %v6155_v1  ;;  %5681 = vmatpush3.bf16.msra.mxu1 %v5680_v11 }
0x196b   : > { %5682 = vmatprep.subr.bf16.mxu1 %v6153_v0 }
0x19bf   : > { %v3959_v42 = vpop.f32.mrb[42].mxu1 }
0x19c0   : > { %v5529_v43 = vpop.f32.mrb[43].mxu1 }
0x19c1   : > { %v5117_v43 = vld [vmem:[%s7283_s15 + $0x1] ss:$0 sm:$0xff] }
0x1a31   : > { %v4125_v49 = vpop.f32.mrb[44].mxu1 }
0x1a32   : > { %4462 = vrot.lane.b32.xlu1 %v4125_v49, %s7293_s3  ;;  %v5539_v50 = vpop.f32.mrb[45].mxu1  ;;  %s7295_s3 = sld [smem:[#allocation34_spill]] }
0x1a38   : > { %v4291_v51 = vpop.f32.mrb[46].mxu1 }
0x1a39   : > { %4466 = vrot.lane.b32.xlu0 %v4291_v51, %s7294_s22  ;;  %v5549_v52 = vpop.f32.mrb[47].mxu1 }
0x1a3c   : > { %v4457_v53 = vpop.f32.mrb[48].mxu1 }
0x1a3d   : > { %4470 = vrot.lane.b32.xlu1 %v4457_v53, %s7280_s18  ;;  %v5559_v54 = vpop.f32.mrb[49].mxu1 }
0x1aa4   : > { %v4463_v55 = vpop.permute.xlu1 %4462 }
0x1aa5   : > { %v4473_v57 = vsel %vm776_vm2, %v3959_v42, %v4463_v55 }
0x1aab   : > { %v4467_v56 = vpop.permute.xlu0 %4466 }
0x1aac   : > { %v4474_v58 = vsel %vm1450_vm3, %v4473_v57, %v4467_v56 }
0x1aaf   : > { %v4471_v59 = vpop.permute.xlu1 %4470 }
0x1ab0   : > { %v4475_v60 = vsel %vm1452_vm4, %v4474_v58, %v4471_v59  ;;  %v5121_v59 = vld [vmem:[%s7188_s14 + $0x5] ss:$0 sm:$0xff] }
0x1ab1   : > { %5569 = vmatmul.mubr.msk.f32.vlgmr.msra.gmra.mrb[36].mxu0 %vm694_vm1, %v4475_v60 }
0x1ab2   : > { %5598 = vmatprep.mubr.msk.f32.mxu0 %vm6154_vm0, %v6155_v1  ;;  %v4592_v1 = vld [vmem:[#allocation11 + $0x30] sm:$0xff] }
0x1ab3   : > { %v5683_v13 = vpack.c.bf16 %v4593_v12, %v4592_v1 }
0x1ab5   : > { %5684 = vmatpush3.bf16.msra.mxu1 %v5683_v13 }
0x1b84   : > { %v4551_v62 = vpop.f32.mrb[36].mxu0 }
0x1b85   : > { %v4552_v63 = vadd.f32 %v5099_v61, %v4551_v62  ;;  %v5570_v3 = vpop.f32.mrb[37].mxu0  ;;  %v5122_v61 = vld [vmem:[%s7277_s11 + $0x5] ss:$0 sm:$0xff] }
0x1b87   : > { %v4555_v4 = vadd.f32 %v4552_v63, %v6966_v35  ;;  %v5108_v35 = vld [vmem:[%s7281_s20 + $0x40] sm:$0xff] }
0x1b88   : > { %v5686_v16 = vpack.c.bf16 %v5109_v14, %v5108_v35  ;;  %v5123_v14 = vld [vmem:[%s7295_s3] ss:$0 sm:$0xff] }
0x1b89   : > { %v4560_v5 = vsel %vm694_vm1, %v4555_v4, 0.0  ;;  %v4564_v6 = vmul.f32 %v4555_v4, %v4555_v4 }
0x1b8a   : > { %4561 = vadd.xlane.f32.xlu0 %v4560_v5  ;;  %5687 = vmatpush3.bf16.msra.mxu0 %v5686_v16  ;;  %v5124_v16 = vld [vmem:[%s7296_s16] ss:$0 sm:$0xff] }
0x1b8b   : > { %v4565_v7 = vsel %vm694_vm1, %v4564_v6, 0.0  ;;  %5688 = vmatprep.subr.bf16.mxu0 %v6153_v0 }
0x1b8c   : > { %4566 = vadd.xlane.f32.xlu1 %v4565_v7 }
0x1b8e   : > { %5690 = vmatpush3.bf16.msra.mxu0 %v5689_v18 }
0x1b8f   : > { %5691 = vmatprep.subr.bf16.mxu0 %v6153_v0 }
0x1b92   : > { %5693 = vmatpush3.bf16.msra.mxu0 %v5692_v41 }
0x1b93   : > { %5694 = vmatprep.subr.bf16.mxu0 %v6153_v0 }
0x1b96   : > { %5696 = vmatpush3.bf16.msra.mxu0 %v5695_v36 }
0x1c17   : > { %v4562_v21 = vpop.xlane.xlu0 %4561 }
0x1c18   : > { %v4563_v22 = vmul.f32 0.03125, %v4562_v21 }
0x1c19   : > { %v4567_v23 = vpop.xlane.xlu1 %4566 }
0x1c1a   : > { %v4569_v24 = vmul.f32 %v4563_v22, %v4563_v22  ;;  %v4568_v25 = vmul.f32 0.03125, %v4567_v23  ;;  %v4571_v28 = vsub.f32 %v4555_v4, %v4563_v22 }
0x1c1c   : > { %v4570_v26 = vsub.f32 %v4568_v25, %v4569_v24 }
0x1c1e   : > { %v4572_v27 = vadd.f32 1e-05, %v4570_v26 }
0x1c20   : > { %5887 = vrsqrt.f32 %v4572_v27 }
0x1c2a   : > { %v5888_v29 = vpop.eup %5887 }
0x1c2b   : > { %v4574_v31 = vmul.f32 %v5888_v29, %v4571_v28 }
0x1c2d   : > { %v4581_v0 = vmul.f32 %v5103_v30, %v4574_v31 }
0x1c2f   : > { %v4588_v32 = vadd.f32 %v5104_v8, %v4581_v0 }
0x1c31   : > { %5580 = vmatmul.mubr.msk.f32.vlgmr.msra.gmra.mrb[50].mxu1 %vm694_vm1, %v4588_v32 }
0x1d04   : > { %v4671_v38 = vpop.f32.mrb[50].mxu1 }
0x1d05   : > { %v4672_v39 = vadd.f32 %v5106_v37, %v4671_v38  ;;  %v5581_v40 = vpop.f32.mrb[51].mxu1 }
0x1d07   : > { %v4675_v42 = vmax.f32 %v4672_v39, 0.0 }
0x1d09   : > { %5599 = vmatmul.mubr.msk.f32.vlgmr.msra.gmra.mrb[38].mxu0 %vm2631_vm5, %v4675_v42 }
0x1ddc   : > { %v4762_v2 = vpop.f32.mrb[38].mxu0 }
0x1ddd   : > { %v4763_v44 = vadd.f32 %v5117_v43, %v4762_v2  ;;  %v5600_v45 = vpop.f32.mrb[39].mxu0 }
0x1ddf   : > { %v4766_v46 = vadd.f32 %v4763_v44, %v4588_v32 }
0x1de1   : > { %v4771_v47 = vsel %vm694_vm1, %v4766_v46, 0.0  ;;  %v4775_v48 = vmul.f32 %v4766_v46, %v4766_v46 }
0x1de2   : > { %4772 = vadd.xlane.f32.xlu0 %v4771_v47 }
0x1de3   : > { %v4776_v49 = vsel %vm694_vm1, %v4775_v48, 0.0 }
0x1de6   : > { %4777 = vadd.xlane.f32.xlu0 %v4776_v49 }
0x1e6f   : > { %v4773_v50 = vpop.xlane.xlu0 %4772 }
0x1e70   : > { %v4774_v51 = vmul.f32 0.03125, %v4773_v50 }
0x1e72   : > { %v4780_v53 = vmul.f32 %v4774_v51, %v4774_v51  ;;  %v4782_v57 = vsub.f32 %v4766_v46, %v4774_v51 }
0x1e73   : > { %v4778_v52 = vpop.xlane.xlu0 %4777 }
0x1e74   : > { %v4779_v54 = vmul.f32 0.03125, %v4778_v52 }
0x1e76   : > { %v4781_v55 = vsub.f32 %v4779_v54, %v4780_v53 }
0x1e78   : > { %v4783_v56 = vadd.f32 1e-05, %v4781_v55 }
0x1e7a   : > { %5889 = vrsqrt.f32 %v4783_v56 }
0x1e84   : > { %v5890_v58 = vpop.eup %5889 }
0x1e85   : > { %v4785_v60 = vmul.f32 %v5890_v58, %v4782_v57 }
0x1e87   : > { %v4792_v62 = vmul.f32 %v5121_v59, %v4785_v60 }
0x1e89   : > { %v4799_v63 = vadd.f32 %v5122_v61, %v4792_v62 }
0x1e8b   : > { %v4802_v3 = vsel %vm694_vm1, %v4799_v63, 0.0  ;;  %v4806_v4 = vmul.f32 %v4799_v63, %v4799_v63 }
0x1e8c   : > { %4803 = vadd.xlane.f32.xlu1 %v4802_v3 }
0x1e8d   : > { %v4807_v5 = vsel %vm694_vm1, %v4806_v4, 0.0 }
0x1e8e   : > { %4808 = vadd.xlane.f32.xlu0 %v4807_v5 }
0x1f19   : > { %v4804_v6 = vpop.xlane.xlu1 %4803 }
0x1f1a   : > { %v4805_v7 = vmul.f32 0.03125, %v4804_v6 }
0x1f1b   : > { %v4809_v9 = vpop.xlane.xlu0 %4808 }
0x1f1c   : > { %v4811_v10 = vmul.f32 %v4805_v7, %v4805_v7  ;;  %v4810_v11 = vmul.f32 0.03125, %v4809_v9  ;;  %v4813_v13 = vsub.f32 %v4799_v63, %v4805_v7 }
0x1f1e   : > { %v4812_v1 = vsub.f32 %v4810_v11, %v4811_v10 }
0x1f20   : > { %v4814_v12 = vadd.f32 1e-05, %v4812_v1 }
0x1f22   : > { %5891 = vrsqrt.f32 %v4814_v12 }
0x1f2c   : > { %v5892_v35 = vpop.eup %5891 }
0x1f2d   : > { %v4816_v15 = vmul.f32 %v5892_v35, %v4813_v13 }
0x1f2f   : > { %v4823_v17 = vmul.f32 %v5123_v14, %v4816_v15 }
0x1f31   : > { %v4830_v18 = vadd.f32 %v5124_v16, %v4823_v17 }
0x1f33   : > { %4831 = vst.msk [vmem:[%s676_s7] sm:$0xff] %vm694_vm1, %v4830_v18 }
0x1f34   : > { %6076 = shalt.err (!%p6073_p6)
}
0x1f35   : > { %s6077_s24 = scalar_lea.hbm %s7129_s6, 128  ;;  %s6081_s18 = scalar_lea.hbm %s7298_s19, 256 }
0x1f36   : > { %p6078_p10 = scmp.ne.s32.totalorder %s7129_s6, %s6077_s24  ;;  %p6082_p5 = scmp.lt.u32.totalorder %s7129_s6, %s7298_s19 }
0x1f37   : > { %p6083_p9 = scmp.lt.u32.totalorder %s6081_s18, %s6077_s24  ;;  %p6085_p4 = scmp.lt.u32.totalorder %s6077_s24, %s7129_s6 }
0x1f38   : > { %p6079_p11 = pnand %p6078_p10, %p7299_p12 }
0x1f39   : > { %p6084_p7 = por %p6083_p9, %p6082_p5 }
0x1f3a   : > { %p6080_p8 = pneg %p6079_p11 }
0x1f3b   : > { %p6086_p13 = por %p6085_p4, %p6084_p7 }
0x1f3d   : > { %p6087_p1 = pnand %p6086_p13, %p6080_p8 }
0x1f3f   : > { %6090 = shalt.err (!%p6087_p1)
}
0x1f40   : > { %5719 = dma.vmem_to_hbm [thread:$0]  (%p7299_p12), %s7131_s13, 128, %s7129_s6, %s4833_s5  }
0x1f41 PF: > { %s4858_s25 = sand.u32 1, %s6129_s27   ;;  %p7300_p3 = scmp.ne.s32.totalorder %s7264_s12, 0 }
0x1f42   : > { %p7301_p2 = scmp.ge.s32.totalorder %s6141_s30, 2  ;;  %s4859_s7 = scalar_lea.sflag [#allocation4], %s4858_s25 }
0x1f44   : > { %p5742_p0 = pnand %p7301_p2, %p7300_p3 }
0x1f46   : > { %6124 = dma.done.wait (!%p5742_p0), %s4859_s7, 128  }
0x1f47   : > { %6126 = vsyncadd (!%p5742_p0), %s4859_s7, 4294967168  ;;  %s7302_s23 = sld [smem:[#allocation19_spill]]  ;;  %s7303_s29 = sld [smem:[#allocation20_spill]] }
0x1f48   : > { %p34_p6 = scmp.ge.s32.totalorder %s6433_s21, 4   ;;  %s7304_s27 = smov %s6133_s28 }
0x1f49   : > { %s7306_s30 = smov %s6433_s21 }
0x1f4a   :  { %36 = sbr.rel (!%p34_p6) target bundleno = 25 (0x19), region = 186 }
0x1f4d   : > { %s7305_s28 = smov %s7302_s23 }
0x1f51   :  { %4864 = vsyncpa [#allocation3], 1 }
0x1f52   :  { %4866 = vsyncpa [#allocation3 + $0x1], 1 }
0x1f53   :  { %4867 = vsyncpa [#allocation6], 1 }
0x1f54   :  { %4868 = vsyncpa [#allocation9], 1 }
0x1f55   :  { %4869 = vsyncpa [#allocation12], 1 }
0x1f56   :  { %4870 = vsyncpa [#allocation4], 1 }
0x1f57   :  { %4872 = vsyncpa [#allocation4 + $0x1], 1 }

</bundles_post_ra>
